<compile_context>
chip_gen: v7x
topology: tpu7x:2x2x1
jax: 0.10.0
libtpu: 0.0.40
codegen_flags: <defaults>
</compile_context>

<pallas_src>
import functools
import math

import jax
import jax.numpy as jnp
from jax import lax
from jax.experimental import pallas as pl
from jax.experimental.pallas import tpu as pltpu


_NEG_BIG = -3.0e38          # stand-in for -inf on masked (padded) defen rows


def _leaky_relu(x, slope=0.1):          # module uses F.leaky_relu(x, 0.1)
    return jnp.where(x > 0, x, slope * x)


# ----------------------------------------------------------------------------
# Fused kernel: 6 matmuls + activations + per-row SAM pieces + per-row SSE.
# ----------------------------------------------------------------------------
def ae_fused_kernel(x_ref, colsum_ref, cnorm_ref, nvalid_ref,
                    w1_ref, b1_ref, w2_ref, b2_ref, w3_ref, b3_ref,
                    w4_ref, b4_ref, w5_ref, b5_ref, w6_ref, b6_ref,
                    z_ref, y_ref, defen_ref, sse_ref):
    bf16, f32 = jnp.bfloat16, jnp.float32
    tm = x_ref.shape[0]

    x = x_ref[...]                                          # [TM, Dp] f32

    # ---- encoder (bf16 MXU operands, f32 accumulate / elementwise) ----
    h1 = _leaky_relu(jnp.dot(x.astype(bf16), w1_ref[...],
                             preferred_element_type=f32) + b1_ref[...])
    h2 = _leaky_relu(jnp.dot(h1.astype(bf16), w2_ref[...],
                             preferred_element_type=f32) + b2_ref[...])
    z = jnp.dot(h2.astype(bf16), w3_ref[...],
                preferred_element_type=f32) + b3_ref[...]
    z_ref[...] = z.astype(z_ref.dtype)

    # ---- decoder ----
    d1 = _leaky_relu(jnp.dot(z.astype(bf16), w4_ref[...],
                             preferred_element_type=f32) + b4_ref[...])
    d2 = _leaky_relu(jnp.dot(d1.astype(bf16), w5_ref[...],
                             preferred_element_type=f32) + b5_ref[...])
    y = jnp.tanh(jnp.dot(d2.astype(bf16), w6_ref[...],
                         preferred_element_type=f32) + b6_ref[...])
    y_ref[...] = y.astype(y_ref.dtype)

    # ---- fused loss pieces: lane-dense [1, TM] rows, reductions on the MXU ----
    dn = (((1,), (1,)), ((), ()))                           # contract last dims
    colsum = colsum_ref[...]                                # [1, Dp] f32
    ones_row = jnp.ones_like(colsum)                        # [1, Dp]
    a_row = lax.dot_general(colsum, y, dn, preferred_element_type=f32)   # [1, TM]
    diff = y - x
    # one MXU push for both ||y_i||^2 and per-row SSE: stack along sublanes
    stacked = jnp.concatenate([y * y, diff * diff], axis=0)              # [2TM, Dp]
    merged = lax.dot_general(ones_row, stacked, dn,
                             preferred_element_type=f32)                 # [1, 2TM]
    b2_row = merged[:, :tm]
    sse_row = merged[:, tm:]

    c = cnorm_ref[0, 0]                                     # ||data_input||_F (SMEM)
    defen_row = a_row / (jnp.sqrt(b2_row) * c + 1e-5)

    # mask padded batch rows so downstream sum / top_k need no un-pad slice
    row_ids = pl.program_id(0) * tm + lax.broadcasted_iota(jnp.int32, (1, tm), 1)
    valid = row_ids < nvalid_ref[0, 0]
    defen_ref[...] = jnp.where(valid, defen_row, _NEG_BIG).reshape(defen_ref.shape)
    sse_ref[...] = jnp.where(valid, sse_row, 0.0).reshape(sse_ref.shape)


# ----------------------------------------------------------------------------
# Encoder-only kernel for with_decoder=False (3 matmuls, z output only).
# ----------------------------------------------------------------------------
def ae_encoder_kernel(x_ref, w1_ref, b1_ref, w2_ref, b2_ref, w3_ref, b3_ref,
                      z_ref):
    bf16, f32 = jnp.bfloat16, jnp.float32
    x = x_ref[...]
    h1 = _leaky_relu(jnp.dot(x.astype(bf16), w1_ref[...],
                             preferred_element_type=f32) + b1_ref[...])
    h2 = _leaky_relu(jnp.dot(h1.astype(bf16), w2_ref[...],
                             preferred_element_type=f32) + b2_ref[...])
    z = jnp.dot(h2.astype(bf16), w3_ref[...],
                preferred_element_type=f32) + b3_ref[...]
    z_ref[...] = z.astype(z_ref.dtype)


# ----------------------------------------------------------------------------
# Wrapper helpers
# ----------------------------------------------------------------------------
def _round_up(v, m):
    return (v + m - 1) // m * m


def _pad2(a, rows, cols):
    r, c = a.shape
    return jnp.pad(a, ((0, rows - r), (0, cols - c)))


def _const_spec(shape):
    # Constant across the grid -> single buffer (halves resident-weight VMEM).
    idx = lambda i: (0,) * len(shape)
    try:
        return pl.BlockSpec(shape, idx, pipeline_mode=pl.Buffered(1))
    except TypeError:                      # older BlockSpec signature
        return pl.BlockSpec(shape, idx)


def _choose_tm(n, max_tm=512):
    """Largest batch tile <= max_tm, preferring >= 2 grid steps (v7x 2 TCs)."""
    if n <= 128:
        return 128
    return min(max_tm, _round_up(pl.cdiv(n, 2), 128))


def _vmem_limit_bytes(needed):
    try:
        cap = pltpu.get_tpu_info().vmem_capacity_bytes
    except Exception:
        cap = 64 * 1024 * 1024             # v7x-safe fallback (64 MiB physical)
    # 2x headroom for Mosaic scratch / spills, min 32 MiB, cap at 75% physical.
    return int(min(max(2 * needed, 32 * 1024 * 1024), int(0.75 * cap)))


def prepare_params(params):
    """One-time pad (to multiples of 128) + bf16 cast of the Linear weights.

    Hoisted out of the per-step path per perf review.  Zero padding is exact:
    padded hidden units / feature columns stay identically zero end to end.
    """
    (w1, b1, w2, b2, w3, b3, w4, b4, w5, b5, w6, b6) = params
    dim_data, n_hidden = w1.shape
    dim_z = w3.shape[1]
    dp = _round_up(dim_data, 128)
    hp = _round_up(n_hidden, 128)
    zp = _round_up(dim_z, 128)
    f32, bf16 = jnp.float32, jnp.bfloat16
    w1p = _pad2(w1, dp, hp).astype(bf16)
    w2p = _pad2(w2, hp, hp).astype(bf16)
    w3p = _pad2(w3, hp, zp).astype(bf16)
    w4p = _pad2(w4, zp, hp).astype(bf16)
    w5p = _pad2(w5, hp, hp).astype(bf16)
    w6p = _pad2(w6, hp, dp).astype(bf16)
    b1p = _pad2(b1.astype(f32), 1, hp)
    b2p = _pad2(b2.astype(f32), 1, hp)
    b3p = _pad2(b3.astype(f32), 1, zp)
    b4p = _pad2(b4.astype(f32), 1, hp)
    b5p = _pad2(b5.astype(f32), 1, hp)
    b6p = _pad2(b6.astype(f32), 1, dp)
    return (w1p, b1p, w2p, b2p, w3p, b3p, w4p, b4p, w5p, b5p, w6p, b6p)


# ----------------------------------------------------------------------------
# Fused forward (decoder + loss pieces)
# ----------------------------------------------------------------------------
def ae_fused_forward(x, data_input, prepared, *, out_dtype=jnp.bfloat16,
                     max_tm=512):
    (w1p, b1p, w2p, b2p, w3p, b3p, w4p, b4p, w5p, b5p, w6p, b6p) = prepared
    N, dim_data = x.shape
    dp, hp = w1p.shape
    zp = w3p.shape[1]
    f32 = jnp.float32

    tm = _choose_tm(N, max_tm)
    np_ = _round_up(N, tm)
    nt = np_ // tm

    # x stays f32 so the SSE against x is exact.
    # TODO(synk): optionally feed x as bf16 to halve input HBM traffic (precision trade-off).
    xp = _pad2(x.astype(f32), np_, dp)

    # Batch-independent data_input statistics, computed once outside the kernel.
    d32 = data_input.astype(f32)
    colsum = _pad2(jnp.sum(d32, axis=1).reshape(1, dim_data), 1, dp)
    c_norm = jnp.sqrt(jnp.sum(d32 * d32)).reshape(1, 1)
    n_valid = jnp.full((1, 1), N, dtype=jnp.int32)

    args = (xp, colsum, c_norm, n_valid,
            w1p, b1p, w2p, b2p, w3p, b3p, w4p, b4p, w5p, b5p, w6p, b6p)

    in_specs = [
        pl.BlockSpec((tm, dp), lambda i: (i, 0)),               # x tile (pipelined)
        _const_spec((1, dp)),                                   # colsum row
        pl.BlockSpec(memory_space=pltpu.MemorySpace.SMEM),      # ||data||_F scalar
        pl.BlockSpec(memory_space=pltpu.MemorySpace.SMEM),      # N (valid rows)
        _const_spec(w1p.shape), _const_spec(b1p.shape),
        _const_spec(w2p.shape), _const_spec(b2p.shape),
        _const_spec(w3p.shape), _const_spec(b3p.shape),
        _const_spec(w4p.shape), _const_spec(b4p.shape),
        _const_spec(w5p.shape), _const_spec(b5p.shape),
        _const_spec(w6p.shape), _const_spec(b6p.shape),
    ]
    out_shape = (
        jax.ShapeDtypeStruct((np_, zp), out_dtype),   # z (padded)
        jax.ShapeDtypeStruct((np_, dp), out_dtype),   # y (padded)
        jax.ShapeDtypeStruct((nt, 1, tm), f32),       # defen, lane-dense rows
        jax.ShapeDtypeStruct((nt, 1, tm), f32),       # per-row SSE, lane-dense rows
    )
    out_specs = (
        pl.BlockSpec((tm, zp), lambda i: (i, 0)),
        pl.BlockSpec((tm, dp), lambda i: (i, 0)),
        pl.BlockSpec((1, 1, tm), lambda i: (i, 0, 0)),
        pl.BlockSpec((1, 1, tm), lambda i: (i, 0, 0)),
    )

    nbytes = lambda a: a.size * a.dtype.itemsize
    out_item = jnp.dtype(out_dtype).itemsize
    weight_bytes = sum(nbytes(a) for a in (w1p, b1p, w2p, b2p, w3p, b3p,
                                           w4p, b4p, w5p, b5p, w6p, b6p, colsum))
    tile_bytes = (tm * dp * 4 + tm * dp * out_item + tm * zp * out_item
                  + 2 * tm * 4)
    needed = weight_bytes + 2 * tile_bytes   # weights single-buffered, tiles 2x

    z_pad, y_pad, defen3, sse3 = pl.pallas_call(
        ae_fused_kernel,
        out_shape=out_shape,
        grid=(nt,),
        in_specs=in_specs,
        out_specs=out_specs,
        compiler_params=pltpu.CompilerParams(
            dimension_semantics=("parallel",),
            vmem_limit_bytes=_vmem_limit_bytes(needed)),
    )(*args)
    return z_pad, y_pad, defen3, sse3


# ----------------------------------------------------------------------------
# Encoder-only path (with_decoder=False)
# ----------------------------------------------------------------------------
def ae_encode(x, prepared, *, dim_z, out_dtype=jnp.bfloat16, max_tm=512):
    (w1p, b1p, w2p, b2p, w3p, b3p) = prepared[:6]
    N, dim_data = x.shape
    dp, hp = w1p.shape
    zp = w3p.shape[1]

    tm = _choose_tm(N, max_tm)
    np_ = _round_up(N, tm)
    nt = np_ // tm
    xp = _pad2(x.astype(jnp.float32), np_, dp)

    nbytes = lambda a: a.size * a.dtype.itemsize
    needed = (sum(nbytes(a) for a in (w1p, b1p, w2p, b2p, w3p, b3p))
              + 2 * (tm * dp * 4 + tm * zp * jnp.dtype(out_dtype).itemsize))

    z_pad = pl.pallas_call(
        ae_encoder_kernel,
        out_shape=jax.ShapeDtypeStruct((np_, zp), out_dtype),
        grid=(nt,),
        in_specs=[
            pl.BlockSpec((tm, dp), lambda i: (i, 0)),
            _const_spec(w1p.shape), _const_spec(b1p.shape),
            _const_spec(w2p.shape), _const_spec(b2p.shape),
            _const_spec(w3p.shape), _const_spec(b3p.shape),
        ],
        out_specs=pl.BlockSpec((tm, zp), lambda i: (i, 0)),
        compiler_params=pltpu.CompilerParams(
            dimension_semantics=("parallel",),
            vmem_limit_bytes=_vmem_limit_bytes(needed)),
    )(xp, w1p, b1p, w2p, b2p, w3p, b3p)

    if z_pad.shape == (N, dim_z):
        return z_pad
    return z_pad[:N, :dim_z]


# ----------------------------------------------------------------------------
# Public forward (matches AE.forward semantics)
# ----------------------------------------------------------------------------
@functools.partial(jax.jit, static_argnames=("dim_z", "with_decoder", "out_dtype"))
def ae_forward(x, data_input, prepared, dim_z, with_decoder=True,
               out_dtype=jnp.bfloat16):
    if not with_decoder:
        return ae_encode(x, prepared, dim_z=dim_z, out_dtype=out_dtype)

    N, dim_data = x.shape
    z_pad, y_pad, defen3, sse3 = ae_fused_forward(
        x, data_input, prepared, out_dtype=out_dtype)

    # F.mse_loss mean reduction over the N * dim_data real elements (padded
    # rows were zeroed inside the kernel, so no slice is needed here).
    mse_loss = jnp.sum(sse3) / (N * dim_data)
    # torch.randint(1, [1, 1]) is always 0 and is sliced off by SAM[1:] — omitted.
    # TODO(synk): torch.topk stays in XLA (jax.lax.top_k); no in-kernel Pallas
    # equivalent worth writing for k=20.
    sam_loss = jnp.sum(lax.top_k(defen3.reshape(-1), 20)[0])
    R_loss = mse_loss + 0.1 * sam_loss      # sum(sum(.)) / mean(.) of a scalar

    # Un-pad only if padding actually happened (the slice is an extra HBM copy).
    y = y_pad if y_pad.shape == (N, dim_data) else y_pad[:N, :dim_data]
    z = z_pad if z_pad.shape == (N, dim_z) else z_pad[:N, :dim_z]
    return y, z, R_loss


def init_params(key, dim_data, dim_z, n_hidden):
    """Deterministic PyTorch-Linear-style init; weights stored as [in, out]."""
    def linear(key, fan_in, fan_out):
        kw, kb = jax.random.split(key)
        bound = 1.0 / math.sqrt(fan_in)
        w = jax.random.uniform(kw, (fan_in, fan_out), jnp.float32, -bound, bound)
        b = jax.random.uniform(kb, (1, fan_out), jnp.float32, -bound, bound)
        return w, b

    keys = jax.random.split(key, 6)
    w1, b1 = linear(keys[0], dim_data, n_hidden)   # encoder1
    w2, b2 = linear(keys[1], n_hidden, n_hidden)   # encoder2
    w3, b3 = linear(keys[2], n_hidden, dim_z)      # encoder3
    w4, b4 = linear(keys[3], dim_z, n_hidden)      # decoder1
    w5, b5 = linear(keys[4], n_hidden, n_hidden)   # decoder2
    w6, b6 = linear(keys[5], n_hidden, dim_data)   # decoder3
    return (w1, b1, w2, b2, w3, b3, w4, b4, w5, b5, w6, b6)


if __name__ == "__main__":
    # Small shapes consistent with the module; batch >= 20 (topk k=20),
    # non-128-multiple feature dims exercise the exact zero-padding path,
    # and the adaptive tiling yields an even 2-step grid (v7x 2-TC sharding).
    N = 384          # -> tm=256, padded to 512, grid of 2 parallel tiles
    DIM_DATA = 64    # padded to 128
    DIM_Z = 16       # padded to 128
    N_HIDDEN = 200   # padded to 256
    K = 8            # data_input is [dim_data, K]

    root = jax.random.PRNGKey(0)
    k_params, k_x, k_d = jax.random.split(root, 3)

    params = init_params(k_params, DIM_DATA, DIM_Z, N_HIDDEN)
    prepared = prepare_params(params)       # one-time pad + bf16 cast (hoisted)
    x = jax.random.normal(k_x, (N, DIM_DATA), jnp.float32)
    data_input = jax.random.normal(k_d, (DIM_DATA, K), jnp.float32)

    y, z, r_loss = ae_forward(x, data_input, prepared, dim_z=DIM_Z)
    jax.block_until_ready((y, z, r_loss))

    z_only = ae_forward(x, data_input, prepared, dim_z=DIM_Z, with_decoder=False)
    jax.block_until_ready(z_only)

    assert y.shape == (N, DIM_DATA)
    assert z.shape == (N, DIM_Z)
    assert z_only.shape == (N, DIM_Z)
    assert r_loss.shape == ()
    assert bool(jnp.isfinite(r_loss))
    print("KERNEL_OK")
</pallas_src>

<mosaic_0001>
module attributes {stable_mosaic.version = 11 : i64} {
  func.func @ae_fused_kernel(%arg0: i32, %arg1: memref<256x128xf32, #tpu.memory_space<vmem>>, %arg2: memref<1x128xf32, #tpu.memory_space<vmem>>, %arg3: memref<1x1xf32, #tpu.memory_space<smem>>, %arg4: memref<1x1xi32, #tpu.memory_space<smem>>, %arg5: memref<128x256xbf16, #tpu.memory_space<vmem>>, %arg6: memref<1x256xf32, #tpu.memory_space<vmem>>, %arg7: memref<256x256xbf16, #tpu.memory_space<vmem>>, %arg8: memref<1x256xf32, #tpu.memory_space<vmem>>, %arg9: memref<256x128xbf16, #tpu.memory_space<vmem>>, %arg10: memref<1x128xf32, #tpu.memory_space<vmem>>, %arg11: memref<128x256xbf16, #tpu.memory_space<vmem>>, %arg12: memref<1x256xf32, #tpu.memory_space<vmem>>, %arg13: memref<256x256xbf16, #tpu.memory_space<vmem>>, %arg14: memref<1x256xf32, #tpu.memory_space<vmem>>, %arg15: memref<256x128xbf16, #tpu.memory_space<vmem>>, %arg16: memref<1x128xf32, #tpu.memory_space<vmem>>, %arg17: memref<256x128xbf16, #tpu.memory_space<vmem>>, %arg18: memref<256x128xbf16, #tpu.memory_space<vmem>>, %arg19: memref<1x1x256xf32, #tpu.memory_space<vmem>>, %arg20: memref<1x1x256xf32, #tpu.memory_space<vmem>>) attributes {dimension_semantics = [#tpu.dimension_semantics<parallel>], iteration_bounds = array<i64: 2>, scalar_prefetch = 0 : i64, scratch_operands = 0 : i64, tpu.core_type = #tpu.core_type<tc>, window_params = [{transform_indices = @transform_0, window_bounds = array<i64: 256, 128>}, {pipeline_mode = #tpu.pipeline_mode<synchronous>, transform_indices = @transform_1, window_bounds = array<i64: 1, 128>}, {transform_indices = @transform_2, window_bounds = array<i64: 1, 1>}, {transform_indices = @transform_3, window_bounds = array<i64: 1, 1>}, {pipeline_mode = #tpu.pipeline_mode<synchronous>, transform_indices = @transform_4, window_bounds = array<i64: 128, 256>}, {pipeline_mode = #tpu.pipeline_mode<synchronous>, transform_indices = @transform_5, window_bounds = array<i64: 1, 256>}, {pipeline_mode = #tpu.pipeline_mode<synchronous>, transform_indices = @transform_6, window_bounds = array<i64: 256, 256>}, {pipeline_mode = #tpu.pipeline_mode<synchronous>, transform_indices = @transform_7, window_bounds = array<i64: 1, 256>}, {pipeline_mode = #tpu.pipeline_mode<synchronous>, transform_indices = @transform_8, window_bounds = array<i64: 256, 128>}, {pipeline_mode = #tpu.pipeline_mode<synchronous>, transform_indices = @transform_9, window_bounds = array<i64: 1, 128>}, {pipeline_mode = #tpu.pipeline_mode<synchronous>, transform_indices = @transform_10, window_bounds = array<i64: 128, 256>}, {pipeline_mode = #tpu.pipeline_mode<synchronous>, transform_indices = @transform_11, window_bounds = array<i64: 1, 256>}, {pipeline_mode = #tpu.pipeline_mode<synchronous>, transform_indices = @transform_12, window_bounds = array<i64: 256, 256>}, {pipeline_mode = #tpu.pipeline_mode<synchronous>, transform_indices = @transform_13, window_bounds = array<i64: 1, 256>}, {pipeline_mode = #tpu.pipeline_mode<synchronous>, transform_indices = @transform_14, window_bounds = array<i64: 256, 128>}, {pipeline_mode = #tpu.pipeline_mode<synchronous>, transform_indices = @transform_15, window_bounds = array<i64: 1, 128>}, {transform_indices = @transform_16, window_bounds = array<i64: 256, 128>}, {transform_indices = @transform_17, window_bounds = array<i64: 256, 128>}, {transform_indices = @transform_18, window_bounds = array<i64: 1, 1, 256>}, {transform_indices = @transform_19, window_bounds = array<i64: 1, 1, 256>}]} {
    %c0 = arith.constant 0 : index
    %c0_0 = arith.constant 0 : index
    %0 = vector.load %arg1[%c0, %c0_0] : memref<256x128xf32, #tpu.memory_space<vmem>>, vector<256x128xf32>
    %1 = arith.truncf %0 : vector<256x128xf32> to vector<256x128xbf16>
    %c0_1 = arith.constant 0 : index
    %c0_2 = arith.constant 0 : index
    %2 = vector.load %arg5[%c0_1, %c0_2] : memref<128x256xbf16, #tpu.memory_space<vmem>>, vector<128x256xbf16>
    %cst = arith.constant dense<0.000000e+00> : vector<256x256xf32>
    %3 = tpu.matmul %1, %2, %cst {dimension_numbers = #tpu.dot_dimension_numbers<[1], [0], [0], [1], [0, 0, 1, 1], [], []>} : vector<256x128xbf16>, vector<128x256xbf16>, vector<256x256xf32> -> vector<256x256xf32>
    %c0_3 = arith.constant 0 : index
    %c0_4 = arith.constant 0 : index
    %4 = vector.load %arg6[%c0_3, %c0_4] : memref<1x256xf32, #tpu.memory_space<vmem>>, vector<1x256xf32>
    %5 = vector.broadcast %4 : vector<1x256xf32> to vector<256x256xf32>
    %6 = arith.addf %3, %5 : vector<256x256xf32>
    %cst_5 = arith.constant 0.000000e+00 : f32
    %7 = vector.broadcast %cst_5 : f32 to vector<256x256xf32>
    %8 = arith.cmpf ogt, %6, %7 : vector<256x256xf32>
    %cst_6 = arith.constant 1.000000e-01 : f32
    %9 = vector.broadcast %cst_6 : f32 to vector<256x256xf32>
    %10 = arith.mulf %9, %6 : vector<256x256xf32>
    %11 = arith.select %8, %6, %10 : vector<256x256xi1>, vector<256x256xf32>
    %12 = arith.truncf %11 : vector<256x256xf32> to vector<256x256xbf16>
    %c0_7 = arith.constant 0 : index
    %c0_8 = arith.constant 0 : index
    %13 = vector.load %arg7[%c0_7, %c0_8] : memref<256x256xbf16, #tpu.memory_space<vmem>>, vector<256x256xbf16>
    %cst_9 = arith.constant dense<0.000000e+00> : vector<256x256xf32>
    %14 = tpu.matmul %12, %13, %cst_9 {dimension_numbers = #tpu.dot_dimension_numbers<[1], [0], [0], [1], [0, 0, 1, 1], [], []>} : vector<256x256xbf16>, vector<256x256xbf16>, vector<256x256xf32> -> vector<256x256xf32>
    %c0_10 = arith.constant 0 : index
    %c0_11 = arith.constant 0 : index
    %15 = vector.load %arg8[%c0_10, %c0_11] : memref<1x256xf32, #tpu.memory_space<vmem>>, vector<1x256xf32>
    %16 = vector.broadcast %15 : vector<1x256xf32> to vector<256x256xf32>
    %17 = arith.addf %14, %16 : vector<256x256xf32>
    %cst_12 = arith.constant 0.000000e+00 : f32
    %18 = vector.broadcast %cst_12 : f32 to vector<256x256xf32>
    %19 = arith.cmpf ogt, %17, %18 : vector<256x256xf32>
    %cst_13 = arith.constant 1.000000e-01 : f32
    %20 = vector.broadcast %cst_13 : f32 to vector<256x256xf32>
    %21 = arith.mulf %20, %17 : vector<256x256xf32>
    %22 = arith.select %19, %17, %21 : vector<256x256xi1>, vector<256x256xf32>
    %23 = arith.truncf %22 : vector<256x256xf32> to vector<256x256xbf16>
    %c0_14 = arith.constant 0 : index
    %c0_15 = arith.constant 0 : index
    %24 = vector.load %arg9[%c0_14, %c0_15] : memref<256x128xbf16, #tpu.memory_space<vmem>>, vector<256x128xbf16>
    %cst_16 = arith.constant dense<0.000000e+00> : vector<256x128xf32>
    %25 = tpu.matmul %23, %24, %cst_16 {dimension_numbers = #tpu.dot_dimension_numbers<[1], [0], [0], [1], [0, 0, 1, 1], [], []>} : vector<256x256xbf16>, vector<256x128xbf16>, vector<256x128xf32> -> vector<256x128xf32>
    %c0_17 = arith.constant 0 : index
    %c0_18 = arith.constant 0 : index
    %26 = vector.load %arg10[%c0_17, %c0_18] : memref<1x128xf32, #tpu.memory_space<vmem>>, vector<1x128xf32>
    %27 = vector.broadcast %26 : vector<1x128xf32> to vector<256x128xf32>
    %28 = arith.addf %25, %27 : vector<256x128xf32>
    %29 = arith.truncf %28 : vector<256x128xf32> to vector<256x128xbf16>
    %c0_19 = arith.constant 0 : index
    %c0_20 = arith.constant 0 : index
    %30 = vector.load %arg17[%c0_19, %c0_20] : memref<256x128xbf16, #tpu.memory_space<vmem>>, vector<256x128xbf16>
    tpu.vector_store %arg17[%c0_19, %c0_20], %29 {strides = array<i32>} : memref<256x128xbf16, #tpu.memory_space<vmem>>, vector<256x128xbf16>,
    %31 = arith.truncf %28 : vector<256x128xf32> to vector<256x128xbf16>
    %c0_21 = arith.constant 0 : index
    %c0_22 = arith.constant 0 : index
    %32 = vector.load %arg11[%c0_21, %c0_22] : memref<128x256xbf16, #tpu.memory_space<vmem>>, vector<128x256xbf16>
    %cst_23 = arith.constant dense<0.000000e+00> : vector<256x256xf32>
    %33 = tpu.matmul %31, %32, %cst_23 {dimension_numbers = #tpu.dot_dimension_numbers<[1], [0], [0], [1], [0, 0, 1, 1], [], []>} : vector<256x128xbf16>, vector<128x256xbf16>, vector<256x256xf32> -> vector<256x256xf32>
    %c0_24 = arith.constant 0 : index
    %c0_25 = arith.constant 0 : index
    %34 = vector.load %arg12[%c0_24, %c0_25] : memref<1x256xf32, #tpu.memory_space<vmem>>, vector<1x256xf32>
    %35 = vector.broadcast %34 : vector<1x256xf32> to vector<256x256xf32>
    %36 = arith.addf %33, %35 : vector<256x256xf32>
    %cst_26 = arith.constant 0.000000e+00 : f32
    %37 = vector.broadcast %cst_26 : f32 to vector<256x256xf32>
    %38 = arith.cmpf ogt, %36, %37 : vector<256x256xf32>
    %cst_27 = arith.constant 1.000000e-01 : f32
    %39 = vector.broadcast %cst_27 : f32 to vector<256x256xf32>
    %40 = arith.mulf %39, %36 : vector<256x256xf32>
    %41 = arith.select %38, %36, %40 : vector<256x256xi1>, vector<256x256xf32>
    %42 = arith.truncf %41 : vector<256x256xf32> to vector<256x256xbf16>
    %c0_28 = arith.constant 0 : index
    %c0_29 = arith.constant 0 : index
    %43 = vector.load %arg13[%c0_28, %c0_29] : memref<256x256xbf16, #tpu.memory_space<vmem>>, vector<256x256xbf16>
    %cst_30 = arith.constant dense<0.000000e+00> : vector<256x256xf32>
    %44 = tpu.matmul %42, %43, %cst_30 {dimension_numbers = #tpu.dot_dimension_numbers<[1], [0], [0], [1], [0, 0, 1, 1], [], []>} : vector<256x256xbf16>, vector<256x256xbf16>, vector<256x256xf32> -> vector<256x256xf32>
    %c0_31 = arith.constant 0 : index
    %c0_32 = arith.constant 0 : index
    %45 = vector.load %arg14[%c0_31, %c0_32] : memref<1x256xf32, #tpu.memory_space<vmem>>, vector<1x256xf32>
    %46 = vector.broadcast %45 : vector<1x256xf32> to vector<256x256xf32>
    %47 = arith.addf %44, %46 : vector<256x256xf32>
    %cst_33 = arith.constant 0.000000e+00 : f32
    %48 = vector.broadcast %cst_33 : f32 to vector<256x256xf32>
    %49 = arith.cmpf ogt, %47, %48 : vector<256x256xf32>
    %cst_34 = arith.constant 1.000000e-01 : f32
    %50 = vector.broadcast %cst_34 : f32 to vector<256x256xf32>
    %51 = arith.mulf %50, %47 : vector<256x256xf32>
    %52 = arith.select %49, %47, %51 : vector<256x256xi1>, vector<256x256xf32>
    %53 = arith.truncf %52 : vector<256x256xf32> to vector<256x256xbf16>
    %c0_35 = arith.constant 0 : index
    %c0_36 = arith.constant 0 : index
    %54 = vector.load %arg15[%c0_35, %c0_36] : memref<256x128xbf16, #tpu.memory_space<vmem>>, vector<256x128xbf16>
    %cst_37 = arith.constant dense<0.000000e+00> : vector<256x128xf32>
    %55 = tpu.matmul %53, %54, %cst_37 {dimension_numbers = #tpu.dot_dimension_numbers<[1], [0], [0], [1], [0, 0, 1, 1], [], []>} : vector<256x256xbf16>, vector<256x128xbf16>, vector<256x128xf32> -> vector<256x128xf32>
    %c0_38 = arith.constant 0 : index
    %c0_39 = arith.constant 0 : index
    %56 = vector.load %arg16[%c0_38, %c0_39] : memref<1x128xf32, #tpu.memory_space<vmem>>, vector<1x128xf32>
    %57 = vector.broadcast %56 : vector<1x128xf32> to vector<256x128xf32>
    %58 = arith.addf %55, %57 : vector<256x128xf32>
    %59 = math.tanh %58 : vector<256x128xf32>
    %60 = arith.truncf %59 : vector<256x128xf32> to vector<256x128xbf16>
    %c0_40 = arith.constant 0 : index
    %c0_41 = arith.constant 0 : index
    %61 = vector.load %arg18[%c0_40, %c0_41] : memref<256x128xbf16, #tpu.memory_space<vmem>>, vector<256x128xbf16>
    tpu.vector_store %arg18[%c0_40, %c0_41], %60 {strides = array<i32>} : memref<256x128xbf16, #tpu.memory_space<vmem>>, vector<256x128xbf16>,
    %c0_42 = arith.constant 0 : index
    %c0_43 = arith.constant 0 : index
    %62 = vector.load %arg2[%c0_42, %c0_43] : memref<1x128xf32, #tpu.memory_space<vmem>>, vector<1x128xf32>
    %cst_44 = arith.constant 1.000000e+00 : f32
    %63 = vector.broadcast %cst_44 : f32 to vector<1x128xf32>
    %cst_45 = arith.constant dense<0.000000e+00> : vector<1x256xf32>
    %64 = tpu.matmul %62, %59, %cst_45 {dimension_numbers = #tpu.dot_dimension_numbers<[1], [1], [0], [0], [0, 0, 1, 0], [], []>} : vector<1x128xf32>, vector<256x128xf32>, vector<1x256xf32> -> vector<1x256xf32>
    %65 = arith.subf %59, %0 : vector<256x128xf32>
    %66 = arith.mulf %59, %59 : vector<256x128xf32>
    %67 = arith.mulf %65, %65 : vector<256x128xf32>
    %68 = tpu.concatenate %66, %67 in 0 : vector<256x128xf32>, vector<256x128xf32> -> vector<512x128xf32>
    %cst_46 = arith.constant dense<0.000000e+00> : vector<1x512xf32>
    %69 = tpu.matmul %63, %68, %cst_46 {dimension_numbers = #tpu.dot_dimension_numbers<[1], [1], [0], [0], [0, 0, 1, 0], [], []>} : vector<1x128xf32>, vector<512x128xf32>, vector<1x512xf32> -> vector<1x512xf32>
    %70 = vector.extract_strided_slice %69 {offsets = [0, 0], sizes = [1, 256], strides = [1, 1]} : vector<1x512xf32> to vector<1x256xf32>
    %71 = vector.extract_strided_slice %69 {offsets = [0, 256], sizes = [1, 256], strides = [1, 1]} : vector<1x512xf32> to vector<1x256xf32>
    %c0_47 = arith.constant 0 : index
    %c0_48 = arith.constant 0 : index
    %72 = memref.load %arg3[%c0_47, %c0_48] : memref<1x1xf32, #tpu.memory_space<smem>>
    %73 = math.sqrt %70 : vector<1x256xf32>
    %74 = vector.broadcast %72 : f32 to vector<1x256xf32>
    %75 = arith.mulf %73, %74 : vector<1x256xf32>
    %cst_49 = arith.constant 9.99999974E-6 : f32
    %76 = vector.broadcast %cst_49 : f32 to vector<1x256xf32>
    %77 = arith.addf %75, %76 : vector<1x256xf32>
    %78 = arith.divf %64, %77 : vector<1x256xf32>
    %c256_i32 = arith.constant 256 : i32
    %79 = arith.muli %arg0, %c256_i32 : i32
    %80 = tpu.iota {dimensions = array<i32: 1>} : vector<1x256xi32>
    %81 = vector.broadcast %79 : i32 to vector<1x256xi32>
    %82 = arith.addi %81, %80 : vector<1x256xi32>
    %c0_50 = arith.constant 0 : index
    %c0_51 = arith.constant 0 : index
    %83 = memref.load %arg4[%c0_50, %c0_51] : memref<1x1xi32, #tpu.memory_space<smem>>
    %84 = vector.broadcast %83 : i32 to vector<1x256xi32>
    %85 = arith.cmpi slt, %82, %84 : vector<1x256xi32>
    %cst_52 = arith.constant -3.000000e+38 : f32
    %86 = vector.broadcast %cst_52 : f32 to vector<1x256xf32>
    %87 = arith.select %85, %78, %86 : vector<1x256xi1>, vector<1x256xf32>
    %88 = vector.shape_cast %87 : vector<1x256xf32> to vector<1x1x256xf32>
    %c0_53 = arith.constant 0 : index
    %c0_54 = arith.constant 0 : index
    %c0_55 = arith.constant 0 : index
    %89 = vector.load %arg19[%c0_53, %c0_54, %c0_55] : memref<1x1x256xf32, #tpu.memory_space<vmem>>, vector<1x1x256xf32>
    tpu.vector_store %arg19[%c0_53, %c0_54, %c0_55], %88 {strides = array<i32>} : memref<1x1x256xf32, #tpu.memory_space<vmem>>, vector<1x1x256xf32>,
    %cst_56 = arith.constant 0.000000e+00 : f32
    %90 = vector.broadcast %cst_56 : f32 to vector<1x256xf32>
    %91 = arith.select %85, %71, %90 : vector<1x256xi1>, vector<1x256xf32>
    %92 = vector.shape_cast %91 : vector<1x256xf32> to vector<1x1x256xf32>
    %c0_57 = arith.constant 0 : index
    %c0_58 = arith.constant 0 : index
    %c0_59 = arith.constant 0 : index
    %93 = vector.load %arg20[%c0_57, %c0_58, %c0_59] : memref<1x1x256xf32, #tpu.memory_space<vmem>>, vector<1x1x256xf32>
    tpu.vector_store %arg20[%c0_57, %c0_58, %c0_59], %92 {strides = array<i32>} : memref<1x1x256xf32, #tpu.memory_space<vmem>>, vector<1x1x256xf32>,
    return
  }
  func.func @transform_0(%arg0: i32) -> (i32, i32) {
    %c0_i32 = arith.constant 0 : i32
    %c0_i32_0 = arith.constant 0 : i32
    return %arg0, %c0_i32 : i32, i32
  }
  func.func @transform_1(%arg0: i32) -> (i32, i32) {
    %c0_i32 = arith.constant 0 : i32
    %c0_i32_0 = arith.constant 0 : i32
    %c0_i32_1 = arith.constant 0 : i32
    return %c0_i32, %c0_i32_0 : i32, i32
  }
  func.func @transform_2(%arg0: i32) -> (i32, i32) {
    %c0_i32 = arith.constant 0 : i32
    %c0_i32_0 = arith.constant 0 : i32
    %c0_i32_1 = arith.constant 0 : i32
    return %c0_i32, %c0_i32_0 : i32, i32
  }
  func.func @transform_3(%arg0: i32) -> (i32, i32) {
    %c0_i32 = arith.constant 0 : i32
    %c0_i32_0 = arith.constant 0 : i32
    %c0_i32_1 = arith.constant 0 : i32
    return %c0_i32, %c0_i32_0 : i32, i32
  }
  func.func @transform_4(%arg0: i32) -> (i32, i32) {
    %c0_i32 = arith.constant 0 : i32
    %c0_i32_0 = arith.constant 0 : i32
    %c0_i32_1 = arith.constant 0 : i32
    return %c0_i32, %c0_i32_0 : i32, i32
  }
  func.func @transform_5(%arg0: i32) -> (i32, i32) {
    %c0_i32 = arith.constant 0 : i32
    %c0_i32_0 = arith.constant 0 : i32
    %c0_i32_1 = arith.constant 0 : i32
    return %c0_i32, %c0_i32_0 : i32, i32
  }
  func.func @transform_6(%arg0: i32) -> (i32, i32) {
    %c0_i32 = arith.constant 0 : i32
    %c0_i32_0 = arith.constant 0 : i32
    %c0_i32_1 = arith.constant 0 : i32
    return %c0_i32, %c0_i32_0 : i32, i32
  }
  func.func @transform_7(%arg0: i32) -> (i32, i32) {
    %c0_i32 = arith.constant 0 : i32
    %c0_i32_0 = arith.constant 0 : i32
    %c0_i32_1 = arith.constant 0 : i32
    return %c0_i32, %c0_i32_0 : i32, i32
  }
  func.func @transform_8(%arg0: i32) -> (i32, i32) {
    %c0_i32 = arith.constant 0 : i32
    %c0_i32_0 = arith.constant 0 : i32
    %c0_i32_1 = arith.constant 0 : i32
    return %c0_i32, %c0_i32_0 : i32, i32
  }
  func.func @transform_9(%arg0: i32) -> (i32, i32) {
    %c0_i32 = arith.constant 0 : i32
    %c0_i32_0 = arith.constant 0 : i32
    %c0_i32_1 = arith.constant 0 : i32
    return %c0_i32, %c0_i32_0 : i32, i32
  }
  func.func @transform_10(%arg0: i32) -> (i32, i32) {
    %c0_i32 = arith.constant 0 : i32
    %c0_i32_0 = arith.constant 0 : i32
    %c0_i32_1 = arith.constant 0 : i32
    return %c0_i32, %c0_i32_0 : i32, i32
  }
  func.func @transform_11(%arg0: i32) -> (i32, i32) {
    %c0_i32 = arith.constant 0 : i32
    %c0_i32_0 = arith.constant 0 : i32
    %c0_i32_1 = arith.constant 0 : i32
    return %c0_i32, %c0_i32_0 : i32, i32
  }
  func.func @transform_12(%arg0: i32) -> (i32, i32) {
    %c0_i32 = arith.constant 0 : i32
    %c0_i32_0 = arith.constant 0 : i32
    %c0_i32_1 = arith.constant 0 : i32
    return %c0_i32, %c0_i32_0 : i32, i32
  }
  func.func @transform_13(%arg0: i32) -> (i32, i32) {
    %c0_i32 = arith.constant 0 : i32
    %c0_i32_0 = arith.constant 0 : i32
    %c0_i32_1 = arith.constant 0 : i32
    return %c0_i32, %c0_i32_0 : i32, i32
  }
  func.func @transform_14(%arg0: i32) -> (i32, i32) {
    %c0_i32 = arith.constant 0 : i32
    %c0_i32_0 = arith.constant 0 : i32
    %c0_i32_1 = arith.constant 0 : i32
    return %c0_i32, %c0_i32_0 : i32, i32
  }
  func.func @transform_15(%arg0: i32) -> (i32, i32) {
    %c0_i32 = arith.constant 0 : i32
    %c0_i32_0 = arith.constant 0 : i32
    %c0_i32_1 = arith.constant 0 : i32
    return %c0_i32, %c0_i32_0 : i32, i32
  }
  func.func @transform_16(%arg0: i32) -> (i32, i32) {
    %c0_i32 = arith.constant 0 : i32
    %c0_i32_0 = arith.constant 0 : i32
    return %arg0, %c0_i32 : i32, i32
  }
  func.func @transform_17(%arg0: i32) -> (i32, i32) {
    %c0_i32 = arith.constant 0 : i32
    %c0_i32_0 = arith.constant 0 : i32
    return %arg0, %c0_i32 : i32, i32
  }
  func.func @transform_18(%arg0: i32) -> (i32, i32, i32) {
    %c0_i32 = arith.constant 0 : i32
    %c0_i32_0 = arith.constant 0 : i32
    %c0_i32_1 = arith.constant 0 : i32
    return %arg0, %c0_i32, %c0_i32_0 : i32, i32, i32
  }
  func.func @transform_19(%arg0: i32) -> (i32, i32, i32) {
    %c0_i32 = arith.constant 0 : i32
    %c0_i32_0 = arith.constant 0 : i32
    %c0_i32_1 = arith.constant 0 : i32
    return %arg0, %c0_i32, %c0_i32_0 : i32, i32, i32
  }
}

</mosaic_0001>

<bundles_post_ra>
// kernel: ae_forward.1
= control target key start
LH: loop header
LB: loop body
LE: loop exit
PB: predicated region body
PF: predicated region fallthrough
CT: control target
= control target key end

     0   :  { %s5764_s22 = smov 0   ;;  %s6948_s0 = inlined_call_operand.vmem [shape: f32[512,128], index: 0, kind: input, shape index: {}]   ;;  %s6949_s1 = inlined_call_operand.vmem [shape: f32[1,128], index: 1, kind: input, shape index: {}]   ;;  %s6950_s2 = inlined_call_operand.<no memory space> [shape: f32[1,1], index: 2, kind: input, shape index: {}]   ;;  %s6951_s3 = inlined_call_operand.<no memory space> [shape: s32[1,1], index: 3, kind: input, shape index: {}]   ;;  %s6952_s4 = inlined_call_operand.vmem [shape: bf16[128,256], index: 4, kind: input, shape index: {}]   ;;  %s6953_s5 = inlined_call_operand.vmem [shape: f32[1,256], index: 5, kind: input, shape index: {}]   ;;  %s6954_s6 = inlined_call_operand.vmem [shape: bf16[256,256], index: 6, kind: input, shape index: {}]   ;;  %s6955_s7 = inlined_call_operand.vmem [shape: f32[1,256], index: 7, kind: input, shape index: {}]   ;;  %s6956_s8 = inlined_call_operand.vmem [shape: bf16[256,128], index: 8, kind: input, shape index: {}]   ;;  %s6957_s9 = inlined_call_operand.vmem [shape: f32[1,128], index: 9, kind: input, shape index: {}]   ;;  %s6958_s10 = inlined_call_operand.vmem [shape: bf16[128,256], index: 10, kind: input, shape index: {}]   ;;  %s6959_s11 = inlined_call_operand.vmem [shape: f32[1,256], index: 11, kind: input, shape index: {}]   ;;  %s6960_s12 = inlined_call_operand.vmem [shape: bf16[256,256], index: 12, kind: input, shape index: {}]   ;;  %s6961_s13 = inlined_call_operand.vmem [shape: f32[1,256], index: 13, kind: input, shape index: {}]   ;;  %s6962_s14 = inlined_call_operand.vmem [shape: bf16[256,128], index: 14, kind: input, shape index: {}]   ;;  %s6963_s15 = inlined_call_operand.vmem [shape: f32[1,128], index: 15, kind: input, shape index: {}]   ;;  %s6964_s16 = inlined_call_operand.vmem [shape: bf16[512,128], index: 16, kind: output, shape index: {0}]   ;;  %s6965_s17 = inlined_call_operand.vmem [shape: bf16[512,128], index: 17, kind: output, shape index: {1}]   ;;  %s6966_s18 = inlined_call_operand.vmem [shape: f32[2,1,256], index: 18, kind: output, shape index: {2}]   ;;  %s6967_s19 = inlined_call_operand.vmem [shape: f32[2,1,256], index: 19, kind: output, shape index: {3}]  }
   0x1   :  { %6972 = sst [smem:[#allocation4_spill]] %s6948_s0 }
   0x2   :  { %6973 = sst [smem:[#allocation5_spill]] %s6949_s1 }
   0x3   :  { %6974 = sst [smem:[#allocation6_spill]] %s6950_s2 }
   0x4   :  { %6975 = sst [smem:[#allocation7_spill]] %s6951_s3  ;;  %s6977_s20 = sld [smem:[#allocation6_spill]] }
   0x5   :  { %6976 = sst [smem:[#allocation8_spill]] %s6961_s13  ;;  %s6978_s13 = sld [smem:[#allocation7_spill]] }
   0xa   :  { %25 = sst [smem:[#allocation2]] %s6977_s20 }
   0xb   :  { %26 = sst [smem:[#allocation3]] %s6978_s13 }
   0xc LB: > { %s5770_s2 = sadd.s32 4294967295, %s5653_s22   ;;  %p4474_p0 = scmp.ge.s32.totalorder %s5653_s22, 1  ;;  %s5653_s22 = sphi %s5764_s22, %s32_s22  }
   0xd   : > { %p547_p1 = scmp.lt.s32.totalorder %s5653_s22, 3 }
   0xf   : > { %p548_p2 = pnand %p4474_p0, %p547_p1 }
  0x10   : > { %v5367_v0 = vld [vmem:[%s6952_s4 + $0x4] ss:$8 sps:$4 sm:$0xff] (!%p548_p2)   ;;  %v5369_v1 = vld [vmem:[%s6952_s4] ss:$8 sps:$4 sm:$0xff] (!%p548_p2)   ;;  %v5655_v2 = vmov (!%p548_p2), 0   ;;  %s4475_s23 = sshll.u32 (!%p548_p2), %s5770_s2, 5 }
  0x11   : > { %551 = sbr.rel (%p548_p2) target bundleno = 1807 (0x70f), region = 84  ;;  %831 = vmatprep.mubr.bf16.mxu0 (!%p548_p2), %v5655_v2  ;;  %799 = vmatprep.subr.bf16.mxu0 (!%p548_p2), %v5367_v0  ;;  %v5370_v3 = vld [vmem:[%s6952_s4 + $0x14] ss:$8 sps:$4 sm:$0xff] (!%p548_p2)   ;;  %v5372_v4 = vld [vmem:[%s6952_s4 + $0x10] ss:$8 sps:$4 sm:$0xff] (!%p548_p2)   ;;  %p617_p3 = scmp.lt.s32.totalorder (!%p548_p2), %s4475_s23, 63 }
  0x12   : > { %800 = vmatpush1.bf16.msra.mxu0 (!%p548_p2), %v5369_v1  ;;  %v5373_v5 = vld [vmem:[%s6952_s4 + $0x24] ss:$8 sps:$4 sm:$0xff] (!%p548_p2)   ;;  %v5375_v6 = vld [vmem:[%s6952_s4 + $0x20] ss:$8 sps:$4 sm:$0xff] (!%p548_p2)   ;;  %v5376_v7 = vld [vmem:[%s6952_s4 + $0x34] ss:$8 sps:$4 sm:$0xff] (!%p548_p2)  }
  0x13   : > { %801 = vmatprep.subr.bf16.mxu0 (!%p548_p2), %v5370_v3  ;;  %v5378_v8 = vld [vmem:[%s6952_s4 + $0x30] ss:$8 sps:$4 sm:$0xff] (!%p548_p2)   ;;  %v5379_v9 = vld [vmem:[%s6952_s4 + $0x44] ss:$8 sps:$4 sm:$0xff] (!%p548_p2)   ;;  %v5381_v10 = vld [vmem:[%s6952_s4 + $0x40] ss:$8 sps:$4 sm:$0xff] (!%p548_p2)  }
  0x14   : > { %v5382_v11 = vld [vmem:[%s6952_s4 + $0x54] ss:$8 sps:$4 sm:$0xff] (!%p548_p2)   ;;  %v5384_v12 = vld [vmem:[%s6952_s4 + $0x50] ss:$8 sps:$4 sm:$0xff] (!%p548_p2)   ;;  %v5385_v13 = vld [vmem:[%s6952_s4 + $0x64] ss:$8 sps:$4 sm:$0xff] (!%p548_p2)  }
  0x15   : > { %v5387_v14 = vld [vmem:[%s6952_s4 + $0x60] ss:$8 sps:$4 sm:$0xff] (!%p548_p2)   ;;  %v5388_v15 = vld [vmem:[%s6952_s4 + $0x74] ss:$8 sps:$4 sm:$0xff] (!%p548_p2)   ;;  %s6979_s28 = sld [smem:[#allocation4_spill]] (!%p548_p2)  ;;  %s6980_s30 = sld [smem:[#allocation8_spill]] (!%p548_p2) }
  0x16   : > { %802 = vmatpush1.bf16.msra.mxu0 (!%p548_p2), %v5372_v4  ;;  %v5391_v16 = vld [vmem:[%s6954_s6 + $0x4] ss:$8 sps:$4 sm:$0xff] (!%p548_p2)   ;;  %v5393_v17 = vld [vmem:[%s6954_s6] ss:$8 sps:$4 sm:$0xff] (!%p548_p2)   ;;  %v5394_v18 = vld [vmem:[%s6954_s6 + $0x14] ss:$8 sps:$4 sm:$0xff] (!%p548_p2)  }
  0x17   : > { %803 = vmatprep.subr.bf16.mxu0 (!%p548_p2), %v5373_v5  ;;  %v5390_v19 = vld [vmem:[%s6952_s4 + $0x70] ss:$8 sps:$4 sm:$0xff] (!%p548_p2)   ;;  %1420 = vmatprep.subr.bf16.mxu1 (!%p548_p2), %v5391_v16  ;;  %v5397_v24 = vld [vmem:[%s6954_s6 + $0x24] ss:$8 sps:$4 sm:$0xff] (!%p548_p2)   ;;  %v5399_v25 = vld [vmem:[%s6954_s6 + $0x20] ss:$8 sps:$4 sm:$0xff] (!%p548_p2)  }
  0x18   : > { %s7003_s23 = smov (!%p617_p3, %s4475_s23), 63  ;;  %1421 = vmatpush1.bf16.msra.mxu1 %v5393_v17  ;;  %v5396_v22 = vld [vmem:[%s6954_s6 + $0x10] ss:$8 sps:$4 sm:$0xff]   ;;  %v5400_v26 = vld [vmem:[%s6954_s6 + $0x34] ss:$8 sps:$4 sm:$0xff]   ;;  %s6981_s3 = sld [smem:[#allocation5_spill]] }
  0x19   : > { %s4476_s13 = sshll.u32 %s7003_s23, 3  ;;  %1422 = vmatprep.subr.bf16.mxu1 %v5394_v18  ;;  %v5402_v29 = vld [vmem:[%s6954_s6 + $0x30] ss:$8 sps:$4 sm:$0xff]   ;;  %v5403_v31 = vld [vmem:[%s6954_s6 + $0x44] ss:$8 sps:$4 sm:$0xff]   ;;  %s4478_s27 = sshll.u32 %s7003_s23, 2 }
  0x1a   : > { %804 = vmatpush1.bf16.msra.mxu0 %v5375_v6  ;;  %v5405_v32 = vld [vmem:[%s6954_s6 + $0x40] ss:$8 sps:$4 sm:$0xff]   ;;  %v5406_v33 = vld [vmem:[%s6954_s6 + $0x54] ss:$8 sps:$4 sm:$0xff]   ;;  %v5408_v36 = vld [vmem:[%s6954_s6 + $0x50] ss:$8 sps:$4 sm:$0xff]   ;;  %s6255_s24 = scalar_lea.vmem %s6964_s16, %s4478_s27 }
  0x1b   : > { %805 = vmatprep.subr.bf16.mxu0 %v5376_v7  ;;  %s5827_s29 = scalar_lea.vmem %s6979_s28, %s4476_s13  ;;  %v5409_v37 = vld [vmem:[%s6954_s6 + $0x64] ss:$8 sps:$4 sm:$0xff]   ;;  %v5411_v39 = vld [vmem:[%s6954_s6 + $0x60] ss:$8 sps:$4 sm:$0xff]   ;;  %v5412_v40 = vld [vmem:[%s6954_s6 + $0x74] ss:$8 sps:$4 sm:$0xff]   ;;  %s6614_s28 = scalar_lea.vmem %s6965_s17, %s4478_s27 }
  0x1c   : > { %v643_v20 = vld [vmem:[%s5827_s29] sm:$0xff]  ;;  %v644_v21 = vld [vmem:[%s5827_s29 + $0x8] sm:$0xff]  ;;  %1423 = vmatpush1.bf16.msra.mxu1 %v5396_v22  ;;  %v645_v27 = vld [vmem:[%s5827_s29 + $0x10] sm:$0xff]  ;;  %s4237_s23 = sld [smem:[#allocation2]]  ;;  %s4677_s27 = sshll.u32 %s5770_s2, 8 }
  0x1d   : > { %v675_v23 = vpack.c.bf16 %v644_v21, %v643_v20  ;;  %1424 = vmatprep.subr.bf16.mxu1 %v5397_v24  ;;  %v646_v28 = vld [vmem:[%s5827_s29 + $0x18] sm:$0xff]  ;;  %v647_v34 = vld [vmem:[%s5827_s29 + $0x20] sm:$0xff]  ;;  %v648_v35 = vld [vmem:[%s5827_s29 + $0x28] sm:$0xff]  ;;  %p634_p4 = scmp.lt.s32.totalorder %s5770_s2, 1 }
  0x1e   : > { %806 = vmatpush1.bf16.msra.mxu0 %v5378_v8  ;;  %v676_v30 = vpack.c.bf16 %v646_v28, %v645_v27  ;;  %v677_v38 = vpack.c.bf16 %v648_v35, %v647_v34  ;;  %v649_v41 = vld [vmem:[%s5827_s29 + $0x30] sm:$0xff]  ;;  %v650_v42 = vld [vmem:[%s5827_s29 + $0x38] sm:$0xff]  ;;  %v5415_v44 = vld [vmem:[%s6954_s6 + $0x84] ss:$8 sps:$4 sm:$0xff]   ;;  %v6968_v34 = vlaneseq }
  0x1f   : > { %807 = vmatprep.subr.bf16.mxu0 %v5379_v9  ;;  %v5414_v43 = vld [vmem:[%s6954_s6 + $0x70] ss:$8 sps:$4 sm:$0xff]   ;;  %v678_v45 = vpack.c.bf16 %v650_v42, %v649_v41  ;;  %v5417_v46 = vld [vmem:[%s6954_s6 + $0x80] ss:$8 sps:$4 sm:$0xff]   ;;  %v5418_v47 = vld [vmem:[%s6954_s6 + $0x94] ss:$8 sps:$4 sm:$0xff]  }
  0x20   : > { %1425 = vmatpush1.bf16.msra.mxu1 %v5399_v25  ;;  %v651_v48 = vld [vmem:[%s5827_s29 + $0x40] sm:$0xff]  ;;  %v652_v49 = vld [vmem:[%s5827_s29 + $0x48] sm:$0xff]  ;;  %v5420_v50 = vld [vmem:[%s6954_s6 + $0x90] ss:$8 sps:$4 sm:$0xff]   ;;  %v5976_v35 = vshrl.u32 %v6968_v34, 7  ;;  %s7005_s2 = smov (!%p634_p4, %s5770_s2), 1 }
  0x21   : > { %1426 = vmatprep.subr.bf16.mxu1 %v5400_v26  ;;  %v5421_v51 = vld [vmem:[%s6954_s6 + $0xa4] ss:$8 sps:$4 sm:$0xff]   ;;  %v679_v52 = vpack.c.bf16 %v652_v49, %v651_v48  ;;  %v5423_v53 = vld [vmem:[%s6954_s6 + $0xa0] ss:$8 sps:$4 sm:$0xff]   ;;  %v5424_v54 = vld [vmem:[%s6954_s6 + $0xb4] ss:$8 sps:$4 sm:$0xff]  }
  0x22   : > { %808 = vmatpush1.bf16.msra.mxu0 %v5381_v10  ;;  %v653_v55 = vld [vmem:[%s5827_s29 + $0x50] sm:$0xff]  ;;  %v654_v56 = vld [vmem:[%s5827_s29 + $0x58] sm:$0xff]  ;;  %v5427_v58 = vld [vmem:[%s6954_s6 + $0xc4] ss:$8 sps:$4 sm:$0xff]   ;;  %s4481_s0 = sshll.u32 %s7005_s2, 1 }
  0x23   : > { %809 = vmatprep.subr.bf16.mxu0 %v5382_v11  ;;  %v5426_v57 = vld [vmem:[%s6954_s6 + $0xb0] ss:$8 sps:$4 sm:$0xff]   ;;  %v680_v59 = vpack.c.bf16 %v654_v56, %v653_v55  ;;  %v5429_v60 = vld [vmem:[%s6954_s6 + $0xc0] ss:$8 sps:$4 sm:$0xff]   ;;  %v5433_v18 = vld [vmem:[%s6954_s6 + $0xe4] ss:$8 sps:$4 sm:$0xff]   ;;  %s637_s20 = scalar_lea.vmem %s6966_s18, %s4481_s0  ;;  %s641_s1 = scalar_lea.vmem %s6967_s19, %s4481_s0 }
  0x24   : > { %1427 = vmatpush1.bf16.msra.mxu1 %v5402_v29  ;;  %v655_v61 = vld [vmem:[%s5827_s29 + $0x60] sm:$0xff]  ;;  %v656_v62 = vld [vmem:[%s5827_s29 + $0x68] sm:$0xff]  ;;  %v657_v0 = vld [vmem:[%s5827_s29 + $0x70] sm:$0xff] }
  0x25   : > { %1428 = vmatprep.subr.bf16.mxu1 %v5403_v31  ;;  %v681_v63 = vpack.c.bf16 %v656_v62, %v655_v61  ;;  %v658_v1 = vld [vmem:[%s5827_s29 + $0x78] sm:$0xff]  ;;  %v659_v4 = vld [vmem:[%s5827_s29 + $0x80] sm:$0xff]  ;;  %v660_v5 = vld [vmem:[%s5827_s29 + $0x88] sm:$0xff] }
  0x26   : > { %810 = vmatpush1.bf16.msra.mxu0 %v5384_v12  ;;  %v682_v3 = vpack.c.bf16 %v658_v1, %v657_v0  ;;  %v683_v6 = vpack.c.bf16 %v660_v5, %v659_v4  ;;  %v661_v7 = vld [vmem:[%s5827_s29 + $0x90] sm:$0xff]  ;;  %v662_v8 = vld [vmem:[%s5827_s29 + $0x98] sm:$0xff]  ;;  %v663_v10 = vld [vmem:[%s5827_s29 + $0xa0] sm:$0xff] }
  0x27   : > { %811 = vmatprep.subr.bf16.mxu0 %v5385_v13  ;;  %v684_v9 = vpack.c.bf16 %v662_v8, %v661_v7  ;;  %v664_v11 = vld [vmem:[%s5827_s29 + $0xa8] sm:$0xff]  ;;  %v665_v13 = vld [vmem:[%s5827_s29 + $0xb0] sm:$0xff]  ;;  %v667_v20 = vld [vmem:[%s5827_s29 + $0xc0] sm:$0xff] }
  0x28   : > { %1429 = vmatpush1.bf16.msra.mxu1 %v5405_v32  ;;  %v685_v12 = vpack.c.bf16 %v664_v11, %v663_v10  ;;  %v5432_v16 = vld [vmem:[%s6954_s6 + $0xd0] ss:$8 sps:$4 sm:$0xff]   ;;  %v668_v21 = vld [vmem:[%s5827_s29 + $0xc8] sm:$0xff]  ;;  %v5436_v22 = vld [vmem:[%s6954_s6 + $0xf4] ss:$8 sps:$4 sm:$0xff]  }
  0x29   : > { %1430 = vmatprep.subr.bf16.mxu1 %v5406_v33  ;;  %v687_v24 = vpack.c.bf16 %v668_v21, %v667_v20  ;;  %v669_v25 = vld [vmem:[%s5827_s29 + $0xd0] sm:$0xff]  ;;  %v670_v26 = vld [vmem:[%s5827_s29 + $0xd8] sm:$0xff]  ;;  %v671_v28 = vld [vmem:[%s5827_s29 + $0xe0] sm:$0xff] }
  0x2a   : > { %812 = vmatpush1.bf16.msra.mxu0 %v5387_v14  ;;  %v666_v14 = vld [vmem:[%s5827_s29 + $0xb8] sm:$0xff]  ;;  %v688_v27 = vpack.c.bf16 %v670_v26, %v669_v25  ;;  %v672_v29 = vld [vmem:[%s5827_s29 + $0xe8] sm:$0xff]  ;;  %v673_v31 = vld [vmem:[%s5827_s29 + $0xf0] sm:$0xff] }
  0x2b   : > { %813 = vmatprep.subr.bf16.mxu0 %v5388_v15  ;;  %v5430_v15 = vld [vmem:[%s6954_s6 + $0xd4] ss:$8 sps:$4 sm:$0xff]   ;;  %v686_v17 = vpack.c.bf16 %v666_v14, %v665_v13 }
  0x2c   : > { %1431 = vmatpush1.bf16.msra.mxu1 %v5408_v36  ;;  %v674_v32 = vld [vmem:[%s5827_s29 + $0xf8] sm:$0xff]  ;;  %v5979_v36 = vsub.s32 0, %v5976_v35 }
  0x2d   : > { %1432 = vmatprep.subr.bf16.mxu1 %v5409_v37  ;;  %v690_v33 = vpack.c.bf16 %v674_v32, %v673_v31  ;;  %v707_v37 = vld [vmem:[%s6953_s5] sm:$0x3] }
  0x2e   : > { %814 = vmatpush1.bf16.msra.mxu0 %v5390_v19  ;;  %v5435_v19 = vld [vmem:[%s6954_s6 + $0xe0] ss:$8 sps:$4 sm:$0xff]  }
  0x2f   : > { %v5448_v31 = vld [vmem:[%s6956_s8 + $0x20] sm:$0xff]  }
  0x30   : > { %1433 = vmatpush1.bf16.msra.mxu1 %v5411_v39  ;;  %v5988_v39 = vrot.slane %v707_v37, %v5979_v36 }
  0x31   : > { %832 = vmatmul.mubr.bf16.vlgmr.msra.gmra.mrb[0].mxu0 %v675_v23  ;;  %1434 = vmatprep.subr.bf16.mxu1 %v5412_v40  ;;  %v5438_v23 = vld [vmem:[%s6954_s6 + $0xf0] ss:$8 sps:$4 sm:$0xff]  }
  0x32   : > { %841 = vmatprep.mubr.bf16.mxu0 %v5655_v2 }
  0x34   : > { %1435 = vmatpush1.bf16.msra.mxu1 %v5414_v43 }
  0x35   : > { %1436 = vmatprep.subr.bf16.mxu1 %v5415_v44 }
  0x38   : > { %1437 = vmatpush1.bf16.msra.mxu1 %v5417_v46 }
  0x39   : > { %842 = vmatmul.mubr.bf16.gmra.mrb[4].mxu0 %v676_v30  ;;  %1438 = vmatprep.subr.bf16.mxu1 %v5418_v47  ;;  %v689_v30 = vpack.c.bf16 %v672_v29, %v671_v28 }
  0x3a   : > { %851 = vmatprep.mubr.bf16.mxu0 %v5655_v2 }
  0x3c   : > { %1439 = vmatpush1.bf16.msra.mxu1 %v5420_v50 }
  0x3d   : > { %1440 = vmatprep.subr.bf16.mxu1 %v5421_v51  ;;  %v5439_v51 = vld [vmem:[%s6956_s8 + $0x40] sm:$0xff]  }
  0x3e   : > { %4934 = vmatprep.subr.bf16.mxu0 %v5439_v51 }
  0x40   : > { %1441 = vmatpush1.bf16.msra.mxu1 %v5423_v53  ;;  %v5441_v53 = vld [vmem:[%s6956_s8 + $0x48] sm:$0xff]  }
  0x41   : > { %852 = vmatmul.mubr.bf16.gmra.mrb[8].mxu0 %v677_v38  ;;  %1442 = vmatprep.subr.bf16.mxu1 %v5424_v54  ;;  %v5985_v38 = vsub.s32 1, %v5976_v35 }
  0x42   : > { %861 = vmatprep.mubr.bf16.mxu0 %v5655_v2 }
  0x43   : > { %v5991_v40 = vrot.slane %v707_v37, %v5985_v38 }
  0x44   : > { %1443 = vmatpush1.bf16.msra.mxu1 %v5426_v57 }
  0x45   : > { %1444 = vmatprep.subr.bf16.mxu1 %v5427_v58  ;;  %v5442_v58 = vld [vmem:[%s6956_s8 + $0x8] sm:$0xff]  }
  0x48   : > { %1445 = vmatpush1.bf16.msra.mxu1 %v5429_v60 }
  0x49   : > { %862 = vmatmul.mubr.bf16.gmra.mrb[12].mxu0 %v678_v45  ;;  %1446 = vmatprep.subr.bf16.mxu1 %v5430_v15 }
  0x4a   : > { %871 = vmatprep.mubr.bf16.mxu0 %v5655_v2 }
  0x4c   : > { %1447 = vmatpush1.bf16.msra.mxu1 %v5432_v16 }
  0x4d   : > { %1448 = vmatprep.subr.bf16.mxu1 %v5433_v18 }
  0x50   : > { %1449 = vmatpush1.bf16.msra.mxu1 %v5435_v19 }
  0x51   : > { %872 = vmatmul.mubr.bf16.gmra.mrb[16].mxu0 %v679_v52  ;;  %1450 = vmatprep.subr.bf16.mxu1 %v5436_v22  ;;  %v5440_v52 = vld [vmem:[%s6956_s8] sm:$0xff]  }
  0x52   : > { %881 = vmatprep.mubr.bf16.mxu0 %v5655_v2  ;;  %4935 = vmatpush3.bf16.msra.mxu0 %v5440_v52  ;;  %v5447_v22 = vld [vmem:[%s6956_s8 + $0x60] sm:$0xff]  }
  0x53   : > { %4936 = vmatprep.subr.bf16.mxu0 %v5441_v53 }
  0x54   : > { %1451 = vmatpush1.bf16.msra.mxu1 %v5438_v23 }
  0x56   : > { %4937 = vmatpush3.bf16.msra.mxu0 %v5442_v58 }
  0x59   : > { %882 = vmatmul.mubr.bf16.gmra.mrb[20].mxu0 %v680_v59 }
  0x5a   : > { %891 = vmatprep.mubr.bf16.mxu0 %v5655_v2 }
  0x61   : > { %892 = vmatmul.mubr.bf16.gmra.mrb[24].mxu0 %v681_v63  ;;  %v5443_v63 = vld [vmem:[%s6956_s8 + $0x50] sm:$0xff]  }
  0x62   : > { %901 = vmatprep.mubr.bf16.mxu0 %v5655_v2  ;;  %4938 = vmatprep.subr.bf16.mxu0 %v5443_v63 }
  0x69   : > { %902 = vmatmul.mubr.bf16.gmra.mrb[28].mxu0 %v682_v3 }
  0x6a   : > { %911 = vmatprep.mubr.bf16.mxu0 %v5655_v2 }
  0x71   : > { %912 = vmatmul.mubr.bf16.gmra.mrb[32].mxu0 %v683_v6 }
  0x72   : > { %921 = vmatprep.mubr.bf16.mxu0 %v5655_v2 }
  0x79   : > { %922 = vmatmul.mubr.bf16.gmra.mrb[36].mxu0 %v684_v9  ;;  %v5444_v9 = vld [vmem:[%s6956_s8 + $0x10] sm:$0xff]  }
  0x7a   : > { %931 = vmatprep.mubr.bf16.mxu0 %v5655_v2  ;;  %4939 = vmatpush3.bf16.msra.mxu0 %v5444_v9 }
  0x81   : > { %932 = vmatmul.mubr.bf16.gmra.mrb[40].mxu0 %v685_v12  ;;  %v5445_v12 = vld [vmem:[%s6956_s8 + $0x58] sm:$0xff]  }
  0x82   : > { %941 = vmatprep.mubr.bf16.mxu0 %v5655_v2  ;;  %4940 = vmatprep.subr.bf16.mxu0 %v5445_v12 }
  0x89   : > { %942 = vmatmul.mubr.bf16.gmra.mrb[44].mxu0 %v686_v17  ;;  %v5446_v17 = vld [vmem:[%s6956_s8 + $0x18] sm:$0xff]  }
  0x8a   : > { %951 = vmatprep.mubr.bf16.mxu0 %v5655_v2  ;;  %4941 = vmatpush3.bf16.msra.mxu0 %v5446_v17 }
  0x8b   : > { %4942 = vmatprep.subr.bf16.mxu0 %v5447_v22 }
  0x8e   : > { %4943 = vmatpush3.bf16.msra.mxu0 %v5448_v31 }
  0x91   : > { %952 = vmatmul.mubr.bf16.gmra.mrb[48].mxu0 %v687_v24 }
  0x92   : > { %961 = vmatprep.mubr.bf16.mxu0 %v5655_v2 }
  0x99   : > { %962 = vmatmul.mubr.bf16.gmra.mrb[52].mxu0 %v688_v27 }
  0x9a   : > { %971 = vmatprep.mubr.bf16.mxu0 %v5655_v2 }
  0xa1   : > { %972 = vmatmul.mubr.bf16.gmra.mrb[56].mxu0 %v689_v30 }
  0xa2   : > { %981 = vmatprep.mubr.bf16.mxu0 %v5655_v2 }
  0xa9   : > { %982 = vmatmul.mubr.bf16.gmra.mrb[60].mxu0 %v690_v33 }
 0x104   : > { %v833_v41 = vpop.f32.mrb[0].mxu0 }
 0x105   : > { %v834_v42 = vadd.f32 %v833_v41, %v5988_v39  ;;  %v835_v43 = vpop.f32.mrb[1].mxu0 }
 0x106   : > { %v836_v44 = vadd.f32 %v835_v43, %v5991_v40  ;;  %v837_v45 = vpop.f32.mrb[2].mxu0 }
 0x107   : > { %v1056_v46 = vmul.f32 0.1, %v834_v42  ;;  %v838_v47 = vadd.f32 %v837_v45, %v5988_v39  ;;  %v839_v48 = vpop.f32.mrb[3].mxu0  ;;  %vm992_vm0 = vcmp.gt.f32.partialorder %v834_v42, 0.0 }
 0x108   : > { %v1057_v49 = vmul.f32 0.1, %v836_v44  ;;  %v840_v50 = vadd.f32 %v839_v48, %v5991_v40  ;;  %vm993_vm2 = vcmp.gt.f32.partialorder %v836_v44, 0.0 }
 0x109   : > { %vm994_vm1 = vcmp.gt.f32.partialorder %v838_v47, 0.0  ;;  %v1058_v54 = vmul.f32 0.1, %v838_v47  ;;  %v1120_v56 = vsel %vm992_vm0, %v834_v42, %v1056_v46 }
 0x10a   : > { %v1059_v55 = vmul.f32 0.1, %v840_v50  ;;  %vm995_vm3 = vcmp.gt.f32.partialorder %v840_v50, 0.0  ;;  %v1121_v60 = vsel %vm993_vm2, %v836_v44, %v1057_v49 }
 0x10b   : > { %v1122_v57 = vsel %vm994_vm1, %v838_v47, %v1058_v54 }
 0x10c   : > { %v843_v59 = vpop.f32.mrb[4].mxu0  ;;  %v1123_v61 = vsel %vm995_vm3, %v840_v50, %v1059_v55  ;;  %v1184_v62 = vpack.c.bf16 %v1122_v57, %v1120_v56 }
 0x10d   : > { %v844_v0 = vadd.f32 %v843_v59, %v5988_v39  ;;  %v845_v1 = vpop.f32.mrb[5].mxu0  ;;  %v1185_v3 = vpack.c.bf16 %v1123_v61, %v1121_v60 }
 0x10e   : > { %v846_v4 = vadd.f32 %v845_v1, %v5991_v40  ;;  %v847_v5 = vpop.f32.mrb[6].mxu0 }
 0x10f   : > { %v1060_v6 = vmul.f32 0.1, %v844_v0  ;;  %v848_v7 = vadd.f32 %v847_v5, %v5988_v39  ;;  %v849_v8 = vpop.f32.mrb[7].mxu0  ;;  %1452 = vmatprep.mubr.bf16.mxu1 %v1185_v3  ;;  %vm996_vm4 = vcmp.gt.f32.partialorder %v844_v0, 0.0 }
 0x110   : > { %v1061_v10 = vmul.f32 0.1, %v846_v4  ;;  %v850_v11 = vadd.f32 %v849_v8, %v5991_v40  ;;  %1453 = vmatmul.mubr.bf16.vlgmr.msra.gmra.mrb[0].mxu1 %v1184_v62  ;;  %vm997_vm5 = vcmp.gt.f32.partialorder %v846_v4, 0.0 }
 0x111   : > { %vm998_vm6 = vcmp.gt.f32.partialorder %v848_v7, 0.0  ;;  %v1062_v13 = vmul.f32 0.1, %v848_v7  ;;  %v1124_v15 = vsel %vm996_vm4, %v844_v0, %v1060_v6 }
 0x112   : > { %vm999_vm7 = vcmp.gt.f32.partialorder %v850_v11, 0.0  ;;  %v1063_v14 = vmul.f32 0.1, %v850_v11  ;;  %v1125_v19 = vsel %vm997_vm5, %v846_v4, %v1061_v10 }
 0x113   : > { %v1126_v16 = vsel %vm998_vm6, %v848_v7, %v1062_v13 }
 0x114   : > { %v853_v18 = vpop.f32.mrb[8].mxu0  ;;  %v1127_v20 = vsel %vm999_vm7, %v850_v11, %v1063_v14  ;;  %v1186_v21 = vpack.c.bf16 %v1126_v16, %v1124_v15 }
 0x115   : > { %v854_v23 = vadd.f32 %v853_v18, %v5988_v39  ;;  %v855_v24 = vpop.f32.mrb[9].mxu0  ;;  %v1187_v25 = vpack.c.bf16 %v1127_v20, %v1125_v19 }
 0x116   : > { %v856_v26 = vadd.f32 %v855_v24, %v5991_v40  ;;  %v857_v27 = vpop.f32.mrb[10].mxu0 }
 0x117   : > { %v1064_v28 = vmul.f32 0.1, %v854_v23  ;;  %v858_v29 = vadd.f32 %v857_v27, %v5988_v39  ;;  %v859_v30 = vpop.f32.mrb[11].mxu0  ;;  %1462 = vmatprep.mubr.bf16.mxu1 %v1187_v25  ;;  %vm1000_vm8 = vcmp.gt.f32.partialorder %v854_v23, 0.0 }
 0x118   : > { %v1065_v32 = vmul.f32 0.1, %v856_v26  ;;  %v860_v33 = vadd.f32 %v859_v30, %v5991_v40  ;;  %1463 = vmatmul.mubr.bf16.gmra.mrb[4].mxu1 %v1186_v21  ;;  %vm1001_vm9 = vcmp.gt.f32.partialorder %v856_v26, 0.0 }
 0x119   : > { %vm1002_vm10 = vcmp.gt.f32.partialorder %v858_v29, 0.0  ;;  %v1066_v37 = vmul.f32 0.1, %v858_v29  ;;  %v1128_v42 = vsel %vm1000_vm8, %v854_v23, %v1064_v28 }
 0x11a   : > { %vm1003_vm11 = vcmp.gt.f32.partialorder %v860_v33, 0.0  ;;  %v1067_v41 = vmul.f32 0.1, %v860_v33  ;;  %v1129_v45 = vsel %vm1001_vm9, %v856_v26, %v1065_v32 }
 0x11b   : > { %v1130_v43 = vsel %vm1002_vm10, %v858_v29, %v1066_v37 }
 0x11c   : > { %v863_v44 = vpop.f32.mrb[12].mxu0  ;;  %v1131_v46 = vsel %vm1003_vm11, %v860_v33, %v1067_v41  ;;  %v1188_v47 = vpack.c.bf16 %v1130_v43, %v1128_v42 }
 0x11d   : > { %v864_v48 = vadd.f32 %v863_v44, %v5988_v39  ;;  %v865_v49 = vpop.f32.mrb[13].mxu0  ;;  %v1189_v50 = vpack.c.bf16 %v1131_v46, %v1129_v45 }
 0x11e   : > { %v866_v51 = vadd.f32 %v865_v49, %v5991_v40  ;;  %v867_v52 = vpop.f32.mrb[14].mxu0 }
 0x11f   : > { %v1068_v53 = vmul.f32 0.1, %v864_v48  ;;  %v868_v54 = vadd.f32 %v867_v52, %v5988_v39  ;;  %v869_v55 = vpop.f32.mrb[15].mxu0  ;;  %1472 = vmatprep.mubr.bf16.mxu1 %v1189_v50  ;;  %vm1004_vm12 = vcmp.gt.f32.partialorder %v864_v48, 0.0 }
 0x120   : > { %v1069_v56 = vmul.f32 0.1, %v866_v51  ;;  %v870_v57 = vadd.f32 %v869_v55, %v5991_v40  ;;  %1473 = vmatmul.mubr.bf16.gmra.mrb[8].mxu1 %v1188_v47  ;;  %vm1005_vm13 = vcmp.gt.f32.partialorder %v866_v51, 0.0 }
 0x121   : > { %vm1006_vm14 = vcmp.gt.f32.partialorder %v868_v54, 0.0  ;;  %v1070_v58 = vmul.f32 0.1, %v868_v54  ;;  %v1132_v60 = vsel %vm1004_vm12, %v864_v48, %v1068_v53 }
 0x122   : > { %vm1007_vm15 = vcmp.gt.f32.partialorder %v870_v57, 0.0  ;;  %v1071_v59 = vmul.f32 0.1, %v870_v57  ;;  %v1133_v63 = vsel %vm1005_vm13, %v866_v51, %v1069_v56 }
 0x123   : > { %v1134_v61 = vsel %vm1006_vm14, %v868_v54, %v1070_v58 }
 0x124   : > { %v873_v62 = vpop.f32.mrb[16].mxu0  ;;  %v1135_v0 = vsel %vm1007_vm15, %v870_v57, %v1071_v59  ;;  %v1190_v1 = vpack.c.bf16 %v1134_v61, %v1132_v60 }
 0x125   : > { %v874_v3 = vadd.f32 %v873_v62, %v5988_v39  ;;  %v875_v4 = vpop.f32.mrb[17].mxu0  ;;  %v1191_v5 = vpack.c.bf16 %v1135_v0, %v1133_v63 }
 0x126   : > { %v876_v6 = vadd.f32 %v875_v4, %v5991_v40  ;;  %v877_v7 = vpop.f32.mrb[18].mxu0 }
 0x127   : > { %v1072_v8 = vmul.f32 0.1, %v874_v3  ;;  %v878_v9 = vadd.f32 %v877_v7, %v5988_v39  ;;  %v879_v10 = vpop.f32.mrb[19].mxu0  ;;  %1482 = vmatprep.mubr.bf16.mxu1 %v1191_v5  ;;  %vm1008_vm0 = vcmp.gt.f32.partialorder %v874_v3, 0.0 }
 0x128   : > { %v1073_v11 = vmul.f32 0.1, %v876_v6  ;;  %v880_v12 = vadd.f32 %v879_v10, %v5991_v40  ;;  %1483 = vmatmul.mubr.bf16.gmra.mrb[12].mxu1 %v1190_v1  ;;  %vm1009_vm1 = vcmp.gt.f32.partialorder %v876_v6, 0.0 }
 0x129   : > { %vm1010_vm2 = vcmp.gt.f32.partialorder %v878_v9, 0.0  ;;  %v1074_v13 = vmul.f32 0.1, %v878_v9  ;;  %v1136_v15 = vsel %vm1008_vm0, %v874_v3, %v1072_v8 }
 0x12a   : > { %vm1011_vm3 = vcmp.gt.f32.partialorder %v880_v12, 0.0  ;;  %v1075_v14 = vmul.f32 0.1, %v880_v12  ;;  %v1137_v18 = vsel %vm1009_vm1, %v876_v6, %v1073_v11 }
 0x12b   : > { %v1138_v16 = vsel %vm1010_vm2, %v878_v9, %v1074_v13 }
 0x12c   : > { %v883_v17 = vpop.f32.mrb[20].mxu0  ;;  %v1139_v19 = vsel %vm1011_vm3, %v880_v12, %v1075_v14  ;;  %v1192_v20 = vpack.c.bf16 %v1138_v16, %v1136_v15 }
 0x12d   : > { %v884_v21 = vadd.f32 %v883_v17, %v5988_v39  ;;  %v885_v22 = vpop.f32.mrb[21].mxu0  ;;  %v1193_v23 = vpack.c.bf16 %v1139_v19, %v1137_v18 }
 0x12e   : > { %v886_v24 = vadd.f32 %v885_v22, %v5991_v40  ;;  %v887_v25 = vpop.f32.mrb[22].mxu0 }
 0x12f   : > { %v1076_v26 = vmul.f32 0.1, %v884_v21  ;;  %v888_v27 = vadd.f32 %v887_v25, %v5988_v39  ;;  %v889_v28 = vpop.f32.mrb[23].mxu0  ;;  %1492 = vmatprep.mubr.bf16.mxu1 %v1193_v23  ;;  %vm1012_vm4 = vcmp.gt.f32.partialorder %v884_v21, 0.0 }
 0x130   : > { %v1077_v29 = vmul.f32 0.1, %v886_v24  ;;  %v890_v30 = vadd.f32 %v889_v28, %v5991_v40  ;;  %1493 = vmatmul.mubr.bf16.gmra.mrb[16].mxu1 %v1192_v20  ;;  %vm1013_vm5 = vcmp.gt.f32.partialorder %v886_v24, 0.0 }
 0x131   : > { %vm1014_vm6 = vcmp.gt.f32.partialorder %v888_v27, 0.0  ;;  %v1078_v31 = vmul.f32 0.1, %v888_v27  ;;  %v1140_v33 = vsel %vm1012_vm4, %v884_v21, %v1076_v26 }
 0x132   : > { %vm1015_vm7 = vcmp.gt.f32.partialorder %v890_v30, 0.0  ;;  %v1079_v32 = vmul.f32 0.1, %v890_v30  ;;  %v1141_v42 = vsel %vm1013_vm5, %v886_v24, %v1077_v29 }
 0x133   : > { %v1142_v37 = vsel %vm1014_vm6, %v888_v27, %v1078_v31 }
 0x134   : > { %v893_v41 = vpop.f32.mrb[24].mxu0  ;;  %v1143_v43 = vsel %vm1015_vm7, %v890_v30, %v1079_v32  ;;  %v1194_v44 = vpack.c.bf16 %v1142_v37, %v1140_v33 }
 0x135   : > { %v894_v45 = vadd.f32 %v893_v41, %v5988_v39  ;;  %v895_v46 = vpop.f32.mrb[25].mxu0  ;;  %v1195_v47 = vpack.c.bf16 %v1143_v43, %v1141_v42 }
 0x136   : > { %v896_v48 = vadd.f32 %v895_v46, %v5991_v40  ;;  %v897_v49 = vpop.f32.mrb[26].mxu0 }
 0x137   : > { %v1080_v50 = vmul.f32 0.1, %v894_v45  ;;  %v898_v51 = vadd.f32 %v897_v49, %v5988_v39  ;;  %v899_v52 = vpop.f32.mrb[27].mxu0  ;;  %1502 = vmatprep.mubr.bf16.mxu1 %v1195_v47  ;;  %vm1016_vm8 = vcmp.gt.f32.partialorder %v894_v45, 0.0 }
 0x138   : > { %v1081_v53 = vmul.f32 0.1, %v896_v48  ;;  %v900_v54 = vadd.f32 %v899_v52, %v5991_v40  ;;  %1503 = vmatmul.mubr.bf16.gmra.mrb[20].mxu1 %v1194_v44  ;;  %vm1017_vm9 = vcmp.gt.f32.partialorder %v896_v48, 0.0 }
 0x139   : > { %vm1018_vm10 = vcmp.gt.f32.partialorder %v898_v51, 0.0  ;;  %v1082_v55 = vmul.f32 0.1, %v898_v51  ;;  %v1144_v57 = vsel %vm1016_vm8, %v894_v45, %v1080_v50 }
 0x13a   : > { %vm1019_vm11 = vcmp.gt.f32.partialorder %v900_v54, 0.0  ;;  %v1083_v56 = vmul.f32 0.1, %v900_v54  ;;  %v1145_v60 = vsel %vm1017_vm9, %v896_v48, %v1081_v53 }
 0x13b   : > { %v1146_v58 = vsel %vm1018_vm10, %v898_v51, %v1082_v55 }
 0x13c   : > { %v903_v59 = vpop.f32.mrb[28].mxu0  ;;  %v1147_v61 = vsel %vm1019_vm11, %v900_v54, %v1083_v56  ;;  %v1196_v62 = vpack.c.bf16 %v1146_v58, %v1144_v57 }
 0x13d   : > { %v904_v63 = vadd.f32 %v903_v59, %v5988_v39  ;;  %v905_v0 = vpop.f32.mrb[29].mxu0  ;;  %v1197_v1 = vpack.c.bf16 %v1147_v61, %v1145_v60 }
 0x13e   : > { %v906_v3 = vadd.f32 %v905_v0, %v5991_v40  ;;  %v907_v4 = vpop.f32.mrb[30].mxu0 }
 0x13f   : > { %v1084_v5 = vmul.f32 0.1, %v904_v63  ;;  %v908_v6 = vadd.f32 %v907_v4, %v5988_v39  ;;  %v909_v7 = vpop.f32.mrb[31].mxu0  ;;  %1512 = vmatprep.mubr.bf16.mxu1 %v1197_v1  ;;  %vm1020_vm12 = vcmp.gt.f32.partialorder %v904_v63, 0.0 }
 0x140   : > { %v1085_v8 = vmul.f32 0.1, %v906_v3  ;;  %v910_v9 = vadd.f32 %v909_v7, %v5991_v40  ;;  %1513 = vmatmul.mubr.bf16.gmra.mrb[24].mxu1 %v1196_v62  ;;  %vm1021_vm13 = vcmp.gt.f32.partialorder %v906_v3, 0.0 }
 0x141   : > { %vm1022_vm14 = vcmp.gt.f32.partialorder %v908_v6, 0.0  ;;  %v1086_v10 = vmul.f32 0.1, %v908_v6  ;;  %v1148_v12 = vsel %vm1020_vm12, %v904_v63, %v1084_v5 }
 0x142   : > { %vm1023_vm15 = vcmp.gt.f32.partialorder %v910_v9, 0.0  ;;  %v1087_v11 = vmul.f32 0.1, %v910_v9  ;;  %v1149_v15 = vsel %vm1021_vm13, %v906_v3, %v1085_v8 }
 0x143   : > { %v1150_v13 = vsel %vm1022_vm14, %v908_v6, %v1086_v10 }
 0x144   : > { %v913_v14 = vpop.f32.mrb[32].mxu0  ;;  %v1151_v16 = vsel %vm1023_vm15, %v910_v9, %v1087_v11  ;;  %v1198_v17 = vpack.c.bf16 %v1150_v13, %v1148_v12 }
 0x145   : > { %v914_v18 = vadd.f32 %v913_v14, %v5988_v39  ;;  %v915_v19 = vpop.f32.mrb[33].mxu0  ;;  %v1199_v20 = vpack.c.bf16 %v1151_v16, %v1149_v15 }
 0x146   : > { %v916_v21 = vadd.f32 %v915_v19, %v5991_v40  ;;  %v917_v22 = vpop.f32.mrb[34].mxu0 }
 0x147   : > { %v1088_v23 = vmul.f32 0.1, %v914_v18  ;;  %v918_v24 = vadd.f32 %v917_v22, %v5988_v39  ;;  %v919_v25 = vpop.f32.mrb[35].mxu0  ;;  %1522 = vmatprep.mubr.bf16.mxu1 %v1199_v20  ;;  %vm1024_vm0 = vcmp.gt.f32.partialorder %v914_v18, 0.0 }
 0x148   : > { %v1089_v26 = vmul.f32 0.1, %v916_v21  ;;  %v920_v27 = vadd.f32 %v919_v25, %v5991_v40  ;;  %1523 = vmatmul.mubr.bf16.gmra.mrb[28].mxu1 %v1198_v17  ;;  %vm1025_vm1 = vcmp.gt.f32.partialorder %v916_v21, 0.0 }
 0x149   : > { %vm1026_vm2 = vcmp.gt.f32.partialorder %v918_v24, 0.0  ;;  %v1090_v28 = vmul.f32 0.1, %v918_v24  ;;  %v1152_v30 = vsel %vm1024_vm0, %v914_v18, %v1088_v23 }
 0x14a   : > { %vm1027_vm3 = vcmp.gt.f32.partialorder %v920_v27, 0.0  ;;  %v1091_v29 = vmul.f32 0.1, %v920_v27  ;;  %v1153_v33 = vsel %vm1025_vm1, %v916_v21, %v1089_v26  ;;  %v5449_v26 = vld [vmem:[%s6956_s8 + $0x68] sm:$0xff]  }
 0x14b   : > { %v1154_v31 = vsel %vm1026_vm2, %v918_v24, %v1090_v28  ;;  %v5450_v28 = vld [vmem:[%s6956_s8 + $0x28] sm:$0xff]   ;;  %4944 = vmatprep.subr.bf16.mxu0 %v5449_v26 }
 0x14c   : > { %v923_v32 = vpop.f32.mrb[36].mxu0  ;;  %v1155_v37 = vsel %vm1027_vm3, %v920_v27, %v1091_v29  ;;  %v1200_v41 = vpack.c.bf16 %v1154_v31, %v1152_v30  ;;  %4945 = vmatpush3.bf16.msra.mxu0 %v5450_v28 }
 0x14d   : > { %v924_v42 = vadd.f32 %v923_v32, %v5988_v39  ;;  %v925_v43 = vpop.f32.mrb[37].mxu0  ;;  %v1201_v44 = vpack.c.bf16 %v1155_v37, %v1153_v33 }
 0x14e   : > { %v926_v45 = vadd.f32 %v925_v43, %v5991_v40  ;;  %v927_v46 = vpop.f32.mrb[38].mxu0 }
 0x14f   : > { %v1092_v47 = vmul.f32 0.1, %v924_v42  ;;  %v928_v48 = vadd.f32 %v927_v46, %v5988_v39  ;;  %v929_v49 = vpop.f32.mrb[39].mxu0  ;;  %1532 = vmatprep.mubr.bf16.mxu1 %v1201_v44  ;;  %vm1028_vm4 = vcmp.gt.f32.partialorder %v924_v42, 0.0  ;;  %v5451_v44 = vld [vmem:[%s6956_s8 + $0x70] sm:$0xff]  }
 0x150   : > { %v1093_v50 = vmul.f32 0.1, %v926_v45  ;;  %v930_v51 = vadd.f32 %v929_v49, %v5991_v40  ;;  %1533 = vmatmul.mubr.bf16.gmra.mrb[32].mxu1 %v1200_v41  ;;  %vm1029_vm5 = vcmp.gt.f32.partialorder %v926_v45, 0.0  ;;  %4946 = vmatprep.subr.bf16.mxu0 %v5451_v44 }
 0x151   : > { %vm1030_vm6 = vcmp.gt.f32.partialorder %v928_v48, 0.0  ;;  %v1094_v52 = vmul.f32 0.1, %v928_v48  ;;  %v1156_v54 = vsel %vm1028_vm4, %v924_v42, %v1092_v47  ;;  %v5452_v47 = vld [vmem:[%s6956_s8 + $0x30] sm:$0xff]  }
 0x152   : > { %vm1031_vm7 = vcmp.gt.f32.partialorder %v930_v51, 0.0  ;;  %v1095_v53 = vmul.f32 0.1, %v930_v51  ;;  %v1157_v57 = vsel %vm1029_vm5, %v926_v45, %v1093_v50  ;;  %4947 = vmatpush3.bf16.msra.mxu0 %v5452_v47 }
 0x153   : > { %v1158_v55 = vsel %vm1030_vm6, %v928_v48, %v1094_v52 }
 0x154   : > { %v933_v56 = vpop.f32.mrb[40].mxu0  ;;  %v1159_v58 = vsel %vm1031_vm7, %v930_v51, %v1095_v53  ;;  %v1202_v59 = vpack.c.bf16 %v1158_v55, %v1156_v54  ;;  %v5453_v54 = vld [vmem:[%s6956_s8 + $0x78] sm:$0xff]  }
 0x155   : > { %v934_v60 = vadd.f32 %v933_v56, %v5988_v39  ;;  %v935_v61 = vpop.f32.mrb[41].mxu0  ;;  %v1203_v62 = vpack.c.bf16 %v1159_v58, %v1157_v57  ;;  %v5454_v56 = vld [vmem:[%s6956_s8 + $0x38] sm:$0xff]   ;;  %4948 = vmatprep.subr.bf16.mxu0 %v5453_v54 }
 0x156   : > { %v936_v63 = vadd.f32 %v935_v61, %v5991_v40  ;;  %v937_v0 = vpop.f32.mrb[42].mxu0  ;;  %4949 = vmatpush3.bf16.msra.mxu0 %v5454_v56 }
 0x157   : > { %v1096_v1 = vmul.f32 0.1, %v934_v60  ;;  %v938_v3 = vadd.f32 %v937_v0, %v5988_v39  ;;  %v939_v4 = vpop.f32.mrb[43].mxu0  ;;  %1542 = vmatprep.mubr.bf16.mxu1 %v1203_v62  ;;  %vm1032_vm8 = vcmp.gt.f32.partialorder %v934_v60, 0.0 }
 0x158   : > { %v1097_v5 = vmul.f32 0.1, %v936_v63  ;;  %v940_v6 = vadd.f32 %v939_v4, %v5991_v40  ;;  %1543 = vmatmul.mubr.bf16.gmra.mrb[36].mxu1 %v1202_v59  ;;  %vm1033_vm9 = vcmp.gt.f32.partialorder %v936_v63, 0.0 }
 0x159   : > { %vm1034_vm10 = vcmp.gt.f32.partialorder %v938_v3, 0.0  ;;  %v1098_v7 = vmul.f32 0.1, %v938_v3  ;;  %v1160_v9 = vsel %vm1032_vm8, %v934_v60, %v1096_v1 }
 0x15a   : > { %vm1035_vm11 = vcmp.gt.f32.partialorder %v940_v6, 0.0  ;;  %v1099_v8 = vmul.f32 0.1, %v940_v6  ;;  %v1161_v12 = vsel %vm1033_vm9, %v936_v63, %v1097_v5 }
 0x15b   : > { %v1162_v10 = vsel %vm1034_vm10, %v938_v3, %v1098_v7 }
 0x15c   : > { %v943_v11 = vpop.f32.mrb[44].mxu0  ;;  %v1163_v13 = vsel %vm1035_vm11, %v940_v6, %v1099_v8  ;;  %v1204_v14 = vpack.c.bf16 %v1162_v10, %v1160_v9 }
 0x15d   : > { %v944_v15 = vadd.f32 %v943_v11, %v5988_v39  ;;  %v945_v16 = vpop.f32.mrb[45].mxu0  ;;  %v1205_v17 = vpack.c.bf16 %v1163_v13, %v1161_v12 }
 0x15e   : > { %v946_v18 = vadd.f32 %v945_v16, %v5991_v40  ;;  %v947_v19 = vpop.f32.mrb[46].mxu0 }
 0x15f   : > { %v1100_v20 = vmul.f32 0.1, %v944_v15  ;;  %v948_v21 = vadd.f32 %v947_v19, %v5988_v39  ;;  %v949_v22 = vpop.f32.mrb[47].mxu0  ;;  %1552 = vmatprep.mubr.bf16.mxu1 %v1205_v17  ;;  %vm1036_vm12 = vcmp.gt.f32.partialorder %v944_v15, 0.0 }
 0x160   : > { %v1101_v23 = vmul.f32 0.1, %v946_v18  ;;  %v950_v24 = vadd.f32 %v949_v22, %v5991_v40  ;;  %1553 = vmatmul.mubr.bf16.gmra.mrb[40].mxu1 %v1204_v14  ;;  %vm1037_vm13 = vcmp.gt.f32.partialorder %v946_v18, 0.0 }
 0x161   : > { %vm1038_vm14 = vcmp.gt.f32.partialorder %v948_v21, 0.0  ;;  %v1102_v25 = vmul.f32 0.1, %v948_v21  ;;  %v1164_v29 = vsel %vm1036_vm12, %v944_v15, %v1100_v20 }
 0x162   : > { %vm1039_vm15 = vcmp.gt.f32.partialorder %v950_v24, 0.0  ;;  %v1103_v27 = vmul.f32 0.1, %v950_v24  ;;  %v1165_v32 = vsel %vm1037_vm13, %v946_v18, %v1101_v23 }
 0x163   : > { %v1166_v30 = vsel %vm1038_vm14, %v948_v21, %v1102_v25 }
 0x164   : > { %v953_v31 = vpop.f32.mrb[48].mxu0  ;;  %v1167_v33 = vsel %vm1039_vm15, %v950_v24, %v1103_v27  ;;  %v1206_v37 = vpack.c.bf16 %v1166_v30, %v1164_v29 }
 0x165   : > { %v954_v41 = vadd.f32 %v953_v31, %v5988_v39  ;;  %v955_v42 = vpop.f32.mrb[49].mxu0  ;;  %v1207_v43 = vpack.c.bf16 %v1167_v33, %v1165_v32 }
 0x166   : > { %v956_v45 = vadd.f32 %v955_v42, %v5991_v40  ;;  %v957_v46 = vpop.f32.mrb[50].mxu0 }
 0x167   : > { %v1104_v48 = vmul.f32 0.1, %v954_v41  ;;  %v958_v49 = vadd.f32 %v957_v46, %v5988_v39  ;;  %v959_v50 = vpop.f32.mrb[51].mxu0  ;;  %1562 = vmatprep.mubr.bf16.mxu1 %v1207_v43  ;;  %vm1040_vm0 = vcmp.gt.f32.partialorder %v954_v41, 0.0 }
 0x168   : > { %v1105_v51 = vmul.f32 0.1, %v956_v45  ;;  %v960_v52 = vadd.f32 %v959_v50, %v5991_v40  ;;  %1563 = vmatmul.mubr.bf16.gmra.mrb[44].mxu1 %v1206_v37  ;;  %vm1041_vm1 = vcmp.gt.f32.partialorder %v956_v45, 0.0 }
 0x169   : > { %vm1042_vm2 = vcmp.gt.f32.partialorder %v958_v49, 0.0  ;;  %v1106_v53 = vmul.f32 0.1, %v958_v49  ;;  %v1168_v57 = vsel %vm1040_vm0, %v954_v41, %v1104_v48 }
 0x16a   : > { %vm1043_vm3 = vcmp.gt.f32.partialorder %v960_v52, 0.0  ;;  %v1107_v55 = vmul.f32 0.1, %v960_v52  ;;  %v1169_v60 = vsel %vm1041_vm1, %v956_v45, %v1105_v51 }
 0x16b   : > { %v1170_v58 = vsel %vm1042_vm2, %v958_v49, %v1106_v53 }
 0x16c   : > { %v963_v59 = vpop.f32.mrb[52].mxu0  ;;  %v1171_v61 = vsel %vm1043_vm3, %v960_v52, %v1107_v55  ;;  %v1208_v62 = vpack.c.bf16 %v1170_v58, %v1168_v57 }
 0x16d   : > { %v964_v63 = vadd.f32 %v963_v59, %v5988_v39  ;;  %v965_v0 = vpop.f32.mrb[53].mxu0  ;;  %v1209_v1 = vpack.c.bf16 %v1171_v61, %v1169_v60 }
 0x16e   : > { %v966_v3 = vadd.f32 %v965_v0, %v5991_v40  ;;  %v967_v4 = vpop.f32.mrb[54].mxu0 }
 0x16f   : > { %v1108_v5 = vmul.f32 0.1, %v964_v63  ;;  %v968_v6 = vadd.f32 %v967_v4, %v5988_v39  ;;  %v969_v7 = vpop.f32.mrb[55].mxu0  ;;  %1572 = vmatprep.mubr.bf16.mxu1 %v1209_v1  ;;  %vm1044_vm4 = vcmp.gt.f32.partialorder %v964_v63, 0.0 }
 0x170   : > { %v1109_v8 = vmul.f32 0.1, %v966_v3  ;;  %v970_v9 = vadd.f32 %v969_v7, %v5991_v40  ;;  %1573 = vmatmul.mubr.bf16.gmra.mrb[48].mxu1 %v1208_v62  ;;  %vm1045_vm5 = vcmp.gt.f32.partialorder %v966_v3, 0.0 }
 0x171   : > { %vm1046_vm6 = vcmp.gt.f32.partialorder %v968_v6, 0.0  ;;  %v1110_v10 = vmul.f32 0.1, %v968_v6  ;;  %v1172_v12 = vsel %vm1044_vm4, %v964_v63, %v1108_v5 }
 0x172   : > { %vm1047_vm7 = vcmp.gt.f32.partialorder %v970_v9, 0.0  ;;  %v1111_v11 = vmul.f32 0.1, %v970_v9  ;;  %v1173_v15 = vsel %vm1045_vm5, %v966_v3, %v1109_v8  ;;  %v5455_v8 = vld [vmem:[%s6958_s10] ss:$8 sps:$4 sm:$0xff]  }
 0x173   : > { %v1174_v13 = vsel %vm1046_vm6, %v968_v6, %v1110_v10  ;;  %v5457_v10 = vld [vmem:[%s6958_s10 + $0x4] ss:$8 sps:$4 sm:$0xff]  }
 0x174   : > { %v973_v14 = vpop.f32.mrb[56].mxu0  ;;  %v1175_v16 = vsel %vm1047_vm7, %v970_v9, %v1111_v11  ;;  %v1210_v17 = vpack.c.bf16 %v1174_v13, %v1172_v12  ;;  %2401 = vmatprep.subr.bf16.mxu1 %v5457_v10 }
 0x175   : > { %v974_v18 = vadd.f32 %v973_v14, %v5988_v39  ;;  %v975_v19 = vpop.f32.mrb[57].mxu0  ;;  %v1211_v20 = vpack.c.bf16 %v1175_v16, %v1173_v15  ;;  %v5460_v14 = vld [vmem:[%s6958_s10 + $0x14] ss:$8 sps:$4 sm:$0xff]   ;;  %2402 = vmatpush1.bf16.msra.mxu1 %v5455_v8 }
 0x176   : > { %v976_v21 = vadd.f32 %v975_v19, %v5991_v40  ;;  %v977_v22 = vpop.f32.mrb[58].mxu0  ;;  %v5458_v19 = vld [vmem:[%s6958_s10 + $0x10] ss:$8 sps:$4 sm:$0xff]   ;;  %2403 = vmatprep.subr.bf16.mxu1 %v5460_v14 }
 0x177   : > { %v1112_v23 = vmul.f32 0.1, %v974_v18  ;;  %v978_v24 = vadd.f32 %v977_v22, %v5988_v39  ;;  %v979_v25 = vpop.f32.mrb[59].mxu0  ;;  %1582 = vmatprep.mubr.bf16.mxu1 %v1211_v20  ;;  %vm1048_vm8 = vcmp.gt.f32.partialorder %v974_v18, 0.0 }
 0x178   : > { %v1113_v26 = vmul.f32 0.1, %v976_v21  ;;  %v980_v27 = vadd.f32 %v979_v25, %v5991_v40  ;;  %1583 = vmatmul.mubr.bf16.gmra.mrb[52].mxu1 %v1210_v17  ;;  %vm1049_vm9 = vcmp.gt.f32.partialorder %v976_v21, 0.0 }
 0x179   : > { %vm1050_vm10 = vcmp.gt.f32.partialorder %v978_v24, 0.0  ;;  %v1114_v28 = vmul.f32 0.1, %v978_v24  ;;  %v1176_v30 = vsel %vm1048_vm8, %v974_v18, %v1112_v23  ;;  %v5463_v23 = vld [vmem:[%s6958_s10 + $0x24] ss:$8 sps:$4 sm:$0xff]   ;;  %2404 = vmatpush1.bf16.msra.mxu1 %v5458_v19 }
 0x17a   : > { %vm1051_vm11 = vcmp.gt.f32.partialorder %v980_v27, 0.0  ;;  %v1115_v29 = vmul.f32 0.1, %v980_v27  ;;  %v1177_v33 = vsel %vm1049_vm9, %v976_v21, %v1113_v26  ;;  %2405 = vmatprep.subr.bf16.mxu1 %v5463_v23 }
 0x17b   : > { %v1178_v31 = vsel %vm1050_vm10, %v978_v24, %v1114_v28 }
 0x17c   : > { %v983_v32 = vpop.f32.mrb[60].mxu0  ;;  %v1179_v37 = vsel %vm1051_vm11, %v980_v27, %v1115_v29  ;;  %v1212_v41 = vpack.c.bf16 %v1178_v31, %v1176_v30  ;;  %v5461_v31 = vld [vmem:[%s6958_s10 + $0x20] ss:$8 sps:$4 sm:$0xff]  }
 0x17d   : > { %v984_v42 = vadd.f32 %v983_v32, %v5988_v39  ;;  %v985_v43 = vpop.f32.mrb[61].mxu0  ;;  %v1213_v44 = vpack.c.bf16 %v1179_v37, %v1177_v33  ;;  %v5466_v33 = vld [vmem:[%s6958_s10 + $0x34] ss:$8 sps:$4 sm:$0xff]   ;;  %2406 = vmatpush1.bf16.msra.mxu1 %v5461_v31 }
 0x17e   : > { %v986_v45 = vadd.f32 %v985_v43, %v5991_v40  ;;  %v987_v46 = vpop.f32.mrb[62].mxu0  ;;  %2407 = vmatprep.subr.bf16.mxu1 %v5466_v33 }
 0x17f   : > { %v1116_v47 = vmul.f32 0.1, %v984_v42  ;;  %v988_v48 = vadd.f32 %v987_v46, %v5988_v39  ;;  %v989_v49 = vpop.f32.mrb[63].mxu0  ;;  %1592 = vmatprep.mubr.bf16.mxu1 %v1213_v44  ;;  %vm1052_vm12 = vcmp.gt.f32.partialorder %v984_v42, 0.0  ;;  %v1248_v39 = vld [vmem:[%s6955_s7] sm:$0x3] }
 0x180   : > { %v1117_v50 = vmul.f32 0.1, %v986_v45  ;;  %v990_v51 = vadd.f32 %v989_v49, %v5991_v40  ;;  %1593 = vmatmul.mubr.bf16.gmra.mrb[56].mxu1 %v1212_v41  ;;  %vm1053_vm13 = vcmp.gt.f32.partialorder %v986_v45, 0.0  ;;  %v6110_v40 = vrot.slane %v1248_v39, %v5979_v36 }
 0x181   : > { %vm1054_vm14 = vcmp.gt.f32.partialorder %v988_v48, 0.0  ;;  %v1118_v52 = vmul.f32 0.1, %v988_v48  ;;  %v1180_v54 = vsel %vm1052_vm12, %v984_v42, %v1116_v47  ;;  %v6113_v60 = vrot.slane %v1248_v39, %v5985_v38  ;;  %v5464_v47 = vld [vmem:[%s6958_s10 + $0x30] ss:$8 sps:$4 sm:$0xff]  }
 0x182   : > { %vm1055_vm15 = vcmp.gt.f32.partialorder %v990_v51, 0.0  ;;  %v1119_v53 = vmul.f32 0.1, %v990_v51  ;;  %v1181_v56 = vsel %vm1053_vm13, %v986_v45, %v1117_v50  ;;  %2408 = vmatpush1.bf16.msra.mxu1 %v5464_v47 }
 0x183   : > { %v1182_v55 = vsel %vm1054_vm14, %v988_v48, %v1118_v52 }
 0x184   : > { %v1183_v57 = vsel %vm1055_vm15, %v990_v51, %v1119_v53  ;;  %v1214_v58 = vpack.c.bf16 %v1182_v55, %v1180_v54  ;;  %v5469_v51 = vld [vmem:[%s6958_s10 + $0x44] ss:$8 sps:$4 sm:$0xff]  }
 0x185   : > { %v1215_v59 = vpack.c.bf16 %v1183_v57, %v1181_v56  ;;  %2409 = vmatprep.subr.bf16.mxu1 %v5469_v51 }
 0x187   : > { %1602 = vmatprep.mubr.bf16.mxu1 %v1215_v59  ;;  %v5467_v59 = vld [vmem:[%s6958_s10 + $0x40] ss:$8 sps:$4 sm:$0xff]  }
 0x188   : > { %1603 = vmatmul.mubr.bf16.gmra.mrb[60].mxu1 %v1214_v58 }
 0x189   : > { %2433 = vmatprep.mubr.bf16.mxu1 %v5655_v2  ;;  %2410 = vmatpush1.bf16.msra.mxu1 %v5467_v59 }
 0x1e3   : > { %v1454_v61 = vpop.f32.mrb[0].mxu1 }
 0x1e4   : > { %v1455_v62 = vadd.f32 %v1454_v61, %v6110_v40  ;;  %v1456_v63 = vpop.f32.mrb[1].mxu1  ;;  %v5472_v61 = vld [vmem:[%s6958_s10 + $0x54] ss:$8 sps:$4 sm:$0xff]  }
 0x1e5   : > { %v1457_v0 = vadd.f32 %v1456_v63, %v6113_v60  ;;  %v1458_v1 = vpop.f32.mrb[2].mxu1  ;;  %2411 = vmatprep.subr.bf16.mxu1 %v5472_v61 }
 0x1e6   : > { %v1677_v3 = vmul.f32 0.1, %v1455_v62  ;;  %v1459_v4 = vadd.f32 %v1458_v1, %v6110_v40  ;;  %v1460_v5 = vpop.f32.mrb[3].mxu1  ;;  %vm1613_vm0 = vcmp.gt.f32.partialorder %v1455_v62, 0.0 }
 0x1e7   : > { %v1678_v6 = vmul.f32 0.1, %v1457_v0  ;;  %v1461_v7 = vadd.f32 %v1460_v5, %v6113_v60  ;;  %vm1614_vm1 = vcmp.gt.f32.partialorder %v1457_v0, 0.0 }
 0x1e8   : > { %vm1615_vm2 = vcmp.gt.f32.partialorder %v1459_v4, 0.0  ;;  %v1679_v9 = vmul.f32 0.1, %v1459_v4  ;;  %v1741_v12 = vsel %vm1613_vm0, %v1455_v62, %v1677_v3 }
 0x1e9   : > { %vm1616_vm3 = vcmp.gt.f32.partialorder %v1461_v7, 0.0  ;;  %v1680_v11 = vmul.f32 0.1, %v1461_v7  ;;  %v1742_v17 = vsel %vm1614_vm1, %v1457_v0, %v1678_v6  ;;  %v5470_v6 = vld [vmem:[%s6958_s10 + $0x50] ss:$8 sps:$4 sm:$0xff]  }
 0x1ea   : > { %v1743_v13 = vsel %vm1615_vm2, %v1459_v4, %v1679_v9  ;;  %2412 = vmatpush1.bf16.msra.mxu1 %v5470_v6 }
 0x1eb   : > { %v1805_v15 = vpack.c.bf16 %v1743_v13, %v1741_v12  ;;  %v1464_v16 = vpop.f32.mrb[4].mxu1  ;;  %v1744_v18 = vsel %vm1616_vm3, %v1461_v7, %v1680_v11 }
 0x1ec   : > { %v1465_v20 = vadd.f32 %v1464_v16, %v6110_v40  ;;  %v1466_v21 = vpop.f32.mrb[5].mxu1  ;;  %v1806_v22 = vpack.c.bf16 %v1744_v18, %v1742_v17 }
 0x1ed   : > { %v1467_v24 = vadd.f32 %v1466_v21, %v6113_v60  ;;  %v1468_v25 = vpop.f32.mrb[6].mxu1 }
 0x1ee   : > { %v1681_v26 = vmul.f32 0.1, %v1465_v20  ;;  %v1469_v27 = vadd.f32 %v1468_v25, %v6110_v40  ;;  %v1470_v28 = vpop.f32.mrb[7].mxu1  ;;  %2004 = vmatprep.mubr.bf16.mxu0 %v1806_v22  ;;  %vm1617_vm4 = vcmp.gt.f32.partialorder %v1465_v20, 0.0 }
 0x1ef   : > { %v1682_v29 = vmul.f32 0.1, %v1467_v24  ;;  %v1471_v30 = vadd.f32 %v1470_v28, %v6113_v60  ;;  %2005 = vmatmul.mubr.bf16.vlgmr.msra.gmra.mrb[64].mxu0 %v1805_v15  ;;  %vm1618_vm5 = vcmp.gt.f32.partialorder %v1467_v24, 0.0 }
 0x1f0   : > { %vm1619_vm6 = vcmp.gt.f32.partialorder %v1469_v27, 0.0  ;;  %v1683_v32 = vmul.f32 0.1, %v1469_v27  ;;  %v1745_v41 = vsel %vm1617_vm4, %v1465_v20, %v1681_v26 }
 0x1f1   : > { %vm1620_vm7 = vcmp.gt.f32.partialorder %v1471_v30, 0.0  ;;  %v1684_v37 = vmul.f32 0.1, %v1471_v30  ;;  %v1746_v44 = vsel %vm1618_vm5, %v1467_v24, %v1682_v29 }
 0x1f2   : > { %v1747_v42 = vsel %vm1619_vm6, %v1469_v27, %v1683_v32 }
 0x1f3   : > { %v1474_v43 = vpop.f32.mrb[8].mxu1  ;;  %v1748_v45 = vsel %vm1620_vm7, %v1471_v30, %v1684_v37  ;;  %v1807_v46 = vpack.c.bf16 %v1747_v42, %v1745_v41 }
 0x1f4   : > { %v1475_v48 = vadd.f32 %v1474_v43, %v6110_v40  ;;  %v1476_v49 = vpop.f32.mrb[9].mxu1  ;;  %v1808_v50 = vpack.c.bf16 %v1748_v45, %v1746_v44 }
 0x1f5   : > { %v1477_v52 = vadd.f32 %v1476_v49, %v6113_v60  ;;  %v1478_v53 = vpop.f32.mrb[10].mxu1 }
 0x1f6   : > { %v1685_v54 = vmul.f32 0.1, %v1475_v48  ;;  %v1479_v55 = vadd.f32 %v1478_v53, %v6110_v40  ;;  %v1480_v56 = vpop.f32.mrb[11].mxu1  ;;  %2012 = vmatprep.mubr.bf16.mxu0 %v1808_v50  ;;  %vm1621_vm8 = vcmp.gt.f32.partialorder %v1475_v48, 0.0 }
 0x1f7   : > { %v1686_v57 = vmul.f32 0.1, %v1477_v52  ;;  %v1481_v58 = vadd.f32 %v1480_v56, %v6113_v60  ;;  %2013 = vmatmul.mubr.bf16.gmra.mrb[68].mxu0 %v1807_v46  ;;  %vm1622_vm9 = vcmp.gt.f32.partialorder %v1477_v52, 0.0 }
 0x1f8   : > { %vm1623_vm10 = vcmp.gt.f32.partialorder %v1479_v55, 0.0  ;;  %v1687_v39 = vmul.f32 0.1, %v1479_v55  ;;  %v1749_v63 = vsel %vm1621_vm8, %v1475_v48, %v1685_v54 }
 0x1f9   : > { %vm1624_vm11 = vcmp.gt.f32.partialorder %v1481_v58, 0.0  ;;  %v1688_v62 = vmul.f32 0.1, %v1481_v58  ;;  %v1750_v3 = vsel %vm1622_vm9, %v1477_v52, %v1686_v57 }
 0x1fa   : > { %v1751_v0 = vsel %vm1623_vm10, %v1479_v55, %v1687_v39 }
 0x1fb   : > { %v1484_v1 = vpop.f32.mrb[12].mxu1  ;;  %v1752_v4 = vsel %vm1624_vm11, %v1481_v58, %v1688_v62  ;;  %v1809_v5 = vpack.c.bf16 %v1751_v0, %v1749_v63 }
 0x1fc   : > { %v1485_v7 = vadd.f32 %v1484_v1, %v6110_v40  ;;  %v1486_v8 = vpop.f32.mrb[13].mxu1  ;;  %v1810_v9 = vpack.c.bf16 %v1752_v4, %v1750_v3 }
 0x1fd   : > { %v1487_v10 = vadd.f32 %v1486_v8, %v6113_v60  ;;  %v1488_v11 = vpop.f32.mrb[14].mxu1 }
 0x1fe   : > { %v1689_v12 = vmul.f32 0.1, %v1485_v7  ;;  %v1489_v13 = vadd.f32 %v1488_v11, %v6110_v40  ;;  %v1490_v14 = vpop.f32.mrb[15].mxu1  ;;  %2020 = vmatprep.mubr.bf16.mxu0 %v1810_v9  ;;  %vm1625_vm12 = vcmp.gt.f32.partialorder %v1485_v7, 0.0 }
 0x1ff   : > { %v1690_v15 = vmul.f32 0.1, %v1487_v10  ;;  %v1491_v16 = vadd.f32 %v1490_v14, %v6113_v60  ;;  %2021 = vmatmul.mubr.bf16.gmra.mrb[72].mxu0 %v1809_v5  ;;  %vm1626_vm13 = vcmp.gt.f32.partialorder %v1487_v10, 0.0 }
 0x200   : > { %vm1627_vm14 = vcmp.gt.f32.partialorder %v1489_v13, 0.0  ;;  %v1691_v17 = vmul.f32 0.1, %v1489_v13  ;;  %v1753_v19 = vsel %vm1625_vm12, %v1485_v7, %v1689_v12 }
 0x201   : > { %vm1628_vm15 = vcmp.gt.f32.partialorder %v1491_v16, 0.0  ;;  %v1692_v18 = vmul.f32 0.1, %v1491_v16  ;;  %v1754_v22 = vsel %vm1626_vm13, %v1487_v10, %v1690_v15 }
 0x202   : > { %v1755_v20 = vsel %vm1627_vm14, %v1489_v13, %v1691_v17 }
 0x203   : > { %v1494_v21 = vpop.f32.mrb[16].mxu1  ;;  %v1756_v23 = vsel %vm1628_vm15, %v1491_v16, %v1692_v18  ;;  %v1811_v24 = vpack.c.bf16 %v1755_v20, %v1753_v19 }
 0x204   : > { %v1495_v25 = vadd.f32 %v1494_v21, %v6110_v40  ;;  %v1496_v26 = vpop.f32.mrb[17].mxu1  ;;  %v1812_v27 = vpack.c.bf16 %v1756_v23, %v1754_v22 }
 0x205   : > { %v1497_v28 = vadd.f32 %v1496_v26, %v6113_v60  ;;  %v1498_v29 = vpop.f32.mrb[18].mxu1 }
 0x206   : > { %v1693_v30 = vmul.f32 0.1, %v1495_v25  ;;  %v1499_v31 = vadd.f32 %v1498_v29, %v6110_v40  ;;  %v1500_v32 = vpop.f32.mrb[19].mxu1  ;;  %2028 = vmatprep.mubr.bf16.mxu0 %v1812_v27  ;;  %vm1629_vm0 = vcmp.gt.f32.partialorder %v1495_v25, 0.0 }
 0x207   : > { %v1694_v33 = vmul.f32 0.1, %v1497_v28  ;;  %v1501_v37 = vadd.f32 %v1500_v32, %v6113_v60  ;;  %2029 = vmatmul.mubr.bf16.gmra.mrb[76].mxu0 %v1811_v24  ;;  %vm1630_vm1 = vcmp.gt.f32.partialorder %v1497_v28, 0.0 }
 0x208   : > { %vm1631_vm2 = vcmp.gt.f32.partialorder %v1499_v31, 0.0  ;;  %v1695_v41 = vmul.f32 0.1, %v1499_v31  ;;  %v1757_v43 = vsel %vm1629_vm0, %v1495_v25, %v1693_v30 }
 0x209   : > { %vm1632_vm3 = vcmp.gt.f32.partialorder %v1501_v37, 0.0  ;;  %v1696_v42 = vmul.f32 0.1, %v1501_v37  ;;  %v1758_v46 = vsel %vm1630_vm1, %v1497_v28, %v1694_v33 }
 0x20a   : > { %v1759_v44 = vsel %vm1631_vm2, %v1499_v31, %v1695_v41 }
 0x20b   : > { %v1504_v45 = vpop.f32.mrb[20].mxu1  ;;  %v1760_v47 = vsel %vm1632_vm3, %v1501_v37, %v1696_v42  ;;  %v1813_v48 = vpack.c.bf16 %v1759_v44, %v1757_v43 }
 0x20c   : > { %v1505_v49 = vadd.f32 %v1504_v45, %v6110_v40  ;;  %v1506_v50 = vpop.f32.mrb[21].mxu1  ;;  %v1814_v51 = vpack.c.bf16 %v1760_v47, %v1758_v46 }
 0x20d   : > { %v1507_v52 = vadd.f32 %v1506_v50, %v6113_v60  ;;  %v1508_v53 = vpop.f32.mrb[22].mxu1 }
 0x20e   : > { %v1697_v54 = vmul.f32 0.1, %v1505_v49  ;;  %v1509_v55 = vadd.f32 %v1508_v53, %v6110_v40  ;;  %v1510_v56 = vpop.f32.mrb[23].mxu1  ;;  %2036 = vmatprep.mubr.bf16.mxu0 %v1814_v51  ;;  %vm1633_vm4 = vcmp.gt.f32.partialorder %v1505_v49, 0.0 }
 0x20f   : > { %v1698_v57 = vmul.f32 0.1, %v1507_v52  ;;  %v1511_v58 = vadd.f32 %v1510_v56, %v6113_v60  ;;  %2037 = vmatmul.mubr.bf16.gmra.mrb[80].mxu0 %v1813_v48  ;;  %vm1634_vm5 = vcmp.gt.f32.partialorder %v1507_v52, 0.0 }
 0x210   : > { %vm1635_vm6 = vcmp.gt.f32.partialorder %v1509_v55, 0.0  ;;  %v1699_v59 = vmul.f32 0.1, %v1509_v55  ;;  %v1761_v61 = vsel %vm1633_vm4, %v1505_v49, %v1697_v54 }
 0x211   : > { %vm1636_vm7 = vcmp.gt.f32.partialorder %v1511_v58, 0.0  ;;  %v1700_v39 = vmul.f32 0.1, %v1511_v58  ;;  %v1762_v0 = vsel %vm1634_vm5, %v1507_v52, %v1698_v57 }
 0x212   : > { %v1763_v62 = vsel %vm1635_vm6, %v1509_v55, %v1699_v59 }
 0x213   : > { %v1514_v63 = vpop.f32.mrb[24].mxu1  ;;  %v1764_v1 = vsel %vm1636_vm7, %v1511_v58, %v1700_v39  ;;  %v1815_v3 = vpack.c.bf16 %v1763_v62, %v1761_v61 }
 0x214   : > { %v1515_v4 = vadd.f32 %v1514_v63, %v6110_v40  ;;  %v1516_v5 = vpop.f32.mrb[25].mxu1  ;;  %v1816_v6 = vpack.c.bf16 %v1764_v1, %v1762_v0 }
 0x215   : > { %v1517_v7 = vadd.f32 %v1516_v5, %v6113_v60  ;;  %v1518_v8 = vpop.f32.mrb[26].mxu1 }
 0x216   : > { %v1701_v9 = vmul.f32 0.1, %v1515_v4  ;;  %v1519_v10 = vadd.f32 %v1518_v8, %v6110_v40  ;;  %v1520_v11 = vpop.f32.mrb[27].mxu1  ;;  %2044 = vmatprep.mubr.bf16.mxu0 %v1816_v6  ;;  %vm1637_vm8 = vcmp.gt.f32.partialorder %v1515_v4, 0.0 }
 0x217   : > { %v1702_v12 = vmul.f32 0.1, %v1517_v7  ;;  %v1521_v13 = vadd.f32 %v1520_v11, %v6113_v60  ;;  %2045 = vmatmul.mubr.bf16.gmra.mrb[84].mxu0 %v1815_v3  ;;  %vm1638_vm9 = vcmp.gt.f32.partialorder %v1517_v7, 0.0 }
 0x218   : > { %vm1639_vm10 = vcmp.gt.f32.partialorder %v1519_v10, 0.0  ;;  %v1703_v14 = vmul.f32 0.1, %v1519_v10  ;;  %v1765_v16 = vsel %vm1637_vm8, %v1515_v4, %v1701_v9 }
 0x219   : > { %vm1640_vm11 = vcmp.gt.f32.partialorder %v1521_v13, 0.0  ;;  %v1704_v15 = vmul.f32 0.1, %v1521_v13  ;;  %v1766_v19 = vsel %vm1638_vm9, %v1517_v7, %v1702_v12 }
 0x21a   : > { %v1767_v17 = vsel %vm1639_vm10, %v1519_v10, %v1703_v14 }
 0x21b   : > { %v1524_v18 = vpop.f32.mrb[28].mxu1  ;;  %v1768_v20 = vsel %vm1640_vm11, %v1521_v13, %v1704_v15  ;;  %v1817_v21 = vpack.c.bf16 %v1767_v17, %v1765_v16 }
 0x21c   : > { %v1525_v22 = vadd.f32 %v1524_v18, %v6110_v40  ;;  %v1526_v23 = vpop.f32.mrb[29].mxu1  ;;  %v1818_v24 = vpack.c.bf16 %v1768_v20, %v1766_v19 }
 0x21d   : > { %v1527_v25 = vadd.f32 %v1526_v23, %v6113_v60  ;;  %v1528_v26 = vpop.f32.mrb[30].mxu1 }
 0x21e   : > { %v1705_v27 = vmul.f32 0.1, %v1525_v22  ;;  %v1529_v28 = vadd.f32 %v1528_v26, %v6110_v40  ;;  %v1530_v29 = vpop.f32.mrb[31].mxu1  ;;  %2052 = vmatprep.mubr.bf16.mxu0 %v1818_v24  ;;  %vm1641_vm12 = vcmp.gt.f32.partialorder %v1525_v22, 0.0 }
 0x21f   : > { %v1706_v30 = vmul.f32 0.1, %v1527_v25  ;;  %v1531_v31 = vadd.f32 %v1530_v29, %v6113_v60  ;;  %2053 = vmatmul.mubr.bf16.gmra.mrb[88].mxu0 %v1817_v21  ;;  %vm1642_vm13 = vcmp.gt.f32.partialorder %v1527_v25, 0.0 }
 0x220   : > { %vm1643_vm14 = vcmp.gt.f32.partialorder %v1529_v28, 0.0  ;;  %v1707_v32 = vmul.f32 0.1, %v1529_v28  ;;  %v1769_v37 = vsel %vm1641_vm12, %v1525_v22, %v1705_v27 }
 0x221   : > { %vm1644_vm15 = vcmp.gt.f32.partialorder %v1531_v31, 0.0  ;;  %v1708_v33 = vmul.f32 0.1, %v1531_v31  ;;  %v1770_v43 = vsel %vm1642_vm13, %v1527_v25, %v1706_v30 }
 0x222   : > { %v1771_v41 = vsel %vm1643_vm14, %v1529_v28, %v1707_v32 }
 0x223   : > { %v1534_v42 = vpop.f32.mrb[32].mxu1  ;;  %v1772_v44 = vsel %vm1644_vm15, %v1531_v31, %v1708_v33  ;;  %v1819_v45 = vpack.c.bf16 %v1771_v41, %v1769_v37 }
 0x224   : > { %v1535_v46 = vadd.f32 %v1534_v42, %v6110_v40  ;;  %v1536_v47 = vpop.f32.mrb[33].mxu1  ;;  %v1820_v48 = vpack.c.bf16 %v1772_v44, %v1770_v43 }
 0x225   : > { %v1537_v49 = vadd.f32 %v1536_v47, %v6113_v60  ;;  %v1538_v50 = vpop.f32.mrb[34].mxu1 }
 0x226   : > { %v1709_v51 = vmul.f32 0.1, %v1535_v46  ;;  %v1539_v52 = vadd.f32 %v1538_v50, %v6110_v40  ;;  %v1540_v53 = vpop.f32.mrb[35].mxu1  ;;  %2060 = vmatprep.mubr.bf16.mxu0 %v1820_v48  ;;  %vm1645_vm0 = vcmp.gt.f32.partialorder %v1535_v46, 0.0 }
 0x227   : > { %v1710_v54 = vmul.f32 0.1, %v1537_v49  ;;  %v1541_v55 = vadd.f32 %v1540_v53, %v6113_v60  ;;  %2061 = vmatmul.mubr.bf16.gmra.mrb[92].mxu0 %v1819_v45  ;;  %vm1646_vm1 = vcmp.gt.f32.partialorder %v1537_v49, 0.0 }
 0x228   : > { %vm1647_vm2 = vcmp.gt.f32.partialorder %v1539_v52, 0.0  ;;  %v1711_v56 = vmul.f32 0.1, %v1539_v52  ;;  %v1773_v58 = vsel %vm1645_vm0, %v1535_v46, %v1709_v51 }
 0x229   : > { %vm1648_vm3 = vcmp.gt.f32.partialorder %v1541_v55, 0.0  ;;  %v1712_v57 = vmul.f32 0.1, %v1541_v55  ;;  %v1774_v61 = vsel %vm1646_vm1, %v1537_v49, %v1710_v54 }
 0x22a   : > { %v1775_v59 = vsel %vm1647_vm2, %v1539_v52, %v1711_v56 }
 0x22b   : > { %v1544_v39 = vpop.f32.mrb[36].mxu1  ;;  %v1776_v62 = vsel %vm1648_vm3, %v1541_v55, %v1712_v57  ;;  %v1821_v63 = vpack.c.bf16 %v1775_v59, %v1773_v58  ;;  %v5475_v57 = vld [vmem:[%s6958_s10 + $0x64] ss:$8 sps:$4 sm:$0xff]  }
 0x22c   : > { %v1545_v0 = vadd.f32 %v1544_v39, %v6110_v40  ;;  %v1546_v1 = vpop.f32.mrb[37].mxu1  ;;  %v1822_v3 = vpack.c.bf16 %v1776_v62, %v1774_v61  ;;  %v5473_v62 = vld [vmem:[%s6958_s10 + $0x60] ss:$8 sps:$4 sm:$0xff]   ;;  %2413 = vmatprep.subr.bf16.mxu1 %v5475_v57 }
 0x22d   : > { %v1547_v4 = vadd.f32 %v1546_v1, %v6113_v60  ;;  %v1548_v5 = vpop.f32.mrb[38].mxu1  ;;  %2414 = vmatpush1.bf16.msra.mxu1 %v5473_v62 }
 0x22e   : > { %v1713_v6 = vmul.f32 0.1, %v1545_v0  ;;  %v1549_v7 = vadd.f32 %v1548_v5, %v6110_v40  ;;  %v1550_v8 = vpop.f32.mrb[39].mxu1  ;;  %2068 = vmatprep.mubr.bf16.mxu0 %v1822_v3  ;;  %vm1649_vm4 = vcmp.gt.f32.partialorder %v1545_v0, 0.0 }
 0x22f   : > { %v1714_v9 = vmul.f32 0.1, %v1547_v4  ;;  %v1551_v10 = vadd.f32 %v1550_v8, %v6113_v60  ;;  %2069 = vmatmul.mubr.bf16.gmra.mrb[96].mxu0 %v1821_v63  ;;  %vm1650_vm5 = vcmp.gt.f32.partialorder %v1547_v4, 0.0 }
 0x230   : > { %vm1651_vm6 = vcmp.gt.f32.partialorder %v1549_v7, 0.0  ;;  %v1715_v11 = vmul.f32 0.1, %v1549_v7  ;;  %v1777_v13 = vsel %vm1649_vm4, %v1545_v0, %v1713_v6 }
 0x231   : > { %vm1652_vm7 = vcmp.gt.f32.partialorder %v1551_v10, 0.0  ;;  %v1716_v12 = vmul.f32 0.1, %v1551_v10  ;;  %v1778_v16 = vsel %vm1650_vm5, %v1547_v4, %v1714_v9 }
 0x232   : > { %v1779_v14 = vsel %vm1651_vm6, %v1549_v7, %v1715_v11 }
 0x233   : > { %v1554_v15 = vpop.f32.mrb[40].mxu1  ;;  %v1780_v17 = vsel %vm1652_vm7, %v1551_v10, %v1716_v12  ;;  %v1823_v18 = vpack.c.bf16 %v1779_v14, %v1777_v13  ;;  %v5476_v10 = vld [vmem:[%s6958_s10 + $0x70] ss:$8 sps:$4 sm:$0xff]   ;;  %v5478_v12 = vld [vmem:[%s6958_s10 + $0x74] ss:$8 sps:$4 sm:$0xff]  }
 0x234   : > { %v1555_v19 = vadd.f32 %v1554_v15, %v6110_v40  ;;  %v1556_v20 = vpop.f32.mrb[41].mxu1  ;;  %v1824_v21 = vpack.c.bf16 %v1780_v17, %v1778_v16  ;;  %2415 = vmatprep.subr.bf16.mxu1 %v5478_v12 }
 0x235   : > { %v1557_v22 = vadd.f32 %v1556_v20, %v6113_v60  ;;  %v1558_v23 = vpop.f32.mrb[42].mxu1  ;;  %2416 = vmatpush1.bf16.msra.mxu1 %v5476_v10 }
 0x236   : > { %v1717_v24 = vmul.f32 0.1, %v1555_v19  ;;  %v1559_v25 = vadd.f32 %v1558_v23, %v6110_v40  ;;  %v1560_v26 = vpop.f32.mrb[43].mxu1  ;;  %2076 = vmatprep.mubr.bf16.mxu0 %v1824_v21  ;;  %vm1653_vm8 = vcmp.gt.f32.partialorder %v1555_v19, 0.0 }
 0x237   : > { %v1718_v27 = vmul.f32 0.1, %v1557_v22  ;;  %v1561_v28 = vadd.f32 %v1560_v26, %v6113_v60  ;;  %2077 = vmatmul.mubr.bf16.gmra.mrb[100].mxu0 %v1823_v18  ;;  %vm1654_vm9 = vcmp.gt.f32.partialorder %v1557_v22, 0.0 }
 0x238   : > { %vm1655_vm10 = vcmp.gt.f32.partialorder %v1559_v25, 0.0  ;;  %v1719_v29 = vmul.f32 0.1, %v1559_v25  ;;  %v1781_v31 = vsel %vm1653_vm8, %v1555_v19, %v1717_v24 }
 0x239   : > { %vm1656_vm11 = vcmp.gt.f32.partialorder %v1561_v28, 0.0  ;;  %v1720_v30 = vmul.f32 0.1, %v1561_v28  ;;  %v1782_v37 = vsel %vm1654_vm9, %v1557_v22, %v1718_v27 }
 0x23a   : > { %v1783_v32 = vsel %vm1655_vm10, %v1559_v25, %v1719_v29 }
 0x23b   : > { %v1564_v33 = vpop.f32.mrb[44].mxu1  ;;  %v1784_v41 = vsel %vm1656_vm11, %v1561_v28, %v1720_v30  ;;  %v1825_v42 = vpack.c.bf16 %v1783_v32, %v1781_v31 }
 0x23c   : > { %v1565_v43 = vadd.f32 %v1564_v33, %v6110_v40  ;;  %v1566_v44 = vpop.f32.mrb[45].mxu1  ;;  %v1826_v45 = vpack.c.bf16 %v1784_v41, %v1782_v37 }
 0x23d   : > { %v1567_v46 = vadd.f32 %v1566_v44, %v6113_v60  ;;  %v1568_v47 = vpop.f32.mrb[46].mxu1 }
 0x23e   : > { %v1721_v48 = vmul.f32 0.1, %v1565_v43  ;;  %v1569_v49 = vadd.f32 %v1568_v47, %v6110_v40  ;;  %v1570_v50 = vpop.f32.mrb[47].mxu1  ;;  %2084 = vmatprep.mubr.bf16.mxu0 %v1826_v45  ;;  %vm1657_vm12 = vcmp.gt.f32.partialorder %v1565_v43, 0.0 }
 0x23f   : > { %v1722_v51 = vmul.f32 0.1, %v1567_v46  ;;  %v1571_v52 = vadd.f32 %v1570_v50, %v6113_v60  ;;  %2085 = vmatmul.mubr.bf16.gmra.mrb[104].mxu0 %v1825_v42  ;;  %vm1658_vm13 = vcmp.gt.f32.partialorder %v1567_v46, 0.0 }
 0x240   : > { %vm1659_vm14 = vcmp.gt.f32.partialorder %v1569_v49, 0.0  ;;  %v1723_v53 = vmul.f32 0.1, %v1569_v49  ;;  %v1785_v55 = vsel %vm1657_vm12, %v1565_v43, %v1721_v48 }
 0x241   : > { %vm1660_vm15 = vcmp.gt.f32.partialorder %v1571_v52, 0.0  ;;  %v1724_v54 = vmul.f32 0.1, %v1571_v52  ;;  %v1786_v59 = vsel %vm1658_vm13, %v1567_v46, %v1722_v51 }
 0x242   : > { %v1787_v56 = vsel %vm1659_vm14, %v1569_v49, %v1723_v53 }
 0x243   : > { %v1574_v58 = vpop.f32.mrb[48].mxu1  ;;  %v1788_v39 = vsel %vm1660_vm15, %v1571_v52, %v1724_v54  ;;  %v1827_v61 = vpack.c.bf16 %v1787_v56, %v1785_v55 }
 0x244   : > { %v1575_v63 = vadd.f32 %v1574_v58, %v6110_v40  ;;  %v1576_v0 = vpop.f32.mrb[49].mxu1  ;;  %v1828_v1 = vpack.c.bf16 %v1788_v39, %v1786_v59 }
 0x245   : > { %v1577_v3 = vadd.f32 %v1576_v0, %v6113_v60  ;;  %v1578_v4 = vpop.f32.mrb[50].mxu1 }
 0x246   : > { %v1725_v5 = vmul.f32 0.1, %v1575_v63  ;;  %v1579_v6 = vadd.f32 %v1578_v4, %v6110_v40  ;;  %v1580_v7 = vpop.f32.mrb[51].mxu1  ;;  %2092 = vmatprep.mubr.bf16.mxu0 %v1828_v1  ;;  %vm1661_vm0 = vcmp.gt.f32.partialorder %v1575_v63, 0.0 }
 0x247   : > { %v1726_v8 = vmul.f32 0.1, %v1577_v3  ;;  %v1581_v9 = vadd.f32 %v1580_v7, %v6113_v60  ;;  %2093 = vmatmul.mubr.bf16.gmra.mrb[108].mxu0 %v1827_v61  ;;  %vm1662_vm1 = vcmp.gt.f32.partialorder %v1577_v3, 0.0 }
 0x248   : > { %vm1663_vm2 = vcmp.gt.f32.partialorder %v1579_v6, 0.0  ;;  %v1727_v11 = vmul.f32 0.1, %v1579_v6  ;;  %v1789_v14 = vsel %vm1661_vm0, %v1575_v63, %v1725_v5 }
 0x249   : > { %vm1664_vm3 = vcmp.gt.f32.partialorder %v1581_v9, 0.0  ;;  %v1728_v13 = vmul.f32 0.1, %v1581_v9  ;;  %v1790_v17 = vsel %vm1662_vm1, %v1577_v3, %v1726_v8 }
 0x24a   : > { %v1791_v15 = vsel %vm1663_vm2, %v1579_v6, %v1727_v11 }
 0x24b   : > { %v1584_v16 = vpop.f32.mrb[52].mxu1  ;;  %v1792_v18 = vsel %vm1664_vm3, %v1581_v9, %v1728_v13  ;;  %v1829_v19 = vpack.c.bf16 %v1791_v15, %v1789_v14 }
 0x24c   : > { %v1585_v20 = vadd.f32 %v1584_v16, %v6110_v40  ;;  %v1586_v21 = vpop.f32.mrb[53].mxu1  ;;  %v1830_v22 = vpack.c.bf16 %v1792_v18, %v1790_v17 }
 0x24d   : > { %v1587_v23 = vadd.f32 %v1586_v21, %v6113_v60  ;;  %v1588_v24 = vpop.f32.mrb[54].mxu1  ;;  %v6236_v21 = vld [vmem:[%s6957_s9] ss:$0 sm:$0xff] }
 0x24e   : > { %v1729_v25 = vmul.f32 0.1, %v1585_v20  ;;  %v1589_v26 = vadd.f32 %v1588_v24, %v6110_v40  ;;  %v1590_v27 = vpop.f32.mrb[55].mxu1  ;;  %2100 = vmatprep.mubr.bf16.mxu0 %v1830_v22  ;;  %vm1665_vm4 = vcmp.gt.f32.partialorder %v1585_v20, 0.0 }
 0x24f   : > { %v1730_v28 = vmul.f32 0.1, %v1587_v23  ;;  %v1591_v29 = vadd.f32 %v1590_v27, %v6113_v60  ;;  %2101 = vmatmul.mubr.bf16.gmra.mrb[112].mxu0 %v1829_v19  ;;  %vm1666_vm5 = vcmp.gt.f32.partialorder %v1587_v23, 0.0  ;;  %v5479_v19 = vld [vmem:[%s6960_s12] ss:$8 sps:$4 sm:$0xff]  }
 0x250   : > { %vm1667_vm6 = vcmp.gt.f32.partialorder %v1589_v26, 0.0  ;;  %v1731_v30 = vmul.f32 0.1, %v1589_v26  ;;  %v1793_v32 = vsel %vm1665_vm4, %v1585_v20, %v1729_v25  ;;  %v5481_v20 = vld [vmem:[%s6960_s12 + $0x4] ss:$8 sps:$4 sm:$0xff]  }
 0x251   : > { %vm1668_vm7 = vcmp.gt.f32.partialorder %v1591_v29, 0.0  ;;  %v1732_v31 = vmul.f32 0.1, %v1591_v29  ;;  %v1794_v41 = vsel %vm1666_vm5, %v1587_v23, %v1730_v28  ;;  %v5484_v23 = vld [vmem:[%s6960_s12 + $0x14] ss:$8 sps:$4 sm:$0xff]   ;;  %3022 = vmatprep.subr.bf16.mxu0 %v5481_v20 }
 0x252   : > { %v1795_v33 = vsel %vm1667_vm6, %v1589_v26, %v1731_v30  ;;  %3023 = vmatpush1.bf16.msra.mxu0 %v5479_v19  ;;  %v5482_v25 = vld [vmem:[%s6960_s12 + $0x10] ss:$8 sps:$4 sm:$0xff]   ;;  %v5487_v28 = vld [vmem:[%s6960_s12 + $0x24] ss:$8 sps:$4 sm:$0xff]  }
 0x253   : > { %v1594_v37 = vpop.f32.mrb[56].mxu1  ;;  %v1796_v42 = vsel %vm1668_vm7, %v1591_v29, %v1732_v31  ;;  %v1831_v43 = vpack.c.bf16 %v1795_v33, %v1793_v32  ;;  %3024 = vmatprep.subr.bf16.mxu0 %v5484_v23  ;;  %v5485_v32 = vld [vmem:[%s6960_s12 + $0x20] ss:$8 sps:$4 sm:$0xff]  }
 0x254   : > { %v1595_v44 = vadd.f32 %v1594_v37, %v6110_v40  ;;  %v1596_v45 = vpop.f32.mrb[57].mxu1  ;;  %v1832_v46 = vpack.c.bf16 %v1796_v42, %v1794_v41  ;;  %v5490_v41 = vld [vmem:[%s6960_s12 + $0x34] ss:$8 sps:$4 sm:$0xff]  }
 0x255   : > { %v1597_v47 = vadd.f32 %v1596_v45, %v6113_v60  ;;  %v1598_v48 = vpop.f32.mrb[58].mxu1 }
 0x256   : > { %v1733_v49 = vmul.f32 0.1, %v1595_v44  ;;  %v1599_v50 = vadd.f32 %v1598_v48, %v6110_v40  ;;  %v1600_v51 = vpop.f32.mrb[59].mxu1  ;;  %2108 = vmatprep.mubr.bf16.mxu0 %v1832_v46  ;;  %vm1669_vm8 = vcmp.gt.f32.partialorder %v1595_v44, 0.0  ;;  %3025 = vmatpush1.bf16.msra.mxu0 %v5482_v25 }
 0x257   : > { %v1734_v52 = vmul.f32 0.1, %v1597_v47  ;;  %v1601_v53 = vadd.f32 %v1600_v51, %v6113_v60  ;;  %2109 = vmatmul.mubr.bf16.gmra.mrb[116].mxu0 %v1831_v43  ;;  %vm1670_vm9 = vcmp.gt.f32.partialorder %v1597_v47, 0.0  ;;  %3026 = vmatprep.subr.bf16.mxu0 %v5487_v28  ;;  %v5491_v51 = vld [vmem:[%s6960_s12 + $0x40] ss:$8 sps:$4 sm:$0xff]  }
 0x258   : > { %vm1671_vm10 = vcmp.gt.f32.partialorder %v1599_v50, 0.0  ;;  %v1735_v54 = vmul.f32 0.1, %v1599_v50  ;;  %v1797_v56 = vsel %vm1669_vm8, %v1595_v44, %v1733_v49  ;;  %v5488_v44 = vld [vmem:[%s6960_s12 + $0x30] ss:$8 sps:$4 sm:$0xff]  }
 0x259   : > { %vm1672_vm11 = vcmp.gt.f32.partialorder %v1601_v53, 0.0  ;;  %v1736_v55 = vmul.f32 0.1, %v1601_v53  ;;  %v1798_v59 = vsel %vm1670_vm9, %v1597_v47, %v1734_v52  ;;  %v5493_v47 = vld [vmem:[%s6960_s12 + $0x44] ss:$8 sps:$4 sm:$0xff]  }
 0x25a   : > { %v1799_v57 = vsel %vm1671_vm10, %v1599_v50, %v1735_v54  ;;  %3027 = vmatpush1.bf16.msra.mxu0 %v5485_v32  ;;  %v5496_v54 = vld [vmem:[%s6960_s12 + $0x54] ss:$8 sps:$4 sm:$0xff]   ;;  %v5512_v32 = vld [vmem:[%s6960_s12 + $0xb0] ss:$8 sps:$4 sm:$0xff]  }
 0x25b   : > { %v1604_v58 = vpop.f32.mrb[60].mxu1  ;;  %v1800_v39 = vsel %vm1672_vm11, %v1601_v53, %v1736_v55  ;;  %v1833_v61 = vpack.c.bf16 %v1799_v57, %v1797_v56  ;;  %3028 = vmatprep.subr.bf16.mxu0 %v5490_v41  ;;  %v5494_v57 = vld [vmem:[%s6960_s12 + $0x50] ss:$8 sps:$4 sm:$0xff]   ;;  %v5517_v41 = vld [vmem:[%s6960_s12 + $0xc4] ss:$8 sps:$4 sm:$0xff]  }
 0x25c   : > { %v1605_v62 = vadd.f32 %v1604_v58, %v6110_v40  ;;  %v1606_v63 = vpop.f32.mrb[61].mxu1  ;;  %v1834_v0 = vpack.c.bf16 %v1800_v39, %v1798_v59  ;;  %v5499_v39 = vld [vmem:[%s6960_s12 + $0x64] ss:$8 sps:$4 sm:$0xff]  }
 0x25d   : > { %v1607_v1 = vadd.f32 %v1606_v63, %v6113_v60  ;;  %v1608_v3 = vpop.f32.mrb[62].mxu1 }
 0x25e   : > { %v1737_v4 = vmul.f32 0.1, %v1605_v62  ;;  %v1609_v5 = vadd.f32 %v1608_v3, %v6110_v40  ;;  %v1610_v6 = vpop.f32.mrb[63].mxu1  ;;  %2116 = vmatprep.mubr.bf16.mxu0 %v1834_v0  ;;  %vm1673_vm12 = vcmp.gt.f32.partialorder %v1605_v62, 0.0  ;;  %3029 = vmatpush1.bf16.msra.mxu0 %v5488_v44  ;;  %v5497_v0 = vld [vmem:[%s6960_s12 + $0x60] ss:$8 sps:$4 sm:$0xff]  }
 0x25f   : > { %v1738_v7 = vmul.f32 0.1, %v1607_v1  ;;  %v1611_v8 = vadd.f32 %v1610_v6, %v6113_v60  ;;  %2117 = vmatmul.mubr.bf16.gmra.mrb[120].mxu0 %v1833_v61  ;;  %vm1674_vm13 = vcmp.gt.f32.partialorder %v1607_v1, 0.0  ;;  %3030 = vmatprep.subr.bf16.mxu0 %v5493_v47 }
 0x260   : > { %vm1675_vm14 = vcmp.gt.f32.partialorder %v1609_v5, 0.0  ;;  %v1739_v9 = vmul.f32 0.1, %v1609_v5  ;;  %v1801_v11 = vsel %vm1673_vm12, %v1605_v62, %v1737_v4  ;;  %v5502_v4 = vld [vmem:[%s6960_s12 + $0x74] ss:$8 sps:$4 sm:$0xff]  }
 0x261   : > { %vm1676_vm15 = vcmp.gt.f32.partialorder %v1611_v8, 0.0  ;;  %v1740_v10 = vmul.f32 0.1, %v1611_v8  ;;  %v1802_v13 = vsel %vm1674_vm13, %v1607_v1, %v1738_v7  ;;  %v5500_v7 = vld [vmem:[%s6960_s12 + $0x70] ss:$8 sps:$4 sm:$0xff]  }
 0x262   : > { %v1803_v12 = vsel %vm1675_vm14, %v1609_v5, %v1739_v9  ;;  %3031 = vmatpush1.bf16.msra.mxu0 %v5491_v51 }
 0x263   : > { %v1804_v14 = vsel %vm1676_vm15, %v1611_v8, %v1740_v10  ;;  %v1835_v15 = vpack.c.bf16 %v1803_v12, %v1801_v11  ;;  %3032 = vmatprep.subr.bf16.mxu0 %v5496_v54  ;;  %v5505_v10 = vld [vmem:[%s6960_s12 + $0x84] ss:$8 sps:$4 sm:$0xff]  }
 0x264   : > { %v1836_v16 = vpack.c.bf16 %v1804_v14, %v1802_v13  ;;  %v5503_v14 = vld [vmem:[%s6960_s12 + $0x80] ss:$8 sps:$4 sm:$0xff]  }
 0x266   : > { %2124 = vmatprep.mubr.bf16.mxu0 %v1836_v16  ;;  %3033 = vmatpush1.bf16.msra.mxu0 %v5494_v57 }
 0x267   : > { %2125 = vmatmul.mubr.bf16.gmra.mrb[124].mxu0 %v1835_v15  ;;  %3034 = vmatprep.subr.bf16.mxu0 %v5499_v39 }
 0x26a   : > { %3035 = vmatpush1.bf16.msra.mxu0 %v5497_v0 }
 0x26b   : > { %3036 = vmatprep.subr.bf16.mxu0 %v5502_v4 }
 0x26e   : > { %3037 = vmatpush1.bf16.msra.mxu0 %v5500_v7 }
 0x26f   : > { %3038 = vmatprep.subr.bf16.mxu0 %v5505_v10 }
 0x272   : > { %3039 = vmatpush1.bf16.msra.mxu0 %v5503_v14 }
 0x2c2   : > { %v4950_v40 = vpop.f32.mrb[64].mxu0 }
 0x2c3   : > { %v4951_v17 = vpop.f32.mrb[65].mxu0 }
 0x2c4   : > { %v4952_v18 = vadd.f32 %v4951_v17, %v4950_v40  ;;  %v4953_v60 = vpop.f32.mrb[66].mxu0  ;;  %v5508_v40 = vld [vmem:[%s6960_s12 + $0x94] ss:$8 sps:$4 sm:$0xff]  }
 0x2c5   : > { %v4954_v22 = vpop.f32.mrb[67].mxu0  ;;  %3040 = vmatprep.subr.bf16.mxu0 %v5508_v40 }
 0x2c6   : > { %v4955_v24 = vadd.f32 %v4954_v22, %v4953_v60  ;;  %v2007_v26 = vadd.f32 %v4952_v18, %v6236_v21  ;;  %v5506_v60 = vld [vmem:[%s6960_s12 + $0x90] ss:$8 sps:$4 sm:$0xff]   ;;  %v5511_v22 = vld [vmem:[%s6960_s12 + $0xa4] ss:$8 sps:$4 sm:$0xff]  }
 0x2c7   : > { %3041 = vmatpush1.bf16.msra.mxu0 %v5506_v60 }
 0x2c8   : > { %v2010_v27 = vadd.f32 %v4955_v24, %v6236_v21  ;;  %3042 = vmatprep.subr.bf16.mxu0 %v5511_v22 }
 0x2ca   : > { %v2133_v29 = vpack.c.bf16 %v2010_v27, %v2007_v26  ;;  %v4956_v30 = vpop.f32.mrb[68].mxu0  ;;  %v5509_v26 = vld [vmem:[%s6960_s12 + $0xa0] ss:$8 sps:$4 sm:$0xff]  }
 0x2cb   : > { %v4957_v31 = vpop.f32.mrb[69].mxu0  ;;  %3043 = vmatpush1.bf16.msra.mxu0 %v5509_v26 }
 0x2cc   : > { %4748 = vst [vmem:[%s6255_s24] sm:$0xff] %v2133_v29   ;;  %v4958_v33 = vadd.f32 %v4957_v31, %v4956_v30  ;;  %v4959_v37 = vpop.f32.mrb[70].mxu0  ;;  %2434 = vmatmul.mubr.bf16.vlgmr.msra.gmra.mrb[64].mxu1 %v2133_v29  ;;  %v5514_v29 = vld [vmem:[%s6960_s12 + $0xb4] ss:$8 sps:$4 sm:$0xff]  }
 0x2cd   : > { %v4960_v42 = vpop.f32.mrb[71].mxu0  ;;  %2443 = vmatprep.mubr.bf16.mxu1 %v5655_v2  ;;  %3044 = vmatprep.subr.bf16.mxu0 %v5514_v29 }
 0x2ce   : > { %v4961_v43 = vadd.f32 %v4960_v42, %v4959_v37  ;;  %v2015_v45 = vadd.f32 %v4958_v33, %v6236_v21 }
 0x2cf   : > { %3045 = vmatpush1.bf16.msra.mxu0 %v5512_v32  ;;  %v5518_v32 = vld [vmem:[%s6960_s12 + $0xd0] ss:$8 sps:$4 sm:$0xff]  }
 0x2d0   : > { %v2018_v46 = vadd.f32 %v4961_v43, %v6236_v21  ;;  %3046 = vmatprep.subr.bf16.mxu0 %v5517_v41  ;;  %v5523_v41 = vld [vmem:[%s6960_s12 + $0xe4] ss:$8 sps:$4 sm:$0xff]  }
 0x2d2   : > { %v4962_v48 = vpop.f32.mrb[72].mxu0  ;;  %v2134_v49 = vpack.c.bf16 %v2018_v46, %v2015_v45  ;;  %v5515_v45 = vld [vmem:[%s6960_s12 + $0xc0] ss:$8 sps:$4 sm:$0xff]  }
 0x2d3   : > { %v4963_v50 = vpop.f32.mrb[73].mxu0  ;;  %3047 = vmatpush1.bf16.msra.mxu0 %v5515_v45 }
 0x2d4   : > { %v4964_v52 = vadd.f32 %v4963_v50, %v4962_v48  ;;  %v4965_v53 = vpop.f32.mrb[74].mxu0  ;;  %4904 = vst [vmem:[%s6255_s24 + $0x8] sm:$0xff] %v2134_v49   ;;  %2444 = vmatmul.mubr.bf16.gmra.mrb[68].mxu1 %v2134_v49 }
 0x2d5   : > { %v4966_v55 = vpop.f32.mrb[75].mxu0  ;;  %2453 = vmatprep.mubr.bf16.mxu1 %v5655_v2 }
 0x2d6   : > { %v4967_v56 = vadd.f32 %v4966_v55, %v4965_v53  ;;  %v2023_v58 = vadd.f32 %v4964_v52, %v6236_v21 }
 0x2d8   : > { %v2026_v59 = vadd.f32 %v4967_v56, %v6236_v21 }
 0x2da   : > { %v4968_v61 = vpop.f32.mrb[76].mxu0  ;;  %v2135_v62 = vpack.c.bf16 %v2026_v59, %v2023_v58 }
 0x2db   : > { %v4969_v63 = vpop.f32.mrb[77].mxu0 }
 0x2dc   : > { %v4970_v1 = vadd.f32 %v4969_v63, %v4968_v61  ;;  %v4971_v3 = vpop.f32.mrb[78].mxu0  ;;  %4905 = vst [vmem:[%s6255_s24 + $0x10] sm:$0xff] %v2135_v62   ;;  %2454 = vmatmul.mubr.bf16.gmra.mrb[72].mxu1 %v2135_v62 }
 0x2dd   : > { %v4972_v5 = vpop.f32.mrb[79].mxu0  ;;  %2463 = vmatprep.mubr.bf16.mxu1 %v5655_v2 }
 0x2de   : > { %v4973_v6 = vadd.f32 %v4972_v5, %v4971_v3  ;;  %v2031_v8 = vadd.f32 %v4970_v1, %v6236_v21 }
 0x2e0   : > { %v2034_v9 = vadd.f32 %v4973_v6, %v6236_v21 }
 0x2e2   : > { %v4974_v11 = vpop.f32.mrb[80].mxu0  ;;  %v2136_v12 = vpack.c.bf16 %v2034_v9, %v2031_v8 }
 0x2e3   : > { %v4975_v13 = vpop.f32.mrb[81].mxu0 }
 0x2e4   : > { %v4976_v15 = vadd.f32 %v4975_v13, %v4974_v11  ;;  %v4977_v16 = vpop.f32.mrb[82].mxu0  ;;  %4906 = vst [vmem:[%s6255_s24 + $0x18] sm:$0xff] %v2136_v12   ;;  %2464 = vmatmul.mubr.bf16.gmra.mrb[76].mxu1 %v2136_v12 }
 0x2e5   : > { %v4978_v17 = vpop.f32.mrb[83].mxu0  ;;  %2473 = vmatprep.mubr.bf16.mxu1 %v5655_v2 }
 0x2e6   : > { %v4979_v18 = vadd.f32 %v4978_v17, %v4977_v16  ;;  %v2039_v19 = vadd.f32 %v4976_v15, %v6236_v21 }
 0x2e8   : > { %v2042_v20 = vadd.f32 %v4979_v18, %v6236_v21 }
 0x2ea   : > { %v4980_v23 = vpop.f32.mrb[84].mxu0  ;;  %v2137_v24 = vpack.c.bf16 %v2042_v20, %v2039_v19 }
 0x2eb   : > { %v4981_v25 = vpop.f32.mrb[85].mxu0 }
 0x2ec   : > { %v4982_v27 = vadd.f32 %v4981_v25, %v4980_v23  ;;  %v4983_v28 = vpop.f32.mrb[86].mxu0  ;;  %4907 = vst [vmem:[%s6255_s24 + $0x20] sm:$0xff] %v2137_v24   ;;  %2474 = vmatmul.mubr.bf16.gmra.mrb[80].mxu1 %v2137_v24 }
 0x2ed   : > { %v4984_v30 = vpop.f32.mrb[87].mxu0  ;;  %2483 = vmatprep.mubr.bf16.mxu1 %v5655_v2 }
 0x2ee   : > { %v4985_v31 = vadd.f32 %v4984_v30, %v4983_v28  ;;  %v2047_v33 = vadd.f32 %v4982_v27, %v6236_v21  ;;  %v5520_v30 = vld [vmem:[%s6960_s12 + $0xd4] ss:$8 sps:$4 sm:$0xff]  }
 0x2ef   : > { %3048 = vmatprep.subr.bf16.mxu0 %v5520_v30  ;;  %v5528_v30 = vld [vmem:[%s6962_s14] sm:$0xff]  }
 0x2f0   : > { %v2050_v37 = vadd.f32 %v4985_v31, %v6236_v21  ;;  %3049 = vmatpush1.bf16.msra.mxu0 %v5518_v32 }
 0x2f1   : > { %3050 = vmatprep.subr.bf16.mxu0 %v5523_v41 }
 0x2f2   : > { %v4986_v42 = vpop.f32.mrb[88].mxu0  ;;  %v2138_v43 = vpack.c.bf16 %v2050_v37, %v2047_v33 }
 0x2f3   : > { %v4987_v44 = vpop.f32.mrb[89].mxu0 }
 0x2f4   : > { %v4988_v46 = vadd.f32 %v4987_v44, %v4986_v42  ;;  %v4989_v47 = vpop.f32.mrb[90].mxu0  ;;  %4908 = vst [vmem:[%s6255_s24 + $0x28] sm:$0xff] %v2138_v43   ;;  %2484 = vmatmul.mubr.bf16.gmra.mrb[84].mxu1 %v2138_v43  ;;  %v5521_v44 = vld [vmem:[%s6960_s12 + $0xe0] ss:$8 sps:$4 sm:$0xff]  }
 0x2f5   : > { %v4990_v48 = vpop.f32.mrb[91].mxu0  ;;  %2493 = vmatprep.mubr.bf16.mxu1 %v5655_v2  ;;  %3051 = vmatpush1.bf16.msra.mxu0 %v5521_v44 }
 0x2f6   : > { %v4991_v49 = vadd.f32 %v4990_v48, %v4989_v47  ;;  %v2055_v50 = vadd.f32 %v4988_v46, %v6236_v21 }
 0x2f8   : > { %v2058_v51 = vadd.f32 %v4991_v49, %v6236_v21  ;;  %v5526_v49 = vld [vmem:[%s6960_s12 + $0xf4] ss:$8 sps:$4 sm:$0xff]  }
 0x2f9   : > { %3052 = vmatprep.subr.bf16.mxu0 %v5526_v49 }
 0x2fa   : > { %v4992_v52 = vpop.f32.mrb[92].mxu0  ;;  %v2139_v53 = vpack.c.bf16 %v2058_v51, %v2055_v50  ;;  %v5524_v51 = vld [vmem:[%s6960_s12 + $0xf0] ss:$8 sps:$4 sm:$0xff]  }
 0x2fb   : > { %v4993_v54 = vpop.f32.mrb[93].mxu0  ;;  %3053 = vmatpush1.bf16.msra.mxu0 %v5524_v51 }
 0x2fc   : > { %v4994_v55 = vadd.f32 %v4993_v54, %v4992_v52  ;;  %v4995_v56 = vpop.f32.mrb[94].mxu0  ;;  %4909 = vst [vmem:[%s6255_s24 + $0x30] sm:$0xff] %v2139_v53   ;;  %2494 = vmatmul.mubr.bf16.gmra.mrb[88].mxu1 %v2139_v53 }
 0x2fd   : > { %v4996_v57 = vpop.f32.mrb[95].mxu0  ;;  %2503 = vmatprep.mubr.bf16.mxu1 %v5655_v2 }
 0x2fe   : > { %v4997_v58 = vadd.f32 %v4996_v57, %v4995_v56  ;;  %v2063_v59 = vadd.f32 %v4994_v55, %v6236_v21 }
 0x300   : > { %v2066_v39 = vadd.f32 %v4997_v58, %v6236_v21 }
 0x302   : > { %v4998_v61 = vpop.f32.mrb[96].mxu0  ;;  %v2140_v62 = vpack.c.bf16 %v2066_v39, %v2063_v59 }
 0x303   : > { %v4999_v63 = vpop.f32.mrb[97].mxu0 }
 0x304   : > { %v5000_v0 = vadd.f32 %v4999_v63, %v4998_v61  ;;  %v5001_v1 = vpop.f32.mrb[98].mxu0  ;;  %4910 = vst [vmem:[%s6255_s24 + $0x38] sm:$0xff] %v2140_v62   ;;  %2504 = vmatmul.mubr.bf16.gmra.mrb[92].mxu1 %v2140_v62 }
 0x305   : > { %v5002_v3 = vpop.f32.mrb[99].mxu0  ;;  %2513 = vmatprep.mubr.bf16.mxu1 %v5655_v2 }
 0x306   : > { %v5003_v4 = vadd.f32 %v5002_v3, %v5001_v1  ;;  %v2071_v5 = vadd.f32 %v5000_v0, %v6236_v21 }
 0x308   : > { %v2074_v6 = vadd.f32 %v5003_v4, %v6236_v21 }
 0x30a   : > { %v5004_v7 = vpop.f32.mrb[100].mxu0  ;;  %v2141_v8 = vpack.c.bf16 %v2074_v6, %v2071_v5 }
 0x30b   : > { %v5005_v9 = vpop.f32.mrb[101].mxu0 }
 0x30c   : > { %v5006_v10 = vadd.f32 %v5005_v9, %v5004_v7  ;;  %v5007_v11 = vpop.f32.mrb[102].mxu0  ;;  %4911 = vst [vmem:[%s6255_s24 + $0x40] sm:$0xff] %v2141_v8   ;;  %2514 = vmatmul.mubr.bf16.gmra.mrb[96].mxu1 %v2141_v8 }
 0x30d   : > { %v5008_v12 = vpop.f32.mrb[103].mxu0  ;;  %2523 = vmatprep.mubr.bf16.mxu1 %v5655_v2 }
 0x30e   : > { %v5009_v13 = vadd.f32 %v5008_v12, %v5007_v11  ;;  %v2079_v14 = vadd.f32 %v5006_v10, %v6236_v21 }
 0x310   : > { %v2082_v15 = vadd.f32 %v5009_v13, %v6236_v21 }
 0x312   : > { %v5010_v16 = vpop.f32.mrb[104].mxu0  ;;  %v2142_v40 = vpack.c.bf16 %v2082_v15, %v2079_v14 }
 0x313   : > { %v5011_v17 = vpop.f32.mrb[105].mxu0 }
 0x314   : > { %v5012_v18 = vadd.f32 %v5011_v17, %v5010_v16  ;;  %v5013_v60 = vpop.f32.mrb[106].mxu0  ;;  %4912 = vst [vmem:[%s6255_s24 + $0x48] sm:$0xff] %v2142_v40   ;;  %2524 = vmatmul.mubr.bf16.gmra.mrb[100].mxu1 %v2142_v40 }
 0x315   : > { %v5014_v19 = vpop.f32.mrb[107].mxu0  ;;  %2533 = vmatprep.mubr.bf16.mxu1 %v5655_v2 }
 0x316   : > { %v5015_v20 = vadd.f32 %v5014_v19, %v5013_v60  ;;  %v2087_v22 = vadd.f32 %v5012_v18, %v6236_v21  ;;  %v2309_v18 = vld [vmem:[%s6959_s11] sm:$0x3] }
 0x317   : > { %v6403_v60 = vrot.slane %v2309_v18, %v5979_v36  ;;  %v6406_v19 = vrot.slane %v2309_v18, %v5985_v38 }
 0x318   : > { %v2090_v23 = vadd.f32 %v5015_v20, %v6236_v21 }
 0x31a   : > { %v5016_v24 = vpop.f32.mrb[108].mxu0  ;;  %v2143_v25 = vpack.c.bf16 %v2090_v23, %v2087_v22 }
 0x31b   : > { %v5017_v26 = vpop.f32.mrb[109].mxu0 }
 0x31c   : > { %v5018_v27 = vadd.f32 %v5017_v26, %v5016_v24  ;;  %v5019_v28 = vpop.f32.mrb[110].mxu0  ;;  %4913 = vst [vmem:[%s6255_s24 + $0x50] sm:$0xff] %v2143_v25   ;;  %2534 = vmatmul.mubr.bf16.gmra.mrb[104].mxu1 %v2143_v25 }
 0x31d   : > { %v5020_v29 = vpop.f32.mrb[111].mxu0  ;;  %2543 = vmatprep.mubr.bf16.mxu1 %v5655_v2 }
 0x31e   : > { %v5021_v31 = vadd.f32 %v5020_v29, %v5019_v28  ;;  %v2095_v33 = vadd.f32 %v5018_v27, %v6236_v21  ;;  %v5527_v29 = vld [vmem:[%s6962_s14 + $0x40] sm:$0xff]  }
 0x31f   : > { %5046 = vmatprep.subr.bf16.mxu1 %v5527_v29 }
 0x320   : > { %v2098_v37 = vadd.f32 %v5021_v31, %v6236_v21  ;;  %v5529_v31 = vld [vmem:[%s6962_s14 + $0x48] sm:$0xff]   ;;  %5047 = vmatpush3.bf16.msra.mxu1 %v5528_v30 }
 0x321   : > { %5048 = vmatprep.subr.bf16.mxu1 %v5529_v31 }
 0x322   : > { %v5022_v42 = vpop.f32.mrb[112].mxu0  ;;  %v2144_v43 = vpack.c.bf16 %v2098_v37, %v2095_v33 }
 0x323   : > { %v5023_v45 = vpop.f32.mrb[113].mxu0 }
 0x324   : > { %v5024_v46 = vadd.f32 %v5023_v45, %v5022_v42  ;;  %v5025_v47 = vpop.f32.mrb[114].mxu0  ;;  %4914 = vst [vmem:[%s6255_s24 + $0x58] sm:$0xff] %v2144_v43   ;;  %2544 = vmatmul.mubr.bf16.gmra.mrb[108].mxu1 %v2144_v43  ;;  %v5530_v42 = vld [vmem:[%s6962_s14 + $0x8] sm:$0xff]  }
 0x325   : > { %v5026_v48 = vpop.f32.mrb[115].mxu0  ;;  %2553 = vmatprep.mubr.bf16.mxu1 %v5655_v2  ;;  %5049 = vmatpush3.bf16.msra.mxu1 %v5530_v42 }
 0x326   : > { %v5027_v50 = vadd.f32 %v5026_v48, %v5025_v47  ;;  %v2103_v52 = vadd.f32 %v5024_v46, %v6236_v21  ;;  %v5531_v47 = vld [vmem:[%s6962_s14 + $0x50] sm:$0xff]  }
 0x327   : > { %5050 = vmatprep.subr.bf16.mxu1 %v5531_v47 }
 0x328   : > { %v2106_v53 = vadd.f32 %v5027_v50, %v6236_v21 }
 0x32a   : > { %v5028_v54 = vpop.f32.mrb[116].mxu0  ;;  %v2145_v55 = vpack.c.bf16 %v2106_v53, %v2103_v52 }
 0x32b   : > { %v5029_v56 = vpop.f32.mrb[117].mxu0 }
 0x32c   : > { %v5030_v57 = vadd.f32 %v5029_v56, %v5028_v54  ;;  %v5031_v58 = vpop.f32.mrb[118].mxu0  ;;  %4915 = vst [vmem:[%s6255_s24 + $0x60] sm:$0xff] %v2145_v55   ;;  %2554 = vmatmul.mubr.bf16.gmra.mrb[112].mxu1 %v2145_v55  ;;  %v5532_v56 = vld [vmem:[%s6962_s14 + $0x10] sm:$0xff]  }
 0x32d   : > { %v5032_v59 = vpop.f32.mrb[119].mxu0  ;;  %2563 = vmatprep.mubr.bf16.mxu1 %v5655_v2  ;;  %5051 = vmatpush3.bf16.msra.mxu1 %v5532_v56 }
 0x32e   : > { %v5033_v39 = vadd.f32 %v5032_v59, %v5031_v58  ;;  %v2111_v61 = vadd.f32 %v5030_v57, %v6236_v21  ;;  %v5533_v59 = vld [vmem:[%s6962_s14 + $0x58] sm:$0xff]  }
 0x32f   : > { %5052 = vmatprep.subr.bf16.mxu1 %v5533_v59 }
 0x330   : > { %v2114_v62 = vadd.f32 %v5033_v39, %v6236_v21 }
 0x332   : > { %v5034_v63 = vpop.f32.mrb[120].mxu0  ;;  %v2146_v0 = vpack.c.bf16 %v2114_v62, %v2111_v61 }
 0x333   : > { %v5035_v1 = vpop.f32.mrb[121].mxu0 }
 0x334   : > { %v5036_v3 = vadd.f32 %v5035_v1, %v5034_v63  ;;  %v5037_v4 = vpop.f32.mrb[122].mxu0  ;;  %4916 = vst [vmem:[%s6255_s24 + $0x68] sm:$0xff] %v2146_v0   ;;  %2564 = vmatmul.mubr.bf16.gmra.mrb[116].mxu1 %v2146_v0  ;;  %v5534_v0 = vld [vmem:[%s6962_s14 + $0x18] sm:$0xff]  }
 0x335   : > { %v5038_v5 = vpop.f32.mrb[123].mxu0  ;;  %2573 = vmatprep.mubr.bf16.mxu1 %v5655_v2  ;;  %5053 = vmatpush3.bf16.msra.mxu1 %v5534_v0 }
 0x336   : > { %v5039_v6 = vadd.f32 %v5038_v5, %v5037_v4  ;;  %v2119_v7 = vadd.f32 %v5036_v3, %v6236_v21 }
 0x338   : > { %v2122_v8 = vadd.f32 %v5039_v6, %v6236_v21  ;;  %v5535_v6 = vld [vmem:[%s6962_s14 + $0x60] sm:$0xff]  }
 0x339   : > { %5054 = vmatprep.subr.bf16.mxu1 %v5535_v6 }
 0x33a   : > { %v5040_v9 = vpop.f32.mrb[124].mxu0  ;;  %v2147_v10 = vpack.c.bf16 %v2122_v8, %v2119_v7 }
 0x33b   : > { %v5041_v11 = vpop.f32.mrb[125].mxu0 }
 0x33c   : > { %v5042_v12 = vadd.f32 %v5041_v11, %v5040_v9  ;;  %v5043_v13 = vpop.f32.mrb[126].mxu0  ;;  %4917 = vst [vmem:[%s6255_s24 + $0x70] sm:$0xff] %v2147_v10   ;;  %2574 = vmatmul.mubr.bf16.gmra.mrb[120].mxu1 %v2147_v10 }
 0x33d   : > { %v5044_v14 = vpop.f32.mrb[127].mxu0  ;;  %2583 = vmatprep.mubr.bf16.mxu1 %v5655_v2 }
 0x33e   : > { %v5045_v15 = vadd.f32 %v5044_v14, %v5043_v13  ;;  %v2127_v16 = vadd.f32 %v5042_v12, %v6236_v21 }
 0x340   : > { %v2130_v40 = vadd.f32 %v5045_v15, %v6236_v21  ;;  %v5536_v15 = vld [vmem:[%s6962_s14 + $0x20] sm:$0xff]  }
 0x341   : > { %5055 = vmatpush3.bf16.msra.mxu1 %v5536_v15 }
 0x342   : > { %v2148_v17 = vpack.c.bf16 %v2130_v40, %v2127_v16 }
 0x344   : > { %4918 = vst [vmem:[%s6255_s24 + $0x78] sm:$0xff] %v2148_v17   ;;  %2584 = vmatmul.mubr.bf16.gmra.mrb[124].mxu1 %v2148_v17 }
 0x39f   : > { %v2435_v20 = vpop.f32.mrb[64].mxu1 }
 0x3a0   : > { %v2436_v2 = vadd.f32 %v2435_v20, %v6403_v60  ;;  %v2437_v22 = vpop.f32.mrb[65].mxu1 }
 0x3a1   : > { %v2438_v23 = vadd.f32 %v2437_v22, %v6406_v19  ;;  %v2439_v21 = vpop.f32.mrb[66].mxu1 }
 0x3a2   : > { %v2658_v24 = vmul.f32 0.1, %v2436_v2  ;;  %v2440_v25 = vadd.f32 %v2439_v21, %v6403_v60  ;;  %v2441_v26 = vpop.f32.mrb[67].mxu1  ;;  %vm2594_vm0 = vcmp.gt.f32.partialorder %v2436_v2, 0.0 }
 0x3a3   : > { %v2659_v27 = vmul.f32 0.1, %v2438_v23  ;;  %v2442_v28 = vadd.f32 %v2441_v26, %v6406_v19  ;;  %vm2595_vm1 = vcmp.gt.f32.partialorder %v2438_v23, 0.0 }
 0x3a4   : > { %vm2596_vm2 = vcmp.gt.f32.partialorder %v2440_v25, 0.0  ;;  %v2660_v32 = vmul.f32 0.1, %v2440_v25  ;;  %v2722_v37 = vsel %vm2594_vm0, %v2436_v2, %v2658_v24 }
 0x3a5   : > { %vm2597_vm3 = vcmp.gt.f32.partialorder %v2442_v28, 0.0  ;;  %v2661_v33 = vmul.f32 0.1, %v2442_v28  ;;  %v2723_v45 = vsel %vm2595_vm1, %v2438_v23, %v2659_v27 }
 0x3a6   : > { %v2724_v41 = vsel %vm2596_vm2, %v2440_v25, %v2660_v32 }
 0x3a7   : > { %v2786_v43 = vpack.c.bf16 %v2724_v41, %v2722_v37  ;;  %v2445_v44 = vpop.f32.mrb[68].mxu1  ;;  %v2725_v46 = vsel %vm2597_vm3, %v2442_v28, %v2661_v33 }
 0x3a8   : > { %v2446_v48 = vadd.f32 %v2445_v44, %v6403_v60  ;;  %v2447_v49 = vpop.f32.mrb[69].mxu1  ;;  %v2787_v50 = vpack.c.bf16 %v2725_v46, %v2723_v45 }
 0x3a9   : > { %v2448_v51 = vadd.f32 %v2447_v49, %v6406_v19  ;;  %v2449_v52 = vpop.f32.mrb[70].mxu1 }
 0x3aa   : > { %v2662_v53 = vmul.f32 0.1, %v2446_v48  ;;  %v2450_v54 = vadd.f32 %v2449_v52, %v6403_v60  ;;  %v2451_v55 = vpop.f32.mrb[71].mxu1  ;;  %3054 = vmatprep.mubr.bf16.mxu0 %v2787_v50  ;;  %vm2598_vm4 = vcmp.gt.f32.partialorder %v2446_v48, 0.0 }
 0x3ab   : > { %v2663_v57 = vmul.f32 0.1, %v2448_v51  ;;  %v2452_v58 = vadd.f32 %v2451_v55, %v6406_v19  ;;  %3055 = vmatmul.mubr.bf16.vlgmr.msra.gmra.mrb[128].mxu0 %v2786_v43  ;;  %vm2599_vm5 = vcmp.gt.f32.partialorder %v2448_v51, 0.0 }
 0x3ac   : > { %vm2600_vm6 = vcmp.gt.f32.partialorder %v2450_v54, 0.0  ;;  %v2664_v39 = vmul.f32 0.1, %v2450_v54  ;;  %v2726_v62 = vsel %vm2598_vm4, %v2446_v48, %v2662_v53 }
 0x3ad   : > { %vm2601_vm7 = vcmp.gt.f32.partialorder %v2452_v58, 0.0  ;;  %v2665_v61 = vmul.f32 0.1, %v2452_v58  ;;  %v2727_v3 = vsel %vm2599_vm5, %v2448_v51, %v2663_v57 }
 0x3ae   : > { %v2728_v63 = vsel %vm2600_vm6, %v2450_v54, %v2664_v39 }
 0x3af   : > { %v2455_v1 = vpop.f32.mrb[72].mxu1  ;;  %v2729_v4 = vsel %vm2601_vm7, %v2452_v58, %v2665_v61  ;;  %v2788_v5 = vpack.c.bf16 %v2728_v63, %v2726_v62 }
 0x3b0   : > { %v2456_v7 = vadd.f32 %v2455_v1, %v6403_v60  ;;  %v2457_v8 = vpop.f32.mrb[73].mxu1  ;;  %v2789_v9 = vpack.c.bf16 %v2729_v4, %v2727_v3 }
 0x3b1   : > { %v2458_v10 = vadd.f32 %v2457_v8, %v6406_v19  ;;  %v2459_v11 = vpop.f32.mrb[74].mxu1 }
 0x3b2   : > { %v2666_v12 = vmul.f32 0.1, %v2456_v7  ;;  %v2460_v13 = vadd.f32 %v2459_v11, %v6403_v60  ;;  %v2461_v14 = vpop.f32.mrb[75].mxu1  ;;  %3064 = vmatprep.mubr.bf16.mxu0 %v2789_v9  ;;  %vm2602_vm8 = vcmp.gt.f32.partialorder %v2456_v7, 0.0 }
 0x3b3   : > { %v2667_v16 = vmul.f32 0.1, %v2458_v10  ;;  %v2462_v40 = vadd.f32 %v2461_v14, %v6406_v19  ;;  %3065 = vmatmul.mubr.bf16.gmra.mrb[132].mxu0 %v2788_v5  ;;  %vm2603_vm9 = vcmp.gt.f32.partialorder %v2458_v10, 0.0 }
 0x3b4   : > { %vm2604_vm10 = vcmp.gt.f32.partialorder %v2460_v13, 0.0  ;;  %v2668_v17 = vmul.f32 0.1, %v2460_v13  ;;  %v2730_v20 = vsel %vm2602_vm8, %v2456_v7, %v2666_v12 }
 0x3b5   : > { %vm2605_vm11 = vcmp.gt.f32.partialorder %v2462_v40, 0.0  ;;  %v2669_v18 = vmul.f32 0.1, %v2462_v40  ;;  %v2731_v23 = vsel %vm2603_vm9, %v2458_v10, %v2667_v16 }
 0x3b6   : > { %v2732_v2 = vsel %vm2604_vm10, %v2460_v13, %v2668_v17 }
 0x3b7   : > { %v2465_v22 = vpop.f32.mrb[76].mxu1  ;;  %v2733_v21 = vsel %vm2605_vm11, %v2462_v40, %v2669_v18  ;;  %v2790_v24 = vpack.c.bf16 %v2732_v2, %v2730_v20 }
 0x3b8   : > { %v2466_v25 = vadd.f32 %v2465_v22, %v6403_v60  ;;  %v2467_v26 = vpop.f32.mrb[77].mxu1  ;;  %v2791_v27 = vpack.c.bf16 %v2733_v21, %v2731_v23 }
 0x3b9   : > { %v2468_v28 = vadd.f32 %v2467_v26, %v6406_v19  ;;  %v2469_v29 = vpop.f32.mrb[78].mxu1 }
 0x3ba   : > { %v2670_v30 = vmul.f32 0.1, %v2466_v25  ;;  %v2470_v31 = vadd.f32 %v2469_v29, %v6403_v60  ;;  %v2471_v32 = vpop.f32.mrb[79].mxu1  ;;  %3074 = vmatprep.mubr.bf16.mxu0 %v2791_v27  ;;  %vm2606_vm12 = vcmp.gt.f32.partialorder %v2466_v25, 0.0 }
 0x3bb   : > { %v2671_v33 = vmul.f32 0.1, %v2468_v28  ;;  %v2472_v37 = vadd.f32 %v2471_v32, %v6406_v19  ;;  %3075 = vmatmul.mubr.bf16.gmra.mrb[136].mxu0 %v2790_v24  ;;  %vm2607_vm13 = vcmp.gt.f32.partialorder %v2468_v28, 0.0 }
 0x3bc   : > { %vm2608_vm14 = vcmp.gt.f32.partialorder %v2470_v31, 0.0  ;;  %v2672_v41 = vmul.f32 0.1, %v2470_v31  ;;  %v2734_v43 = vsel %vm2606_vm12, %v2466_v25, %v2670_v30 }
 0x3bd   : > { %vm2609_vm15 = vcmp.gt.f32.partialorder %v2472_v37, 0.0  ;;  %v2673_v42 = vmul.f32 0.1, %v2472_v37  ;;  %v2735_v46 = vsel %vm2607_vm13, %v2468_v28, %v2671_v33 }
 0x3be   : > { %v2736_v44 = vsel %vm2608_vm14, %v2470_v31, %v2672_v41 }
 0x3bf   : > { %v2475_v45 = vpop.f32.mrb[80].mxu1  ;;  %v2737_v47 = vsel %vm2609_vm15, %v2472_v37, %v2673_v42  ;;  %v2792_v48 = vpack.c.bf16 %v2736_v44, %v2734_v43 }
 0x3c0   : > { %v2476_v49 = vadd.f32 %v2475_v45, %v6403_v60  ;;  %v2477_v50 = vpop.f32.mrb[81].mxu1  ;;  %v2793_v51 = vpack.c.bf16 %v2737_v47, %v2735_v46 }
 0x3c1   : > { %v2478_v52 = vadd.f32 %v2477_v50, %v6406_v19  ;;  %v2479_v53 = vpop.f32.mrb[82].mxu1 }
 0x3c2   : > { %v2674_v54 = vmul.f32 0.1, %v2476_v49  ;;  %v2480_v55 = vadd.f32 %v2479_v53, %v6403_v60  ;;  %v2481_v56 = vpop.f32.mrb[83].mxu1  ;;  %3084 = vmatprep.mubr.bf16.mxu0 %v2793_v51  ;;  %vm2610_vm0 = vcmp.gt.f32.partialorder %v2476_v49, 0.0 }
 0x3c3   : > { %v2675_v57 = vmul.f32 0.1, %v2478_v52  ;;  %v2482_v58 = vadd.f32 %v2481_v56, %v6406_v19  ;;  %3085 = vmatmul.mubr.bf16.gmra.mrb[140].mxu0 %v2792_v48  ;;  %vm2611_vm1 = vcmp.gt.f32.partialorder %v2478_v52, 0.0 }
 0x3c4   : > { %vm2612_vm2 = vcmp.gt.f32.partialorder %v2480_v55, 0.0  ;;  %v2676_v59 = vmul.f32 0.1, %v2480_v55  ;;  %v2738_v61 = vsel %vm2610_vm0, %v2476_v49, %v2674_v54 }
 0x3c5   : > { %vm2613_vm3 = vcmp.gt.f32.partialorder %v2482_v58, 0.0  ;;  %v2677_v39 = vmul.f32 0.1, %v2482_v58  ;;  %v2739_v0 = vsel %vm2611_vm1, %v2478_v52, %v2675_v57 }
 0x3c6   : > { %v2740_v62 = vsel %vm2612_vm2, %v2480_v55, %v2676_v59 }
 0x3c7   : > { %v2485_v63 = vpop.f32.mrb[84].mxu1  ;;  %v2741_v1 = vsel %vm2613_vm3, %v2482_v58, %v2677_v39  ;;  %v2794_v3 = vpack.c.bf16 %v2740_v62, %v2738_v61 }
 0x3c8   : > { %v2486_v4 = vadd.f32 %v2485_v63, %v6403_v60  ;;  %v2487_v5 = vpop.f32.mrb[85].mxu1  ;;  %v2795_v6 = vpack.c.bf16 %v2741_v1, %v2739_v0 }
 0x3c9   : > { %v2488_v7 = vadd.f32 %v2487_v5, %v6406_v19  ;;  %v2489_v8 = vpop.f32.mrb[86].mxu1 }
 0x3ca   : > { %v2678_v9 = vmul.f32 0.1, %v2486_v4  ;;  %v2490_v10 = vadd.f32 %v2489_v8, %v6403_v60  ;;  %v2491_v11 = vpop.f32.mrb[87].mxu1  ;;  %3094 = vmatprep.mubr.bf16.mxu0 %v2795_v6  ;;  %vm2614_vm4 = vcmp.gt.f32.partialorder %v2486_v4, 0.0 }
 0x3cb   : > { %v2679_v12 = vmul.f32 0.1, %v2488_v7  ;;  %v2492_v13 = vadd.f32 %v2491_v11, %v6406_v19  ;;  %3095 = vmatmul.mubr.bf16.gmra.mrb[144].mxu0 %v2794_v3  ;;  %vm2615_vm5 = vcmp.gt.f32.partialorder %v2488_v7, 0.0 }
 0x3cc   : > { %vm2616_vm6 = vcmp.gt.f32.partialorder %v2490_v10, 0.0  ;;  %v2680_v14 = vmul.f32 0.1, %v2490_v10  ;;  %v2742_v16 = vsel %vm2614_vm4, %v2486_v4, %v2678_v9 }
 0x3cd   : > { %vm2617_vm7 = vcmp.gt.f32.partialorder %v2492_v13, 0.0  ;;  %v2681_v15 = vmul.f32 0.1, %v2492_v13  ;;  %v2743_v18 = vsel %vm2615_vm5, %v2488_v7, %v2679_v12 }
 0x3ce   : > { %v2744_v40 = vsel %vm2616_vm6, %v2490_v10, %v2680_v14 }
 0x3cf   : > { %v2495_v17 = vpop.f32.mrb[88].mxu1  ;;  %v2745_v20 = vsel %vm2617_vm7, %v2492_v13, %v2681_v15  ;;  %v2796_v2 = vpack.c.bf16 %v2744_v40, %v2742_v16 }
 0x3d0   : > { %v2496_v22 = vadd.f32 %v2495_v17, %v6403_v60  ;;  %v2497_v23 = vpop.f32.mrb[89].mxu1  ;;  %v2797_v21 = vpack.c.bf16 %v2745_v20, %v2743_v18 }
 0x3d1   : > { %v2498_v24 = vadd.f32 %v2497_v23, %v6406_v19  ;;  %v2499_v25 = vpop.f32.mrb[90].mxu1 }
 0x3d2   : > { %v2682_v26 = vmul.f32 0.1, %v2496_v22  ;;  %v2500_v27 = vadd.f32 %v2499_v25, %v6403_v60  ;;  %v2501_v28 = vpop.f32.mrb[91].mxu1  ;;  %3104 = vmatprep.mubr.bf16.mxu0 %v2797_v21  ;;  %vm2618_vm8 = vcmp.gt.f32.partialorder %v2496_v22, 0.0 }
 0x3d3   : > { %v2683_v29 = vmul.f32 0.1, %v2498_v24  ;;  %v2502_v30 = vadd.f32 %v2501_v28, %v6406_v19  ;;  %3105 = vmatmul.mubr.bf16.gmra.mrb[148].mxu0 %v2796_v2  ;;  %vm2619_vm9 = vcmp.gt.f32.partialorder %v2498_v24, 0.0 }
 0x3d4   : > { %vm2620_vm10 = vcmp.gt.f32.partialorder %v2500_v27, 0.0  ;;  %v2684_v31 = vmul.f32 0.1, %v2500_v27  ;;  %v2746_v33 = vsel %vm2618_vm8, %v2496_v22, %v2682_v26 }
 0x3d5   : > { %vm2621_vm11 = vcmp.gt.f32.partialorder %v2502_v30, 0.0  ;;  %v2685_v32 = vmul.f32 0.1, %v2502_v30  ;;  %v2747_v42 = vsel %vm2619_vm9, %v2498_v24, %v2683_v29 }
 0x3d6   : > { %v2748_v37 = vsel %vm2620_vm10, %v2500_v27, %v2684_v31 }
 0x3d7   : > { %v2505_v41 = vpop.f32.mrb[92].mxu1  ;;  %v2749_v43 = vsel %vm2621_vm11, %v2502_v30, %v2685_v32  ;;  %v2798_v44 = vpack.c.bf16 %v2748_v37, %v2746_v33 }
 0x3d8   : > { %v2506_v45 = vadd.f32 %v2505_v41, %v6403_v60  ;;  %v2507_v46 = vpop.f32.mrb[93].mxu1  ;;  %v2799_v47 = vpack.c.bf16 %v2749_v43, %v2747_v42 }
 0x3d9   : > { %v2508_v48 = vadd.f32 %v2507_v46, %v6406_v19  ;;  %v2509_v49 = vpop.f32.mrb[94].mxu1 }
 0x3da   : > { %v2686_v50 = vmul.f32 0.1, %v2506_v45  ;;  %v2510_v51 = vadd.f32 %v2509_v49, %v6403_v60  ;;  %v2511_v52 = vpop.f32.mrb[95].mxu1  ;;  %3114 = vmatprep.mubr.bf16.mxu0 %v2799_v47  ;;  %vm2622_vm12 = vcmp.gt.f32.partialorder %v2506_v45, 0.0 }
 0x3db   : > { %v2687_v53 = vmul.f32 0.1, %v2508_v48  ;;  %v2512_v54 = vadd.f32 %v2511_v52, %v6406_v19  ;;  %3115 = vmatmul.mubr.bf16.gmra.mrb[152].mxu0 %v2798_v44  ;;  %vm2623_vm13 = vcmp.gt.f32.partialorder %v2508_v48, 0.0 }
 0x3dc   : > { %vm2624_vm14 = vcmp.gt.f32.partialorder %v2510_v51, 0.0  ;;  %v2688_v55 = vmul.f32 0.1, %v2510_v51  ;;  %v2750_v57 = vsel %vm2622_vm12, %v2506_v45, %v2686_v50 }
 0x3dd   : > { %vm2625_vm15 = vcmp.gt.f32.partialorder %v2512_v54, 0.0  ;;  %v2689_v56 = vmul.f32 0.1, %v2512_v54  ;;  %v2751_v39 = vsel %vm2623_vm13, %v2508_v48, %v2687_v53 }
 0x3de   : > { %v2752_v58 = vsel %vm2624_vm14, %v2510_v51, %v2688_v55 }
 0x3df   : > { %v2515_v59 = vpop.f32.mrb[96].mxu1  ;;  %v2753_v61 = vsel %vm2625_vm15, %v2512_v54, %v2689_v56  ;;  %v2800_v62 = vpack.c.bf16 %v2752_v58, %v2750_v57 }
 0x3e0   : > { %v2516_v63 = vadd.f32 %v2515_v59, %v6403_v60  ;;  %v2517_v0 = vpop.f32.mrb[97].mxu1  ;;  %v2801_v1 = vpack.c.bf16 %v2753_v61, %v2751_v39 }
 0x3e1   : > { %v2518_v3 = vadd.f32 %v2517_v0, %v6406_v19  ;;  %v2519_v4 = vpop.f32.mrb[98].mxu1 }
 0x3e2   : > { %v2690_v5 = vmul.f32 0.1, %v2516_v63  ;;  %v2520_v6 = vadd.f32 %v2519_v4, %v6403_v60  ;;  %v2521_v7 = vpop.f32.mrb[99].mxu1  ;;  %3124 = vmatprep.mubr.bf16.mxu0 %v2801_v1  ;;  %vm2626_vm0 = vcmp.gt.f32.partialorder %v2516_v63, 0.0 }
 0x3e3   : > { %v2691_v8 = vmul.f32 0.1, %v2518_v3  ;;  %v2522_v9 = vadd.f32 %v2521_v7, %v6406_v19  ;;  %3125 = vmatmul.mubr.bf16.gmra.mrb[156].mxu0 %v2800_v62  ;;  %vm2627_vm1 = vcmp.gt.f32.partialorder %v2518_v3, 0.0  ;;  %v5537_v7 = vld [vmem:[%s6962_s14 + $0x68] sm:$0xff]  }
 0x3e4   : > { %vm2628_vm2 = vcmp.gt.f32.partialorder %v2520_v6, 0.0  ;;  %v2692_v10 = vmul.f32 0.1, %v2520_v6  ;;  %v2754_v12 = vsel %vm2626_vm0, %v2516_v63, %v2690_v5  ;;  %5056 = vmatprep.subr.bf16.mxu1 %v5537_v7 }
 0x3e5   : > { %vm2629_vm3 = vcmp.gt.f32.partialorder %v2522_v9, 0.0  ;;  %v2693_v11 = vmul.f32 0.1, %v2522_v9  ;;  %v2755_v15 = vsel %vm2627_vm1, %v2518_v3, %v2691_v8 }
 0x3e6   : > { %v2756_v13 = vsel %vm2628_vm2, %v2520_v6, %v2692_v10 }
 0x3e7   : > { %v2525_v14 = vpop.f32.mrb[100].mxu1  ;;  %v2757_v16 = vsel %vm2629_vm3, %v2522_v9, %v2693_v11  ;;  %v2802_v40 = vpack.c.bf16 %v2756_v13, %v2754_v12  ;;  %v5538_v9 = vld [vmem:[%s6962_s14 + $0x28] sm:$0xff]  }
 0x3e8   : > { %v2526_v17 = vadd.f32 %v2525_v14, %v6403_v60  ;;  %v2527_v18 = vpop.f32.mrb[101].mxu1  ;;  %v2803_v20 = vpack.c.bf16 %v2757_v16, %v2755_v15  ;;  %5057 = vmatpush3.bf16.msra.mxu1 %v5538_v9 }
 0x3e9   : > { %v2528_v2 = vadd.f32 %v2527_v18, %v6406_v19  ;;  %v2529_v22 = vpop.f32.mrb[102].mxu1  ;;  %v5539_v18 = vld [vmem:[%s6962_s14 + $0x70] sm:$0xff]  }
 0x3ea   : > { %v2694_v23 = vmul.f32 0.1, %v2526_v17  ;;  %v2530_v21 = vadd.f32 %v2529_v22, %v6403_v60  ;;  %v2531_v24 = vpop.f32.mrb[103].mxu1  ;;  %3134 = vmatprep.mubr.bf16.mxu0 %v2803_v20  ;;  %vm2630_vm4 = vcmp.gt.f32.partialorder %v2526_v17, 0.0  ;;  %v5540_v22 = vld [vmem:[%s6962_s14 + $0x30] sm:$0xff]   ;;  %5058 = vmatprep.subr.bf16.mxu1 %v5539_v18 }
 0x3eb   : > { %v2695_v25 = vmul.f32 0.1, %v2528_v2  ;;  %v2532_v26 = vadd.f32 %v2531_v24, %v6406_v19  ;;  %3135 = vmatmul.mubr.bf16.gmra.mrb[160].mxu0 %v2802_v40  ;;  %vm2631_vm5 = vcmp.gt.f32.partialorder %v2528_v2, 0.0 }
 0x3ec   : > { %vm2632_vm6 = vcmp.gt.f32.partialorder %v2530_v21, 0.0  ;;  %v2696_v27 = vmul.f32 0.1, %v2530_v21  ;;  %v2758_v29 = vsel %vm2630_vm4, %v2526_v17, %v2694_v23  ;;  %5059 = vmatpush3.bf16.msra.mxu1 %v5540_v22 }
 0x3ed   : > { %vm2633_vm7 = vcmp.gt.f32.partialorder %v2532_v26, 0.0  ;;  %v2697_v28 = vmul.f32 0.1, %v2532_v26  ;;  %v2759_v32 = vsel %vm2631_vm5, %v2528_v2, %v2695_v25 }
 0x3ee   : > { %v2760_v30 = vsel %vm2632_vm6, %v2530_v21, %v2696_v27 }
 0x3ef   : > { %v2535_v31 = vpop.f32.mrb[104].mxu1  ;;  %v2761_v33 = vsel %vm2633_vm7, %v2532_v26, %v2697_v28  ;;  %v2804_v37 = vpack.c.bf16 %v2760_v30, %v2758_v29  ;;  %v5541_v28 = vld [vmem:[%s6962_s14 + $0x78] sm:$0xff]  }
 0x3f0   : > { %v2536_v41 = vadd.f32 %v2535_v31, %v6403_v60  ;;  %v2537_v42 = vpop.f32.mrb[105].mxu1  ;;  %v2805_v43 = vpack.c.bf16 %v2761_v33, %v2759_v32  ;;  %v5542_v30 = vld [vmem:[%s6962_s14 + $0x38] sm:$0xff]   ;;  %5060 = vmatprep.subr.bf16.mxu1 %v5541_v28 }
 0x3f1   : > { %v2538_v44 = vadd.f32 %v2537_v42, %v6406_v19  ;;  %v2539_v45 = vpop.f32.mrb[106].mxu1  ;;  %5061 = vmatpush3.bf16.msra.mxu1 %v5542_v30 }
 0x3f2   : > { %v2698_v46 = vmul.f32 0.1, %v2536_v41  ;;  %v2540_v47 = vadd.f32 %v2539_v45, %v6403_v60  ;;  %v2541_v48 = vpop.f32.mrb[107].mxu1  ;;  %3144 = vmatprep.mubr.bf16.mxu0 %v2805_v43  ;;  %vm2634_vm8 = vcmp.gt.f32.partialorder %v2536_v41, 0.0 }
 0x3f3   : > { %v2699_v49 = vmul.f32 0.1, %v2538_v44  ;;  %v2542_v50 = vadd.f32 %v2541_v48, %v6406_v19  ;;  %3145 = vmatmul.mubr.bf16.gmra.mrb[164].mxu0 %v2804_v37  ;;  %vm2635_vm9 = vcmp.gt.f32.partialorder %v2538_v44, 0.0 }
 0x3f4   : > { %vm2636_vm10 = vcmp.gt.f32.partialorder %v2540_v47, 0.0  ;;  %v2700_v51 = vmul.f32 0.1, %v2540_v47  ;;  %v2762_v53 = vsel %vm2634_vm8, %v2536_v41, %v2698_v46 }
 0x3f5   : > { %vm2637_vm11 = vcmp.gt.f32.partialorder %v2542_v50, 0.0  ;;  %v2701_v52 = vmul.f32 0.1, %v2542_v50  ;;  %v2763_v56 = vsel %vm2635_vm9, %v2538_v44, %v2699_v49 }
 0x3f6   : > { %v2764_v54 = vsel %vm2636_vm10, %v2540_v47, %v2700_v51 }
 0x3f7   : > { %v2545_v55 = vpop.f32.mrb[108].mxu1  ;;  %v2765_v57 = vsel %vm2637_vm11, %v2542_v50, %v2701_v52  ;;  %v2806_v58 = vpack.c.bf16 %v2764_v54, %v2762_v53 }
 0x3f8   : > { %v2546_v59 = vadd.f32 %v2545_v55, %v6403_v60  ;;  %v2547_v39 = vpop.f32.mrb[109].mxu1  ;;  %v2807_v61 = vpack.c.bf16 %v2765_v57, %v2763_v56 }
 0x3f9   : > { %v2548_v62 = vadd.f32 %v2547_v39, %v6406_v19  ;;  %v2549_v63 = vpop.f32.mrb[110].mxu1 }
 0x3fa   : > { %v2702_v0 = vmul.f32 0.1, %v2546_v59  ;;  %v2550_v1 = vadd.f32 %v2549_v63, %v6403_v60  ;;  %v2551_v3 = vpop.f32.mrb[111].mxu1  ;;  %3154 = vmatprep.mubr.bf16.mxu0 %v2807_v61  ;;  %vm2638_vm12 = vcmp.gt.f32.partialorder %v2546_v59, 0.0 }
 0x3fb   : > { %v2703_v4 = vmul.f32 0.1, %v2548_v62  ;;  %v2552_v5 = vadd.f32 %v2551_v3, %v6406_v19  ;;  %3155 = vmatmul.mubr.bf16.gmra.mrb[168].mxu0 %v2806_v58  ;;  %vm2639_vm13 = vcmp.gt.f32.partialorder %v2548_v62, 0.0 }
 0x3fc   : > { %vm2640_vm14 = vcmp.gt.f32.partialorder %v2550_v1, 0.0  ;;  %v2704_v6 = vmul.f32 0.1, %v2550_v1  ;;  %v2766_v10 = vsel %vm2638_vm12, %v2546_v59, %v2702_v0 }
 0x3fd   : > { %vm2641_vm15 = vcmp.gt.f32.partialorder %v2552_v5, 0.0  ;;  %v2705_v8 = vmul.f32 0.1, %v2552_v5  ;;  %v2767_v13 = vsel %vm2639_vm13, %v2548_v62, %v2703_v4 }
 0x3fe   : > { %v2768_v11 = vsel %vm2640_vm14, %v2550_v1, %v2704_v6 }
 0x3ff   : > { %v2555_v12 = vpop.f32.mrb[112].mxu1  ;;  %v2769_v14 = vsel %vm2641_vm15, %v2552_v5, %v2705_v8  ;;  %v2808_v15 = vpack.c.bf16 %v2768_v11, %v2766_v10 }
 0x400   : > { %v2556_v16 = vadd.f32 %v2555_v12, %v6403_v60  ;;  %v2557_v40 = vpop.f32.mrb[113].mxu1  ;;  %v2809_v17 = vpack.c.bf16 %v2769_v14, %v2767_v13 }
 0x401   : > { %v2558_v20 = vadd.f32 %v2557_v40, %v6406_v19  ;;  %v2559_v2 = vpop.f32.mrb[114].mxu1 }
 0x402   : > { %v2706_v23 = vmul.f32 0.1, %v2556_v16  ;;  %v2560_v21 = vadd.f32 %v2559_v2, %v6403_v60  ;;  %v2561_v24 = vpop.f32.mrb[115].mxu1  ;;  %3164 = vmatprep.mubr.bf16.mxu0 %v2809_v17  ;;  %vm2642_vm0 = vcmp.gt.f32.partialorder %v2556_v16, 0.0 }
 0x403   : > { %v2707_v25 = vmul.f32 0.1, %v2558_v20  ;;  %v2562_v26 = vadd.f32 %v2561_v24, %v6406_v19  ;;  %3165 = vmatmul.mubr.bf16.gmra.mrb[172].mxu0 %v2808_v15  ;;  %vm2643_vm1 = vcmp.gt.f32.partialorder %v2558_v20, 0.0 }
 0x404   : > { %vm2644_vm2 = vcmp.gt.f32.partialorder %v2560_v21, 0.0  ;;  %v2708_v27 = vmul.f32 0.1, %v2560_v21  ;;  %v2770_v31 = vsel %vm2642_vm0, %v2556_v16, %v2706_v23 }
 0x405   : > { %vm2645_vm3 = vcmp.gt.f32.partialorder %v2562_v26, 0.0  ;;  %v2709_v29 = vmul.f32 0.1, %v2562_v26  ;;  %v2771_v37 = vsel %vm2643_vm1, %v2558_v20, %v2707_v25 }
 0x406   : > { %v2772_v32 = vsel %vm2644_vm2, %v2560_v21, %v2708_v27 }
 0x407   : > { %v2565_v33 = vpop.f32.mrb[116].mxu1  ;;  %v2773_v41 = vsel %vm2645_vm3, %v2562_v26, %v2709_v29  ;;  %v2810_v42 = vpack.c.bf16 %v2772_v32, %v2770_v31 }
 0x408   : > { %v2566_v43 = vadd.f32 %v2565_v33, %v6403_v60  ;;  %v2567_v44 = vpop.f32.mrb[117].mxu1  ;;  %v2811_v45 = vpack.c.bf16 %v2773_v41, %v2771_v37 }
 0x409   : > { %v2568_v46 = vadd.f32 %v2567_v44, %v6406_v19  ;;  %v2569_v47 = vpop.f32.mrb[118].mxu1 }
 0x40a   : > { %v2710_v48 = vmul.f32 0.1, %v2566_v43  ;;  %v2570_v49 = vadd.f32 %v2569_v47, %v6403_v60  ;;  %v2571_v50 = vpop.f32.mrb[119].mxu1  ;;  %3174 = vmatprep.mubr.bf16.mxu0 %v2811_v45  ;;  %vm2646_vm4 = vcmp.gt.f32.partialorder %v2566_v43, 0.0 }
 0x40b   : > { %v2711_v51 = vmul.f32 0.1, %v2568_v46  ;;  %v2572_v52 = vadd.f32 %v2571_v50, %v6406_v19  ;;  %3175 = vmatmul.mubr.bf16.gmra.mrb[176].mxu0 %v2810_v42  ;;  %vm2647_vm5 = vcmp.gt.f32.partialorder %v2568_v46, 0.0 }
 0x40c   : > { %vm2648_vm6 = vcmp.gt.f32.partialorder %v2570_v49, 0.0  ;;  %v2712_v53 = vmul.f32 0.1, %v2570_v49  ;;  %v2774_v55 = vsel %vm2646_vm4, %v2566_v43, %v2710_v48 }
 0x40d   : > { %vm2649_vm7 = vcmp.gt.f32.partialorder %v2572_v52, 0.0  ;;  %v2713_v54 = vmul.f32 0.1, %v2572_v52  ;;  %v2775_v58 = vsel %vm2647_vm5, %v2568_v46, %v2711_v51 }
 0x40e   : > { %v2776_v56 = vsel %vm2648_vm6, %v2570_v49, %v2712_v53 }
 0x40f   : > { %v2575_v57 = vpop.f32.mrb[120].mxu1  ;;  %v2777_v59 = vsel %vm2649_vm7, %v2572_v52, %v2713_v54  ;;  %v2812_v39 = vpack.c.bf16 %v2776_v56, %v2774_v55 }
 0x410   : > { %v2576_v61 = vadd.f32 %v2575_v57, %v6403_v60  ;;  %v2577_v62 = vpop.f32.mrb[121].mxu1  ;;  %v2813_v63 = vpack.c.bf16 %v2777_v59, %v2775_v58 }
 0x411   : > { %v2578_v0 = vadd.f32 %v2577_v62, %v6406_v19  ;;  %v2579_v1 = vpop.f32.mrb[122].mxu1 }
 0x412   : > { %v2714_v3 = vmul.f32 0.1, %v2576_v61  ;;  %v2580_v4 = vadd.f32 %v2579_v1, %v6403_v60  ;;  %v2581_v5 = vpop.f32.mrb[123].mxu1  ;;  %3184 = vmatprep.mubr.bf16.mxu0 %v2813_v63  ;;  %vm2650_vm8 = vcmp.gt.f32.partialorder %v2576_v61, 0.0 }
 0x413   : > { %v2715_v6 = vmul.f32 0.1, %v2578_v0  ;;  %v2582_v7 = vadd.f32 %v2581_v5, %v6406_v19  ;;  %3185 = vmatmul.mubr.bf16.gmra.mrb[180].mxu0 %v2812_v39  ;;  %vm2651_vm9 = vcmp.gt.f32.partialorder %v2578_v0, 0.0 }
 0x414   : > { %vm2652_vm10 = vcmp.gt.f32.partialorder %v2580_v4, 0.0  ;;  %v2716_v8 = vmul.f32 0.1, %v2580_v4  ;;  %v2778_v10 = vsel %vm2650_vm8, %v2576_v61, %v2714_v3 }
 0x415   : > { %vm2653_vm11 = vcmp.gt.f32.partialorder %v2582_v7, 0.0  ;;  %v2717_v9 = vmul.f32 0.1, %v2582_v7  ;;  %v2779_v13 = vsel %vm2651_vm9, %v2578_v0, %v2715_v6 }
 0x416   : > { %v2780_v11 = vsel %vm2652_vm10, %v2580_v4, %v2716_v8 }
 0x417   : > { %v2585_v12 = vpop.f32.mrb[124].mxu1  ;;  %v2781_v14 = vsel %vm2653_vm11, %v2582_v7, %v2717_v9  ;;  %v2814_v15 = vpack.c.bf16 %v2780_v11, %v2778_v10 }
 0x418   : > { %v2586_v16 = vadd.f32 %v2585_v12, %v6403_v60  ;;  %v2587_v40 = vpop.f32.mrb[125].mxu1  ;;  %v2815_v17 = vpack.c.bf16 %v2781_v14, %v2779_v13 }
 0x419   : > { %v2588_v18 = vadd.f32 %v2587_v40, %v6406_v19  ;;  %v2589_v20 = vpop.f32.mrb[126].mxu1 }
 0x41a   : > { %v2718_v2 = vmul.f32 0.1, %v2586_v16  ;;  %v2590_v22 = vadd.f32 %v2589_v20, %v6403_v60  ;;  %v2591_v23 = vpop.f32.mrb[127].mxu1  ;;  %3194 = vmatprep.mubr.bf16.mxu0 %v2815_v17  ;;  %vm2654_vm12 = vcmp.gt.f32.partialorder %v2586_v16, 0.0  ;;  %v2850_v60 = vld [vmem:[%s6980_s30] sm:$0x3] }
 0x41b   : > { %v2719_v21 = vmul.f32 0.1, %v2588_v18  ;;  %v2592_v24 = vadd.f32 %v2591_v23, %v6406_v19  ;;  %3195 = vmatmul.mubr.bf16.gmra.mrb[184].mxu0 %v2814_v15  ;;  %vm2655_vm13 = vcmp.gt.f32.partialorder %v2588_v18, 0.0  ;;  %v6524_v19 = vrot.slane %v2850_v60, %v5979_v36 }
 0x41c   : > { %vm2656_vm14 = vcmp.gt.f32.partialorder %v2590_v22, 0.0  ;;  %v2720_v25 = vmul.f32 0.1, %v2590_v22  ;;  %v2782_v27 = vsel %vm2654_vm12, %v2586_v16, %v2718_v2  ;;  %v6527_v33 = vrot.slane %v2850_v60, %v5985_v38 }
 0x41d   : > { %vm2657_vm15 = vcmp.gt.f32.partialorder %v2592_v24, 0.0  ;;  %v2721_v26 = vmul.f32 0.1, %v2592_v24  ;;  %v2783_v29 = vsel %vm2655_vm13, %v2588_v18, %v2719_v21 }
 0x41e   : > { %v2784_v28 = vsel %vm2656_vm14, %v2590_v22, %v2720_v25 }
 0x41f   : > { %v2785_v30 = vsel %vm2657_vm15, %v2592_v24, %v2721_v26  ;;  %v2816_v31 = vpack.c.bf16 %v2784_v28, %v2782_v27 }
 0x420   : > { %v2817_v32 = vpack.c.bf16 %v2785_v30, %v2783_v29 }
 0x422   : > { %3204 = vmatprep.mubr.bf16.mxu0 %v2817_v32 }
 0x423   : > { %3205 = vmatmul.mubr.bf16.gmra.mrb[188].mxu0 %v2816_v31 }
 0x47e   : > { %v3056_v37 = vpop.f32.mrb[128].mxu0 }
 0x47f   : > { %v3057_v41 = vadd.f32 %v3056_v37, %v6524_v19  ;;  %v3058_v42 = vpop.f32.mrb[129].mxu0 }
 0x480   : > { %v3059_v43 = vadd.f32 %v3058_v42, %v6527_v33  ;;  %v3060_v44 = vpop.f32.mrb[130].mxu0 }
 0x481   : > { %v3279_v45 = vmul.f32 0.1, %v3057_v41  ;;  %v3061_v46 = vadd.f32 %v3060_v44, %v6524_v19  ;;  %v3062_v47 = vpop.f32.mrb[131].mxu0  ;;  %vm3215_vm0 = vcmp.gt.f32.partialorder %v3057_v41, 0.0 }
 0x482   : > { %v3280_v48 = vmul.f32 0.1, %v3059_v43  ;;  %v3063_v49 = vadd.f32 %v3062_v47, %v6527_v33  ;;  %vm3216_vm1 = vcmp.gt.f32.partialorder %v3059_v43, 0.0 }
 0x483   : > { %vm3217_vm2 = vcmp.gt.f32.partialorder %v3061_v46, 0.0  ;;  %v3281_v36 = vmul.f32 0.1, %v3061_v46  ;;  %v3343_v50 = vsel %vm3215_vm0, %v3057_v41, %v3279_v45 }
 0x484   : > { %vm3218_vm3 = vcmp.gt.f32.partialorder %v3063_v49, 0.0  ;;  %v3282_v38 = vmul.f32 0.1, %v3063_v49  ;;  %v3344_v54 = vsel %vm3216_vm1, %v3059_v43, %v3280_v48 }
 0x485   : > { %v3345_v51 = vsel %vm3217_vm2, %v3061_v46, %v3281_v36 }
 0x486   : > { %v3407_v52 = vpack.c.bf16 %v3345_v51, %v3343_v50  ;;  %v3066_v53 = vpop.f32.mrb[132].mxu0  ;;  %v3346_v55 = vsel %vm3218_vm3, %v3063_v49, %v3282_v38 }
 0x487   : > { %v3067_v56 = vadd.f32 %v3066_v53, %v6524_v19  ;;  %v3068_v57 = vpop.f32.mrb[133].mxu0  ;;  %v3408_v58 = vpack.c.bf16 %v3346_v55, %v3344_v54 }
 0x488   : > { %v3069_v59 = vadd.f32 %v3068_v57, %v6527_v33  ;;  %v3070_v39 = vpop.f32.mrb[134].mxu0 }
 0x489   : > { %v3283_v61 = vmul.f32 0.1, %v3067_v56  ;;  %v3071_v62 = vadd.f32 %v3070_v39, %v6524_v19  ;;  %v3072_v63 = vpop.f32.mrb[135].mxu0  ;;  %3606 = vmatprep.mubr.bf16.mxu1 %v3408_v58  ;;  %vm3219_vm4 = vcmp.gt.f32.partialorder %v3067_v56, 0.0 }
 0x48a   : > { %v3284_v0 = vmul.f32 0.1, %v3069_v59  ;;  %v3073_v1 = vadd.f32 %v3072_v63, %v6527_v33  ;;  %3607 = vmatmul.mubr.bf16.vlgmr.msra.gmra.mrb[128].mxu1 %v3407_v52  ;;  %vm3220_vm5 = vcmp.gt.f32.partialorder %v3069_v59, 0.0 }
 0x48b   : > { %vm3221_vm6 = vcmp.gt.f32.partialorder %v3071_v62, 0.0  ;;  %v3285_v3 = vmul.f32 0.1, %v3071_v62  ;;  %v3347_v5 = vsel %vm3219_vm4, %v3067_v56, %v3283_v61 }
 0x48c   : > { %vm3222_vm7 = vcmp.gt.f32.partialorder %v3073_v1, 0.0  ;;  %v3286_v4 = vmul.f32 0.1, %v3073_v1  ;;  %v3348_v8 = vsel %vm3220_vm5, %v3069_v59, %v3284_v0 }
 0x48d   : > { %v3349_v6 = vsel %vm3221_vm6, %v3071_v62, %v3285_v3 }
 0x48e   : > { %v3076_v7 = vpop.f32.mrb[136].mxu0  ;;  %v3350_v9 = vsel %vm3222_vm7, %v3073_v1, %v3286_v4  ;;  %v3409_v10 = vpack.c.bf16 %v3349_v6, %v3347_v5 }
 0x48f   : > { %v3077_v11 = vadd.f32 %v3076_v7, %v6524_v19  ;;  %v3078_v12 = vpop.f32.mrb[137].mxu0  ;;  %v3410_v13 = vpack.c.bf16 %v3350_v9, %v3348_v8 }
 0x490   : > { %v3079_v14 = vadd.f32 %v3078_v12, %v6527_v33  ;;  %v3080_v15 = vpop.f32.mrb[138].mxu0 }
 0x491   : > { %v3287_v16 = vmul.f32 0.1, %v3077_v11  ;;  %v3081_v40 = vadd.f32 %v3080_v15, %v6524_v19  ;;  %v3082_v17 = vpop.f32.mrb[139].mxu0  ;;  %3614 = vmatprep.mubr.bf16.mxu1 %v3410_v13  ;;  %vm3223_vm8 = vcmp.gt.f32.partialorder %v3077_v11, 0.0 }
 0x492   : > { %v3288_v18 = vmul.f32 0.1, %v3079_v14  ;;  %v3083_v20 = vadd.f32 %v3082_v17, %v6527_v33  ;;  %3615 = vmatmul.mubr.bf16.gmra.mrb[132].mxu1 %v3409_v10  ;;  %vm3224_vm9 = vcmp.gt.f32.partialorder %v3079_v14, 0.0 }
 0x493   : > { %vm3225_vm10 = vcmp.gt.f32.partialorder %v3081_v40, 0.0  ;;  %v3289_v2 = vmul.f32 0.1, %v3081_v40  ;;  %v3351_v23 = vsel %vm3223_vm8, %v3077_v11, %v3287_v16 }
 0x494   : > { %vm3226_vm11 = vcmp.gt.f32.partialorder %v3083_v20, 0.0  ;;  %v3290_v22 = vmul.f32 0.1, %v3083_v20  ;;  %v3352_v25 = vsel %vm3224_vm9, %v3079_v14, %v3288_v18 }
 0x495   : > { %v3353_v21 = vsel %vm3225_vm10, %v3081_v40, %v3289_v2 }
 0x496   : > { %v3086_v24 = vpop.f32.mrb[140].mxu0  ;;  %v3354_v26 = vsel %vm3226_vm11, %v3083_v20, %v3290_v22  ;;  %v3411_v27 = vpack.c.bf16 %v3353_v21, %v3351_v23 }
 0x497   : > { %v3087_v28 = vadd.f32 %v3086_v24, %v6524_v19  ;;  %v3088_v29 = vpop.f32.mrb[141].mxu0  ;;  %v3412_v30 = vpack.c.bf16 %v3354_v26, %v3352_v25 }
 0x498   : > { %v3089_v31 = vadd.f32 %v3088_v29, %v6527_v33  ;;  %v3090_v32 = vpop.f32.mrb[142].mxu0 }
 0x499   : > { %v3291_v60 = vmul.f32 0.1, %v3087_v28  ;;  %v3091_v37 = vadd.f32 %v3090_v32, %v6524_v19  ;;  %v3092_v41 = vpop.f32.mrb[143].mxu0  ;;  %3622 = vmatprep.mubr.bf16.mxu1 %v3412_v30  ;;  %vm3227_vm12 = vcmp.gt.f32.partialorder %v3087_v28, 0.0 }
 0x49a   : > { %v3292_v42 = vmul.f32 0.1, %v3089_v31  ;;  %v3093_v43 = vadd.f32 %v3092_v41, %v6527_v33  ;;  %3623 = vmatmul.mubr.bf16.gmra.mrb[136].mxu1 %v3411_v27  ;;  %vm3228_vm13 = vcmp.gt.f32.partialorder %v3089_v31, 0.0 }
 0x49b   : > { %vm3229_vm14 = vcmp.gt.f32.partialorder %v3091_v37, 0.0  ;;  %v3293_v44 = vmul.f32 0.1, %v3091_v37  ;;  %v3355_v46 = vsel %vm3227_vm12, %v3087_v28, %v3291_v60 }
 0x49c   : > { %vm3230_vm15 = vcmp.gt.f32.partialorder %v3093_v43, 0.0  ;;  %v3294_v45 = vmul.f32 0.1, %v3093_v43  ;;  %v3356_v49 = vsel %vm3228_vm13, %v3089_v31, %v3292_v42 }
 0x49d   : > { %v3357_v47 = vsel %vm3229_vm14, %v3091_v37, %v3293_v44 }
 0x49e   : > { %v3096_v48 = vpop.f32.mrb[144].mxu0  ;;  %v3358_v36 = vsel %vm3230_vm15, %v3093_v43, %v3294_v45  ;;  %v3413_v38 = vpack.c.bf16 %v3357_v47, %v3355_v46 }
 0x49f   : > { %v3097_v50 = vadd.f32 %v3096_v48, %v6524_v19  ;;  %v3098_v51 = vpop.f32.mrb[145].mxu0  ;;  %v3414_v52 = vpack.c.bf16 %v3358_v36, %v3356_v49 }
 0x4a0   : > { %v3099_v53 = vadd.f32 %v3098_v51, %v6527_v33  ;;  %v3100_v54 = vpop.f32.mrb[146].mxu0 }
 0x4a1   : > { %v3295_v55 = vmul.f32 0.1, %v3097_v50  ;;  %v3101_v56 = vadd.f32 %v3100_v54, %v6524_v19  ;;  %v3102_v57 = vpop.f32.mrb[147].mxu0  ;;  %3630 = vmatprep.mubr.bf16.mxu1 %v3414_v52  ;;  %vm3231_vm0 = vcmp.gt.f32.partialorder %v3097_v50, 0.0 }
 0x4a2   : > { %v3296_v58 = vmul.f32 0.1, %v3099_v53  ;;  %v3103_v59 = vadd.f32 %v3102_v57, %v6527_v33  ;;  %3631 = vmatmul.mubr.bf16.gmra.mrb[140].mxu1 %v3413_v38  ;;  %vm3232_vm1 = vcmp.gt.f32.partialorder %v3099_v53, 0.0 }
 0x4a3   : > { %vm3233_vm2 = vcmp.gt.f32.partialorder %v3101_v56, 0.0  ;;  %v3297_v39 = vmul.f32 0.1, %v3101_v56  ;;  %v3359_v62 = vsel %vm3231_vm0, %v3097_v50, %v3295_v55 }
 0x4a4   : > { %vm3234_vm3 = vcmp.gt.f32.partialorder %v3103_v59, 0.0  ;;  %v3298_v61 = vmul.f32 0.1, %v3103_v59  ;;  %v3360_v1 = vsel %vm3232_vm1, %v3099_v53, %v3296_v58 }
 0x4a5   : > { %v3361_v63 = vsel %vm3233_vm2, %v3101_v56, %v3297_v39 }
 0x4a6   : > { %v3106_v0 = vpop.f32.mrb[148].mxu0  ;;  %v3362_v3 = vsel %vm3234_vm3, %v3103_v59, %v3298_v61  ;;  %v3415_v4 = vpack.c.bf16 %v3361_v63, %v3359_v62 }
 0x4a7   : > { %v3107_v5 = vadd.f32 %v3106_v0, %v6524_v19  ;;  %v3108_v6 = vpop.f32.mrb[149].mxu0  ;;  %v3416_v7 = vpack.c.bf16 %v3362_v3, %v3360_v1 }
 0x4a8   : > { %v3109_v8 = vadd.f32 %v3108_v6, %v6527_v33  ;;  %v3110_v9 = vpop.f32.mrb[150].mxu0 }
 0x4a9   : > { %v3299_v10 = vmul.f32 0.1, %v3107_v5  ;;  %v3111_v11 = vadd.f32 %v3110_v9, %v6524_v19  ;;  %v3112_v12 = vpop.f32.mrb[151].mxu0  ;;  %3638 = vmatprep.mubr.bf16.mxu1 %v3416_v7  ;;  %vm3235_vm4 = vcmp.gt.f32.partialorder %v3107_v5, 0.0 }
 0x4aa   : > { %v3300_v13 = vmul.f32 0.1, %v3109_v8  ;;  %v3113_v14 = vadd.f32 %v3112_v12, %v6527_v33  ;;  %3639 = vmatmul.mubr.bf16.gmra.mrb[144].mxu1 %v3415_v4  ;;  %vm3236_vm5 = vcmp.gt.f32.partialorder %v3109_v8, 0.0 }
 0x4ab   : > { %vm3237_vm6 = vcmp.gt.f32.partialorder %v3111_v11, 0.0  ;;  %v3301_v15 = vmul.f32 0.1, %v3111_v11  ;;  %v3363_v40 = vsel %vm3235_vm4, %v3107_v5, %v3299_v10 }
 0x4ac   : > { %vm3238_vm7 = vcmp.gt.f32.partialorder %v3113_v14, 0.0  ;;  %v3302_v16 = vmul.f32 0.1, %v3113_v14  ;;  %v3364_v20 = vsel %vm3236_vm5, %v3109_v8, %v3300_v13 }
 0x4ad   : > { %v3365_v17 = vsel %vm3237_vm6, %v3111_v11, %v3301_v15 }
 0x4ae   : > { %v3116_v18 = vpop.f32.mrb[152].mxu0  ;;  %v3366_v2 = vsel %vm3238_vm7, %v3113_v14, %v3302_v16  ;;  %v3417_v22 = vpack.c.bf16 %v3365_v17, %v3363_v40 }
 0x4af   : > { %v3117_v23 = vadd.f32 %v3116_v18, %v6524_v19  ;;  %v3118_v21 = vpop.f32.mrb[153].mxu0  ;;  %v3418_v24 = vpack.c.bf16 %v3366_v2, %v3364_v20 }
 0x4b0   : > { %v3119_v25 = vadd.f32 %v3118_v21, %v6527_v33  ;;  %v3120_v26 = vpop.f32.mrb[154].mxu0 }
 0x4b1   : > { %v3303_v27 = vmul.f32 0.1, %v3117_v23  ;;  %v3121_v28 = vadd.f32 %v3120_v26, %v6524_v19  ;;  %v3122_v29 = vpop.f32.mrb[155].mxu0  ;;  %3646 = vmatprep.mubr.bf16.mxu1 %v3418_v24  ;;  %vm3239_vm8 = vcmp.gt.f32.partialorder %v3117_v23, 0.0 }
 0x4b2   : > { %v3304_v30 = vmul.f32 0.1, %v3119_v25  ;;  %v3123_v31 = vadd.f32 %v3122_v29, %v6527_v33  ;;  %3647 = vmatmul.mubr.bf16.gmra.mrb[148].mxu1 %v3417_v22  ;;  %vm3240_vm9 = vcmp.gt.f32.partialorder %v3119_v25, 0.0 }
 0x4b3   : > { %vm3241_vm10 = vcmp.gt.f32.partialorder %v3121_v28, 0.0  ;;  %v3305_v32 = vmul.f32 0.1, %v3121_v28  ;;  %v3367_v37 = vsel %vm3239_vm8, %v3117_v23, %v3303_v27 }
 0x4b4   : > { %vm3242_vm11 = vcmp.gt.f32.partialorder %v3123_v31, 0.0  ;;  %v3306_v60 = vmul.f32 0.1, %v3123_v31  ;;  %v3368_v43 = vsel %vm3240_vm9, %v3119_v25, %v3304_v30 }
 0x4b5   : > { %v3369_v41 = vsel %vm3241_vm10, %v3121_v28, %v3305_v32 }
 0x4b6   : > { %v3126_v42 = vpop.f32.mrb[156].mxu0  ;;  %v3370_v44 = vsel %vm3242_vm11, %v3123_v31, %v3306_v60  ;;  %v3419_v45 = vpack.c.bf16 %v3369_v41, %v3367_v37 }
 0x4b7   : > { %v3127_v46 = vadd.f32 %v3126_v42, %v6524_v19  ;;  %v3128_v47 = vpop.f32.mrb[157].mxu0  ;;  %v3420_v48 = vpack.c.bf16 %v3370_v44, %v3368_v43 }
 0x4b8   : > { %v3129_v49 = vadd.f32 %v3128_v47, %v6527_v33  ;;  %v3130_v36 = vpop.f32.mrb[158].mxu0 }
 0x4b9   : > { %v3307_v38 = vmul.f32 0.1, %v3127_v46  ;;  %v3131_v50 = vadd.f32 %v3130_v36, %v6524_v19  ;;  %v3132_v51 = vpop.f32.mrb[159].mxu0  ;;  %3654 = vmatprep.mubr.bf16.mxu1 %v3420_v48  ;;  %vm3243_vm12 = vcmp.gt.f32.partialorder %v3127_v46, 0.0 }
 0x4ba   : > { %v3308_v52 = vmul.f32 0.1, %v3129_v49  ;;  %v3133_v53 = vadd.f32 %v3132_v51, %v6527_v33  ;;  %3655 = vmatmul.mubr.bf16.gmra.mrb[152].mxu1 %v3419_v45  ;;  %vm3244_vm13 = vcmp.gt.f32.partialorder %v3129_v49, 0.0 }
 0x4bb   : > { %vm3245_vm14 = vcmp.gt.f32.partialorder %v3131_v50, 0.0  ;;  %v3309_v54 = vmul.f32 0.1, %v3131_v50  ;;  %v3371_v56 = vsel %vm3243_vm12, %v3127_v46, %v3307_v38 }
 0x4bc   : > { %vm3246_vm15 = vcmp.gt.f32.partialorder %v3133_v53, 0.0  ;;  %v3310_v55 = vmul.f32 0.1, %v3133_v53  ;;  %v3372_v59 = vsel %vm3244_vm13, %v3129_v49, %v3308_v52 }
 0x4bd   : > { %v3373_v57 = vsel %vm3245_vm14, %v3131_v50, %v3309_v54 }
 0x4be   : > { %v3136_v58 = vpop.f32.mrb[160].mxu0  ;;  %v3374_v39 = vsel %vm3246_vm15, %v3133_v53, %v3310_v55  ;;  %v3421_v61 = vpack.c.bf16 %v3373_v57, %v3371_v56 }
 0x4bf   : > { %v3137_v62 = vadd.f32 %v3136_v58, %v6524_v19  ;;  %v3138_v63 = vpop.f32.mrb[161].mxu0  ;;  %v3422_v0 = vpack.c.bf16 %v3374_v39, %v3372_v59 }
 0x4c0   : > { %v3139_v1 = vadd.f32 %v3138_v63, %v6527_v33  ;;  %v3140_v3 = vpop.f32.mrb[162].mxu0 }
 0x4c1   : > { %v3311_v4 = vmul.f32 0.1, %v3137_v62  ;;  %v3141_v5 = vadd.f32 %v3140_v3, %v6524_v19  ;;  %v3142_v6 = vpop.f32.mrb[163].mxu0  ;;  %3662 = vmatprep.mubr.bf16.mxu1 %v3422_v0  ;;  %vm3247_vm0 = vcmp.gt.f32.partialorder %v3137_v62, 0.0 }
 0x4c2   : > { %v3312_v7 = vmul.f32 0.1, %v3139_v1  ;;  %v3143_v8 = vadd.f32 %v3142_v6, %v6527_v33  ;;  %3663 = vmatmul.mubr.bf16.gmra.mrb[156].mxu1 %v3421_v61  ;;  %vm3248_vm1 = vcmp.gt.f32.partialorder %v3139_v1, 0.0 }
 0x4c3   : > { %vm3249_vm2 = vcmp.gt.f32.partialorder %v3141_v5, 0.0  ;;  %v3313_v9 = vmul.f32 0.1, %v3141_v5  ;;  %v3375_v11 = vsel %vm3247_vm0, %v3137_v62, %v3311_v4 }
 0x4c4   : > { %vm3250_vm3 = vcmp.gt.f32.partialorder %v3143_v8, 0.0  ;;  %v3314_v10 = vmul.f32 0.1, %v3143_v8  ;;  %v3376_v14 = vsel %vm3248_vm1, %v3139_v1, %v3312_v7 }
 0x4c5   : > { %v3377_v12 = vsel %vm3249_vm2, %v3141_v5, %v3313_v9 }
 0x4c6   : > { %v3146_v13 = vpop.f32.mrb[164].mxu0  ;;  %v3378_v15 = vsel %vm3250_vm3, %v3143_v8, %v3314_v10  ;;  %v3423_v16 = vpack.c.bf16 %v3377_v12, %v3375_v11 }
 0x4c7   : > { %v3147_v40 = vadd.f32 %v3146_v13, %v6524_v19  ;;  %v3148_v17 = vpop.f32.mrb[165].mxu0  ;;  %v3424_v18 = vpack.c.bf16 %v3378_v15, %v3376_v14 }
 0x4c8   : > { %v3149_v20 = vadd.f32 %v3148_v17, %v6527_v33  ;;  %v3150_v2 = vpop.f32.mrb[166].mxu0 }
 0x4c9   : > { %v3315_v22 = vmul.f32 0.1, %v3147_v40  ;;  %v3151_v23 = vadd.f32 %v3150_v2, %v6524_v19  ;;  %v3152_v21 = vpop.f32.mrb[167].mxu0  ;;  %3670 = vmatprep.mubr.bf16.mxu1 %v3424_v18  ;;  %vm3251_vm4 = vcmp.gt.f32.partialorder %v3147_v40, 0.0 }
 0x4ca   : > { %v3316_v24 = vmul.f32 0.1, %v3149_v20  ;;  %v3153_v25 = vadd.f32 %v3152_v21, %v6527_v33  ;;  %3671 = vmatmul.mubr.bf16.gmra.mrb[160].mxu1 %v3423_v16  ;;  %vm3252_vm5 = vcmp.gt.f32.partialorder %v3149_v20, 0.0 }
 0x4cb   : > { %vm3253_vm6 = vcmp.gt.f32.partialorder %v3151_v23, 0.0  ;;  %v3317_v26 = vmul.f32 0.1, %v3151_v23  ;;  %v3379_v28 = vsel %vm3251_vm4, %v3147_v40, %v3315_v22 }
 0x4cc   : > { %vm3254_vm7 = vcmp.gt.f32.partialorder %v3153_v25, 0.0  ;;  %v3318_v27 = vmul.f32 0.1, %v3153_v25  ;;  %v3380_v31 = vsel %vm3252_vm5, %v3149_v20, %v3316_v24 }
 0x4cd   : > { %v3381_v29 = vsel %vm3253_vm6, %v3151_v23, %v3317_v26 }
 0x4ce   : > { %v3156_v30 = vpop.f32.mrb[168].mxu0  ;;  %v3382_v32 = vsel %vm3254_vm7, %v3153_v25, %v3318_v27  ;;  %v3425_v60 = vpack.c.bf16 %v3381_v29, %v3379_v28 }
 0x4cf   : > { %v3157_v37 = vadd.f32 %v3156_v30, %v6524_v19  ;;  %v3158_v41 = vpop.f32.mrb[169].mxu0  ;;  %v3426_v42 = vpack.c.bf16 %v3382_v32, %v3380_v31 }
 0x4d0   : > { %v3159_v43 = vadd.f32 %v3158_v41, %v6527_v33  ;;  %v3160_v44 = vpop.f32.mrb[170].mxu0 }
 0x4d1   : > { %v3319_v45 = vmul.f32 0.1, %v3157_v37  ;;  %v3161_v46 = vadd.f32 %v3160_v44, %v6524_v19  ;;  %v3162_v47 = vpop.f32.mrb[171].mxu0  ;;  %3678 = vmatprep.mubr.bf16.mxu1 %v3426_v42  ;;  %vm3255_vm8 = vcmp.gt.f32.partialorder %v3157_v37, 0.0 }
 0x4d2   : > { %v3320_v48 = vmul.f32 0.1, %v3159_v43  ;;  %v3163_v49 = vadd.f32 %v3162_v47, %v6527_v33  ;;  %3679 = vmatmul.mubr.bf16.gmra.mrb[164].mxu1 %v3425_v60  ;;  %vm3256_vm9 = vcmp.gt.f32.partialorder %v3159_v43, 0.0 }
 0x4d3   : > { %vm3257_vm10 = vcmp.gt.f32.partialorder %v3161_v46, 0.0  ;;  %v3321_v36 = vmul.f32 0.1, %v3161_v46  ;;  %v3383_v50 = vsel %vm3255_vm8, %v3157_v37, %v3319_v45 }
 0x4d4   : > { %vm3258_vm11 = vcmp.gt.f32.partialorder %v3163_v49, 0.0  ;;  %v3322_v38 = vmul.f32 0.1, %v3163_v49  ;;  %v3384_v53 = vsel %vm3256_vm9, %v3159_v43, %v3320_v48 }
 0x4d5   : > { %v3385_v51 = vsel %vm3257_vm10, %v3161_v46, %v3321_v36 }
 0x4d6   : > { %v3166_v52 = vpop.f32.mrb[172].mxu0  ;;  %v3386_v54 = vsel %vm3258_vm11, %v3163_v49, %v3322_v38  ;;  %v3427_v55 = vpack.c.bf16 %v3385_v51, %v3383_v50 }
 0x4d7   : > { %v3167_v56 = vadd.f32 %v3166_v52, %v6524_v19  ;;  %v3168_v57 = vpop.f32.mrb[173].mxu0  ;;  %v3428_v58 = vpack.c.bf16 %v3386_v54, %v3384_v53 }
 0x4d8   : > { %v3169_v59 = vadd.f32 %v3168_v57, %v6527_v33  ;;  %v3170_v39 = vpop.f32.mrb[174].mxu0 }
 0x4d9   : > { %v3323_v61 = vmul.f32 0.1, %v3167_v56  ;;  %v3171_v62 = vadd.f32 %v3170_v39, %v6524_v19  ;;  %v3172_v63 = vpop.f32.mrb[175].mxu0  ;;  %3686 = vmatprep.mubr.bf16.mxu1 %v3428_v58  ;;  %vm3259_vm12 = vcmp.gt.f32.partialorder %v3167_v56, 0.0 }
 0x4da   : > { %v3324_v0 = vmul.f32 0.1, %v3169_v59  ;;  %v3173_v1 = vadd.f32 %v3172_v63, %v6527_v33  ;;  %3687 = vmatmul.mubr.bf16.gmra.mrb[168].mxu1 %v3427_v55  ;;  %vm3260_vm13 = vcmp.gt.f32.partialorder %v3169_v59, 0.0 }
 0x4db   : > { %vm3261_vm14 = vcmp.gt.f32.partialorder %v3171_v62, 0.0  ;;  %v3325_v3 = vmul.f32 0.1, %v3171_v62  ;;  %v3387_v5 = vsel %vm3259_vm12, %v3167_v56, %v3323_v61 }
 0x4dc   : > { %vm3262_vm15 = vcmp.gt.f32.partialorder %v3173_v1, 0.0  ;;  %v3326_v4 = vmul.f32 0.1, %v3173_v1  ;;  %v3388_v8 = vsel %vm3260_vm13, %v3169_v59, %v3324_v0 }
 0x4dd   : > { %v3389_v6 = vsel %vm3261_vm14, %v3171_v62, %v3325_v3 }
 0x4de   : > { %v3176_v7 = vpop.f32.mrb[176].mxu0  ;;  %v3390_v9 = vsel %vm3262_vm15, %v3173_v1, %v3326_v4  ;;  %v3429_v10 = vpack.c.bf16 %v3389_v6, %v3387_v5 }
 0x4df   : > { %v3177_v11 = vadd.f32 %v3176_v7, %v6524_v19  ;;  %v3178_v12 = vpop.f32.mrb[177].mxu0  ;;  %v3430_v13 = vpack.c.bf16 %v3390_v9, %v3388_v8 }
 0x4e0   : > { %v3179_v14 = vadd.f32 %v3178_v12, %v6527_v33  ;;  %v3180_v15 = vpop.f32.mrb[178].mxu0 }
 0x4e1   : > { %v3327_v16 = vmul.f32 0.1, %v3177_v11  ;;  %v3181_v40 = vadd.f32 %v3180_v15, %v6524_v19  ;;  %v3182_v17 = vpop.f32.mrb[179].mxu0  ;;  %3694 = vmatprep.mubr.bf16.mxu1 %v3430_v13  ;;  %vm3263_vm0 = vcmp.gt.f32.partialorder %v3177_v11, 0.0 }
 0x4e2   : > { %v3328_v18 = vmul.f32 0.1, %v3179_v14  ;;  %v3183_v20 = vadd.f32 %v3182_v17, %v6527_v33  ;;  %3695 = vmatmul.mubr.bf16.gmra.mrb[172].mxu1 %v3429_v10  ;;  %vm3264_vm1 = vcmp.gt.f32.partialorder %v3179_v14, 0.0 }
 0x4e3   : > { %vm3265_vm2 = vcmp.gt.f32.partialorder %v3181_v40, 0.0  ;;  %v3329_v2 = vmul.f32 0.1, %v3181_v40  ;;  %v3391_v23 = vsel %vm3263_vm0, %v3177_v11, %v3327_v16 }
 0x4e4   : > { %vm3266_vm3 = vcmp.gt.f32.partialorder %v3183_v20, 0.0  ;;  %v3330_v22 = vmul.f32 0.1, %v3183_v20  ;;  %v3392_v25 = vsel %vm3264_vm1, %v3179_v14, %v3328_v18 }
 0x4e5   : > { %v3393_v21 = vsel %vm3265_vm2, %v3181_v40, %v3329_v2 }
 0x4e6   : > { %v3186_v24 = vpop.f32.mrb[180].mxu0  ;;  %v3394_v26 = vsel %vm3266_vm3, %v3183_v20, %v3330_v22  ;;  %v3431_v27 = vpack.c.bf16 %v3393_v21, %v3391_v23  ;;  %v6596_v23 = vld [vmem:[%s6963_s15] ss:$0 sm:$0xff] }
 0x4e7   : > { %v3187_v28 = vadd.f32 %v3186_v24, %v6524_v19  ;;  %v3188_v29 = vpop.f32.mrb[181].mxu0  ;;  %v3432_v30 = vpack.c.bf16 %v3394_v26, %v3392_v25 }
 0x4e8   : > { %v3189_v31 = vadd.f32 %v3188_v29, %v6527_v33  ;;  %v3190_v32 = vpop.f32.mrb[182].mxu0 }
 0x4e9   : > { %v3331_v60 = vmul.f32 0.1, %v3187_v28  ;;  %v3191_v37 = vadd.f32 %v3190_v32, %v6524_v19  ;;  %v3192_v41 = vpop.f32.mrb[183].mxu0  ;;  %3702 = vmatprep.mubr.bf16.mxu1 %v3432_v30  ;;  %vm3267_vm4 = vcmp.gt.f32.partialorder %v3187_v28, 0.0 }
 0x4ea   : > { %v3332_v42 = vmul.f32 0.1, %v3189_v31  ;;  %v3193_v43 = vadd.f32 %v3192_v41, %v6527_v33  ;;  %3703 = vmatmul.mubr.bf16.gmra.mrb[176].mxu1 %v3431_v27  ;;  %vm3268_vm5 = vcmp.gt.f32.partialorder %v3189_v31, 0.0 }
 0x4eb   : > { %vm3269_vm6 = vcmp.gt.f32.partialorder %v3191_v37, 0.0  ;;  %v3333_v44 = vmul.f32 0.1, %v3191_v37  ;;  %v3395_v46 = vsel %vm3267_vm4, %v3187_v28, %v3331_v60 }
 0x4ec   : > { %vm3270_vm7 = vcmp.gt.f32.partialorder %v3193_v43, 0.0  ;;  %v3334_v45 = vmul.f32 0.1, %v3193_v43  ;;  %v3396_v49 = vsel %vm3268_vm5, %v3189_v31, %v3332_v42 }
 0x4ed   : > { %v3397_v47 = vsel %vm3269_vm6, %v3191_v37, %v3333_v44 }
 0x4ee   : > { %v3196_v48 = vpop.f32.mrb[184].mxu0  ;;  %v3398_v36 = vsel %vm3270_vm7, %v3193_v43, %v3334_v45  ;;  %v3433_v38 = vpack.c.bf16 %v3397_v47, %v3395_v46  ;;  %v6605_v45 = vld [vmem:[%s6981_s3] sm:$0x1] }
 0x4ef   : > { %v3197_v50 = vadd.f32 %v3196_v48, %v6524_v19  ;;  %v3198_v51 = vpop.f32.mrb[185].mxu0  ;;  %v3434_v52 = vpack.c.bf16 %v3398_v36, %v3396_v49  ;;  %5190 = vmatprep.mubr.f32.mxu0 %v6605_v45  ;;  %v5615_v47 = vld [vmem:[%s5827_s29] sm:$0xff] }
 0x4f0   : > { %v3199_v53 = vadd.f32 %v3198_v51, %v6527_v33  ;;  %v3200_v54 = vpop.f32.mrb[186].mxu0 }
 0x4f1   : > { %v3335_v55 = vmul.f32 0.1, %v3197_v50  ;;  %v3201_v56 = vadd.f32 %v3200_v54, %v6524_v19  ;;  %v3202_v57 = vpop.f32.mrb[187].mxu0  ;;  %3710 = vmatprep.mubr.bf16.mxu1 %v3434_v52  ;;  %vm3271_vm8 = vcmp.gt.f32.partialorder %v3197_v50, 0.0  ;;  %v5616_v54 = vld [vmem:[%s5827_s29 + $0x8] sm:$0xff] }
 0x4f2   : > { %v3336_v58 = vmul.f32 0.1, %v3199_v53  ;;  %v3203_v59 = vadd.f32 %v3202_v57, %v6527_v33  ;;  %3711 = vmatmul.mubr.bf16.gmra.mrb[180].mxu1 %v3433_v38  ;;  %vm3272_vm9 = vcmp.gt.f32.partialorder %v3199_v53, 0.0 }
 0x4f3   : > { %vm3273_vm10 = vcmp.gt.f32.partialorder %v3201_v56, 0.0  ;;  %v3337_v39 = vmul.f32 0.1, %v3201_v56  ;;  %v3399_v62 = vsel %vm3271_vm8, %v3197_v50, %v3335_v55 }
 0x4f4   : > { %vm3274_vm11 = vcmp.gt.f32.partialorder %v3203_v59, 0.0  ;;  %v3338_v61 = vmul.f32 0.1, %v3203_v59  ;;  %v3400_v1 = vsel %vm3272_vm9, %v3199_v53, %v3336_v58 }
 0x4f5   : > { %v3401_v63 = vsel %vm3273_vm10, %v3201_v56, %v3337_v39 }
 0x4f6   : > { %v3206_v0 = vpop.f32.mrb[188].mxu0  ;;  %v3402_v3 = vsel %vm3274_vm11, %v3203_v59, %v3338_v61  ;;  %v3435_v4 = vpack.c.bf16 %v3401_v63, %v3399_v62  ;;  %v6970_v62 = vmov 1.0  }
 0x4f7   : > { %v3207_v5 = vadd.f32 %v3206_v0, %v6524_v19  ;;  %v3208_v6 = vpop.f32.mrb[189].mxu0  ;;  %v3436_v7 = vpack.c.bf16 %v3402_v3, %v3400_v1 }
 0x4f8   : > { %v3209_v8 = vadd.f32 %v3208_v6, %v6527_v33  ;;  %v3210_v9 = vpop.f32.mrb[190].mxu0 }
 0x4f9   : > { %v3339_v10 = vmul.f32 0.1, %v3207_v5  ;;  %v3211_v11 = vadd.f32 %v3210_v9, %v6524_v19  ;;  %v3212_v12 = vpop.f32.mrb[191].mxu0  ;;  %3718 = vmatprep.mubr.bf16.mxu1 %v3436_v7  ;;  %vm3275_vm12 = vcmp.gt.f32.partialorder %v3207_v5, 0.0 }
 0x4fa   : > { %v3340_v13 = vmul.f32 0.1, %v3209_v8  ;;  %v3213_v14 = vadd.f32 %v3212_v12, %v6527_v33  ;;  %3719 = vmatmul.mubr.bf16.gmra.mrb[184].mxu1 %v3435_v4  ;;  %vm3276_vm13 = vcmp.gt.f32.partialorder %v3209_v8, 0.0  ;;  %v5617_v4 = vld [vmem:[%s5827_s29 + $0x10] sm:$0xff] }
 0x4fb   : > { %vm3277_vm14 = vcmp.gt.f32.partialorder %v3211_v11, 0.0  ;;  %v3341_v15 = vmul.f32 0.1, %v3211_v11  ;;  %v3403_v40 = vsel %vm3275_vm12, %v3207_v5, %v3339_v10 }
 0x4fc   : > { %vm3278_vm15 = vcmp.gt.f32.partialorder %v3213_v14, 0.0  ;;  %v3342_v16 = vmul.f32 0.1, %v3213_v14  ;;  %v3404_v18 = vsel %vm3276_vm13, %v3209_v8, %v3340_v13  ;;  %v5618_v13 = vld [vmem:[%s5827_s29 + $0x18] sm:$0xff] }
 0x4fd   : > { %v3405_v17 = vsel %vm3277_vm14, %v3211_v11, %v3341_v15 }
 0x4fe   : > { %v3406_v20 = vsel %vm3278_vm15, %v3213_v14, %v3342_v16  ;;  %v3437_v2 = vpack.c.bf16 %v3405_v17, %v3403_v40 }
 0x4ff   : > { %v3438_v22 = vpack.c.bf16 %v3406_v20, %v3404_v18 }
 0x501   : > { %3726 = vmatprep.mubr.bf16.mxu1 %v3438_v22 }
 0x502   : > { %3727 = vmatmul.mubr.bf16.gmra.mrb[188].mxu1 %v3437_v2 }
 0x503   : > { %5224 = vmatprep.mubr.f32.mxu1 %v6970_v62 }
 0x55d   : > { %v5062_v19 = vpop.f32.mrb[128].mxu1 }
 0x55e   : > { %v5063_v33 = vpop.f32.mrb[129].mxu1 }
 0x55f   : > { %v5064_v21 = vadd.f32 %v5063_v33, %v5062_v19  ;;  %v5065_v24 = vpop.f32.mrb[130].mxu1 }
 0x560   : > { %v5066_v25 = vpop.f32.mrb[131].mxu1 }
 0x561   : > { %v3609_v26 = vadd.f32 %v5064_v21, %v6596_v23  ;;  %v5067_v27 = vadd.f32 %v5066_v25, %v5065_v24  ;;  %v5619_v21 = vld [vmem:[%s5827_s29 + $0x20] sm:$0xff] }
 0x563   : > { %5543 = vtanh.f32 %v3609_v26  ;;  %v3612_v28 = vadd.f32 %v5067_v27, %v6596_v23 }
 0x565   : > { %5545 = vtanh.f32 %v3612_v28  ;;  %v5068_v29 = vpop.f32.mrb[132].mxu1 }
 0x566   : > { %v5069_v30 = vpop.f32.mrb[133].mxu1 }
 0x567   : > { %v5070_v31 = vadd.f32 %v5069_v30, %v5068_v29  ;;  %v5071_v32 = vpop.f32.mrb[134].mxu1 }
 0x568   : > { %v5072_v60 = vpop.f32.mrb[135].mxu1 }
 0x569   : > { %v3617_v37 = vadd.f32 %v5070_v31, %v6596_v23  ;;  %v5073_v41 = vadd.f32 %v5072_v60, %v5071_v32  ;;  %v5620_v32 = vld [vmem:[%s5827_s29 + $0x28] sm:$0xff] }
 0x56b   : > { %5547 = vtanh.f32 %v3617_v37  ;;  %v3620_v42 = vadd.f32 %v5073_v41, %v6596_v23 }
 0x56d   : > { %v5544_v43 = vpop.eup %5543  ;;  %5549 = vtanh.f32 %v3620_v42  ;;  %v5074_v44 = vpop.f32.mrb[136].mxu1 }
 0x56e   : > { %v5075_v46 = vpop.f32.mrb[137].mxu1  ;;  %v3999_v48 = vsub.f32 %v5544_v43, %v5615_v47  ;;  %v6618_v52 = vmul.f32 %v5544_v43, %v5544_v43 }
 0x56f   : > { %v5546_v49 = vpop.eup %5545  ;;  %v5076_v36 = vadd.f32 %v5075_v46, %v5074_v44  ;;  %v5077_v38 = vpop.f32.mrb[138].mxu1 }
 0x570   : > { %v5078_v50 = vpop.f32.mrb[139].mxu1  ;;  %v6616_v51 = vpack.c.bf16 %v5546_v49, %v5544_v43  ;;  %v6620_v53 = vmul.f32 %v5546_v49, %v5546_v49  ;;  %v4000_v55 = vsub.f32 %v5546_v49, %v5616_v54  ;;  %v6628_v59 = vmul.f32 %v3999_v48, %v3999_v48 }
 0x571   : > { %v3625_v56 = vadd.f32 %v5076_v36, %v6596_v23  ;;  %v5079_v57 = vadd.f32 %v5078_v50, %v5077_v38  ;;  %v5621_v38 = vld [vmem:[%s5827_s29 + $0x30] sm:$0xff] }
 0x572   : > { %4828 = vst [vmem:[%s6614_s28] sm:$0xff] %v6616_v51   ;;  %v5294_v58 = vpack.c.bf16 %v6620_v53, %v6618_v52  ;;  %v6630_v39 = vmul.f32 %v4000_v55, %v4000_v55 }
 0x573   : > { %5551 = vtanh.f32 %v3625_v56  ;;  %v3628_v61 = vadd.f32 %v5079_v57, %v6596_v23 }
 0x575   : > { %v5548_v0 = vpop.eup %5547  ;;  %5553 = vtanh.f32 %v3628_v61  ;;  %v5080_v1 = vpop.f32.mrb[140].mxu1 }
 0x576   : > { %v5081_v3 = vpop.f32.mrb[141].mxu1  ;;  %v4001_v5 = vsub.f32 %v5548_v0, %v5617_v4  ;;  %v6639_v11 = vmul.f32 %v5548_v0, %v5548_v0 }
 0x577   : > { %v5550_v6 = vpop.eup %5549  ;;  %v5082_v7 = vadd.f32 %v5081_v3, %v5080_v1  ;;  %v5083_v8 = vpop.f32.mrb[142].mxu1  ;;  %v5622_v3 = vld [vmem:[%s5827_s29 + $0x38] sm:$0xff] }
 0x578   : > { %v5084_v9 = vpop.f32.mrb[143].mxu1  ;;  %v6637_v10 = vpack.c.bf16 %v5550_v6, %v5548_v0  ;;  %v6641_v12 = vmul.f32 %v5550_v6, %v5550_v6  ;;  %v4002_v14 = vsub.f32 %v5550_v6, %v5618_v13  ;;  %v6649_v17 = vmul.f32 %v4001_v5, %v4001_v5 }
 0x579   : > { %v3633_v15 = vadd.f32 %v5082_v7, %v6596_v23  ;;  %v5085_v16 = vadd.f32 %v5084_v9, %v5083_v8 }
 0x57a   : > { %4919 = vst [vmem:[%s6614_s28 + $0x8] sm:$0xff] %v6637_v10   ;;  %v5298_v40 = vpack.c.bf16 %v6641_v12, %v6639_v11  ;;  %v6651_v18 = vmul.f32 %v4002_v14, %v4002_v14 }
 0x57b   : > { %5555 = vtanh.f32 %v3633_v15  ;;  %v3636_v20 = vadd.f32 %v5085_v16, %v6596_v23 }
 0x57d   : > { %v5552_v22 = vpop.eup %5551  ;;  %5557 = vtanh.f32 %v3636_v20  ;;  %v5086_v19 = vpop.f32.mrb[144].mxu1 }
 0x57e   : > { %v5087_v33 = vpop.f32.mrb[145].mxu1  ;;  %v4003_v24 = vsub.f32 %v5552_v22, %v5619_v21  ;;  %v6659_v30 = vmul.f32 %v5552_v22, %v5552_v22 }
 0x57f   : > { %v5554_v25 = vpop.eup %5553  ;;  %v5088_v26 = vadd.f32 %v5087_v33, %v5086_v19  ;;  %v5089_v27 = vpop.f32.mrb[146].mxu1 }
 0x580   : > { %v5090_v28 = vpop.f32.mrb[147].mxu1  ;;  %v6657_v29 = vpack.c.bf16 %v5554_v25, %v5552_v22  ;;  %v6661_v31 = vmul.f32 %v5554_v25, %v5554_v25  ;;  %v4004_v60 = vsub.f32 %v5554_v25, %v5620_v32  ;;  %v6669_v43 = vmul.f32 %v4003_v24, %v4003_v24  ;;  %v5623_v22 = vld [vmem:[%s5827_s29 + $0x40] sm:$0xff]  ;;  %v5624_v32 = vld [vmem:[%s5827_s29 + $0x48] sm:$0xff] }
 0x581   : > { %v3641_v37 = vadd.f32 %v5088_v26, %v6596_v23  ;;  %v5091_v41 = vadd.f32 %v5090_v28, %v5089_v27 }
 0x582   : > { %4920 = vst [vmem:[%s6614_s28 + $0x10] sm:$0xff] %v6657_v29   ;;  %v6671_v44 = vmul.f32 %v4004_v60, %v4004_v60 }
 0x583   : > { %5559 = vtanh.f32 %v3641_v37  ;;  %v3644_v46 = vadd.f32 %v5091_v41, %v6596_v23 }
 0x585   : > { %v5556_v48 = vpop.eup %5555  ;;  %5561 = vtanh.f32 %v3644_v46  ;;  %v5092_v49 = vpop.f32.mrb[148].mxu1 }
 0x586   : > { %v5093_v36 = vpop.f32.mrb[149].mxu1  ;;  %v4005_v50 = vsub.f32 %v5556_v48, %v5621_v38  ;;  %v6679_v0 = vmul.f32 %v5556_v48, %v5556_v48 }
 0x587   : > { %v5558_v54 = vpop.eup %5557  ;;  %v5094_v55 = vadd.f32 %v5093_v36, %v5092_v49  ;;  %v5095_v56 = vpop.f32.mrb[150].mxu1 }
 0x588   : > { %v5096_v57 = vpop.f32.mrb[151].mxu1  ;;  %v6677_v61 = vpack.c.bf16 %v5558_v54, %v5556_v48  ;;  %v6681_v1 = vmul.f32 %v5558_v54, %v5558_v54  ;;  %v4006_v4 = vsub.f32 %v5558_v54, %v5622_v3  ;;  %v6689_v8 = vmul.f32 %v4005_v50, %v4005_v50 }
 0x589   : > { %v3649_v5 = vadd.f32 %v5094_v55, %v6596_v23  ;;  %v5097_v6 = vadd.f32 %v5096_v57, %v5095_v56  ;;  %v5625_v56 = vld [vmem:[%s5827_s29 + $0x50] sm:$0xff] }
 0x58a   : > { %4921 = vst [vmem:[%s6614_s28 + $0x18] sm:$0xff] %v6677_v61   ;;  %v6691_v9 = vmul.f32 %v4006_v4, %v4006_v4 }
 0x58b   : > { %5563 = vtanh.f32 %v3649_v5  ;;  %v3652_v13 = vadd.f32 %v5097_v6, %v6596_v23 }
 0x58d   : > { %v5560_v15 = vpop.eup %5559  ;;  %5565 = vtanh.f32 %v3652_v13  ;;  %v5098_v16 = vpop.f32.mrb[152].mxu1 }
 0x58e   : > { %v5099_v20 = vpop.f32.mrb[153].mxu1  ;;  %v4007_v19 = vsub.f32 %v5560_v15, %v5623_v22  ;;  %v6699_v27 = vmul.f32 %v5560_v15, %v5560_v15 }
 0x58f   : > { %v5562_v33 = vpop.eup %5561  ;;  %v5100_v21 = vadd.f32 %v5099_v20, %v5098_v16  ;;  %v5101_v24 = vpop.f32.mrb[154].mxu1  ;;  %v5626_v20 = vld [vmem:[%s5827_s29 + $0x58] sm:$0xff] }
 0x590   : > { %v5102_v25 = vpop.f32.mrb[155].mxu1  ;;  %v6697_v26 = vpack.c.bf16 %v5562_v33, %v5560_v15  ;;  %v6701_v28 = vmul.f32 %v5562_v33, %v5562_v33  ;;  %v4008_v60 = vsub.f32 %v5562_v33, %v5624_v32  ;;  %v6709_v48 = vmul.f32 %v4007_v19, %v4007_v19 }
 0x591   : > { %v3657_v37 = vadd.f32 %v5100_v21, %v6596_v23  ;;  %v5103_v41 = vadd.f32 %v5102_v25, %v5101_v24  ;;  %v5632_v21 = vld [vmem:[%s5827_s29 + $0x88] sm:$0xff] }
 0x592   : > { %4922 = vst [vmem:[%s6614_s28 + $0x20] sm:$0xff] %v6697_v26   ;;  %v6711_v49 = vmul.f32 %v4008_v60, %v4008_v60 }
 0x593   : > { %5567 = vtanh.f32 %v3657_v37  ;;  %v3660_v36 = vadd.f32 %v5103_v41, %v6596_v23 }
 0x595   : > { %v5564_v50 = vpop.eup %5563  ;;  %5569 = vtanh.f32 %v3660_v36  ;;  %v5104_v54 = vpop.f32.mrb[156].mxu1 }
 0x596   : > { %v5105_v55 = vpop.f32.mrb[157].mxu1  ;;  %v4009_v57 = vsub.f32 %v5564_v50, %v5625_v56  ;;  %v6719_v15 = vmul.f32 %v5564_v50, %v5564_v50 }
 0x597   : > { %v5566_v3 = vpop.eup %5565  ;;  %v5106_v4 = vadd.f32 %v5105_v55, %v5104_v54  ;;  %v5107_v5 = vpop.f32.mrb[158].mxu1 }
 0x598   : > { %v5108_v6 = vpop.f32.mrb[159].mxu1  ;;  %v6717_v13 = vpack.c.bf16 %v5566_v3, %v5564_v50  ;;  %v6721_v16 = vmul.f32 %v5566_v3, %v5566_v3  ;;  %v4010_v22 = vsub.f32 %v5566_v3, %v5626_v20  ;;  %v6729_v24 = vmul.f32 %v4009_v57, %v4009_v57  ;;  %v5627_v50 = vld [vmem:[%s5827_s29 + $0x60] sm:$0xff]  ;;  %v5628_v20 = vld [vmem:[%s5827_s29 + $0x68] sm:$0xff] }
 0x599   : > { %v3665_v19 = vadd.f32 %v5106_v4, %v6596_v23  ;;  %v5109_v33 = vadd.f32 %v5108_v6, %v5107_v5 }
 0x59a   : > { %4923 = vst [vmem:[%s6614_s28 + $0x28] sm:$0xff] %v6717_v13   ;;  %v6731_v25 = vmul.f32 %v4010_v22, %v4010_v22 }
 0x59b   : > { %5571 = vtanh.f32 %v3665_v19  ;;  %v3668_v32 = vadd.f32 %v5109_v33, %v6596_v23 }
 0x59d   : > { %v5568_v37 = vpop.eup %5567  ;;  %5573 = vtanh.f32 %v3668_v32  ;;  %v5110_v41 = vpop.f32.mrb[160].mxu1 }
 0x59e   : > { %v5111_v36 = vpop.f32.mrb[161].mxu1  ;;  %v4011_v54 = vsub.f32 %v5568_v37, %v5627_v50  ;;  %v6739_v5 = vmul.f32 %v5568_v37, %v5568_v37 }
 0x59f   : > { %v5570_v55 = vpop.eup %5569  ;;  %v5112_v56 = vadd.f32 %v5111_v36, %v5110_v41  ;;  %v5113_v57 = vpop.f32.mrb[162].mxu1 }
 0x5a0   : > { %v5114_v3 = vpop.f32.mrb[163].mxu1  ;;  %v6737_v4 = vpack.c.bf16 %v5570_v55, %v5568_v37  ;;  %v6741_v6 = vmul.f32 %v5570_v55, %v5570_v55  ;;  %v4012_v22 = vsub.f32 %v5570_v55, %v5628_v20  ;;  %v6749_v41 = vmul.f32 %v4011_v54, %v4011_v54 }
 0x5a1   : > { %v3673_v19 = vadd.f32 %v5112_v56, %v6596_v23  ;;  %v5115_v33 = vadd.f32 %v5114_v3, %v5113_v57  ;;  %v5629_v3 = vld [vmem:[%s5827_s29 + $0x70] sm:$0xff] }
 0x5a2   : > { %4924 = vst [vmem:[%s6614_s28 + $0x30] sm:$0xff] %v6737_v4   ;;  %v6751_v36 = vmul.f32 %v4012_v22, %v4012_v22 }
 0x5a3   : > { %5575 = vtanh.f32 %v3673_v19  ;;  %v3676_v37 = vadd.f32 %v5115_v33, %v6596_v23  ;;  %v5630_v33 = vld [vmem:[%s5827_s29 + $0x78] sm:$0xff] }
 0x5a5   : > { %v5572_v55 = vpop.eup %5571  ;;  %5577 = vtanh.f32 %v3676_v37  ;;  %v5116_v56 = vpop.f32.mrb[164].mxu1 }
 0x5a6   : > { %v5117_v57 = vpop.f32.mrb[165].mxu1  ;;  %v4013_v20 = vsub.f32 %v5572_v55, %v5629_v3  ;;  %v6759_v19 = vmul.f32 %v5572_v55, %v5572_v55 }
 0x5a7   : > { %v5574_v34 = vpop.eup %5573  ;;  %v5118_v60 = vadd.f32 %v5117_v57, %v5116_v56  ;;  %v5119_v54 = vpop.f32.mrb[166].mxu1 }
 0x5a8   : > { %v5120_v38 = vpop.f32.mrb[167].mxu1  ;;  %v6757_v22 = vpack.c.bf16 %v5574_v34, %v5572_v55  ;;  %v6761_v14 = vmul.f32 %v5574_v34, %v5574_v34  ;;  %v4014_v50 = vsub.f32 %v5574_v34, %v5630_v33  ;;  %v6769_v56 = vmul.f32 %v4013_v20, %v4013_v20 }
 0x5a9   : > { %v3681_v37 = vadd.f32 %v5118_v60, %v6596_v23  ;;  %v5121_v47 = vadd.f32 %v5120_v38, %v5119_v54  ;;  %v5631_v54 = vld [vmem:[%s5827_s29 + $0x80] sm:$0xff] }
 0x5aa   : > { %4925 = vst [vmem:[%s6614_s28 + $0x38] sm:$0xff] %v6757_v22   ;;  %v6771_v57 = vmul.f32 %v4014_v50, %v4014_v50 }
 0x5ab   : > { %5579 = vtanh.f32 %v3681_v37  ;;  %v3684_v55 = vadd.f32 %v5121_v47, %v6596_v23 }
 0x5ad   : > { %v5576_v34 = vpop.eup %5575  ;;  %5581 = vtanh.f32 %v3684_v55  ;;  %v5122_v38 = vpop.f32.mrb[168].mxu1 }
 0x5ae   : > { %v5123_v60 = vpop.f32.mrb[169].mxu1  ;;  %v4015_v33 = vsub.f32 %v5576_v34, %v5631_v54  ;;  %v4047_v32 = vmul.f32 %v5576_v34, %v5576_v34 }
 0x5af   : > { %v5578_v62 = vpop.eup %5577  ;;  %v5124_v63 = vadd.f32 %v5123_v60, %v5122_v38  ;;  %v5125_v20 = vpop.f32.mrb[170].mxu1 }
 0x5b0   : > { %v5126_v3 = vpop.f32.mrb[171].mxu1  ;;  %v4867_v50 = vpack.c.bf16 %v5578_v62, %v5576_v34  ;;  %v4048_v37 = vmul.f32 %v5578_v62, %v5578_v62  ;;  %v4016_v46 = vsub.f32 %v5578_v62, %v5632_v21  ;;  %v6780_v2 = vmul.f32 %v4015_v33, %v4015_v33 }
 0x5b1   : > { %v3689_v47 = vadd.f32 %v5124_v63, %v6596_v23  ;;  %v5127_v7 = vadd.f32 %v5126_v3, %v5125_v20 }
 0x5b2   : > { %4926 = vst [vmem:[%s6614_s28 + $0x40] sm:$0xff] %v4867_v50   ;;  %5261 = vmatprep.subr.bf16.mxu0 %v4867_v50  ;;  %v5292_v55 = vpack.c.bf16 %v4048_v37, %v4047_v32  ;;  %v6782_v42 = vmul.f32 %v4016_v46, %v4016_v46  ;;  %v5633_v32 = vld [vmem:[%s5827_s29 + $0x90] sm:$0xff]  ;;  %v5634_v50 = vld [vmem:[%s5827_s29 + $0x98] sm:$0xff] }
 0x5b3   : > { %5583 = vtanh.f32 %v3689_v47  ;;  %v3692_v38 = vadd.f32 %v5127_v7, %v6596_v23  ;;  %5263 = vmatpush3.bf16.xpose.msra.mxu0 %v6616_v51 }
 0x5b4   : > { %5293 = vmatprep.subr.bf16.mxu1 %v5292_v55  ;;  %v5324_v62 = vpack.c.bf16 %v6782_v42, %v6780_v2  ;;  %v6990_v2 = vpack.c.bf16 %v6651_v18, %v6649_v17  ;;  %v6994_v17 = vpack.c.bf16 %v6731_v25, %v6729_v24  ;;  %v6995_v18 = vpack.c.bf16 %v6751_v36, %v6749_v41 }
 0x5b5   : > { %v5580_v63 = vpop.eup %5579  ;;  %5585 = vtanh.f32 %v3692_v38  ;;  %v5128_v21 = vpop.f32.mrb[172].mxu1  ;;  %5295 = vmatpush3.bf16.xpose.msra.mxu1 %v5294_v58  ;;  %v6996_v42 = vpack.c.bf16 %v6771_v57, %v6769_v56  ;;  %v4252_v36 = vstv %s4237_s23 }
 0x5b6   : > { %v5129_v46 = vpop.f32.mrb[173].mxu1  ;;  %v4017_v3 = vsub.f32 %v5580_v63, %v5633_v32  ;;  %v4049_v33 = vmul.f32 %v5580_v63, %v5580_v63 }
 0x5b7   : > { %v5582_v34 = vpop.eup %5581  ;;  %v5130_v7 = vadd.f32 %v5129_v46, %v5128_v21  ;;  %v5131_v60 = vpop.f32.mrb[174].mxu1 }
 0x5b8   : > { %v5132_v51 = vpop.f32.mrb[175].mxu1  ;;  %v4872_v54 = vpack.c.bf16 %v5582_v34, %v5580_v63  ;;  %v4050_v20 = vmul.f32 %v5582_v34, %v5582_v34  ;;  %v4018_v37 = vsub.f32 %v5582_v34, %v5634_v50  ;;  %v6795_v53 = vmul.f32 %v4017_v3, %v4017_v3  ;;  %v5635_v3 = vld [vmem:[%s5827_s29 + $0xa0] sm:$0xff]  ;;  %v5636_v50 = vld [vmem:[%s5827_s29 + $0xa8] sm:$0xff] }
 0x5b9   : > { %v3697_v47 = vadd.f32 %v5130_v7, %v6596_v23  ;;  %v5133_v55 = vadd.f32 %v5132_v51, %v5131_v60 }
 0x5ba   : > { %4927 = vst [vmem:[%s6614_s28 + $0x48] sm:$0xff] %v4872_v54   ;;  %5265 = vmatprep.subr.bf16.mxu0 %v4872_v54  ;;  %v5296_v52 = vpack.c.bf16 %v4050_v20, %v4049_v33  ;;  %v6797_v58 = vmul.f32 %v4018_v37, %v4018_v37 }
 0x5bb   : > { %5587 = vtanh.f32 %v3697_v47  ;;  %v3700_v38 = vadd.f32 %v5133_v55, %v6596_v23  ;;  %5267 = vmatpush3.bf16.xpose.msra.mxu0 %v6637_v10 }
 0x5bc   : > { %5297 = vmatprep.subr.bf16.mxu1 %v5296_v52  ;;  %v5328_v63 = vpack.c.bf16 %v6797_v58, %v6795_v53 }
 0x5bd   : > { %v5584_v21 = vpop.eup %5583  ;;  %5589 = vtanh.f32 %v3700_v38  ;;  %v5134_v46 = vpop.f32.mrb[176].mxu1  ;;  %5299 = vmatpush3.bf16.xpose.msra.mxu1 %v5298_v40 }
 0x5be   : > { %v5135_v32 = vpop.f32.mrb[177].mxu1  ;;  %v4019_v34 = vsub.f32 %v5584_v21, %v5635_v3  ;;  %v4051_v33 = vmul.f32 %v5584_v21, %v5584_v21 }
 0x5bf   : > { %v5586_v7 = vpop.eup %5585  ;;  %v5136_v60 = vadd.f32 %v5135_v32, %v5134_v46  ;;  %v5137_v51 = vpop.f32.mrb[178].mxu1  ;;  %v6982_v32 = vpack.c.bf16 %v6661_v31, %v6659_v30 }
 0x5c0   : > { %v5138_v10 = vpop.f32.mrb[179].mxu1  ;;  %v4877_v54 = vpack.c.bf16 %v5586_v7, %v5584_v21  ;;  %v4052_v20 = vmul.f32 %v5586_v7, %v5586_v7  ;;  %v4020_v37 = vsub.f32 %v5586_v7, %v5636_v50  ;;  %v6810_v12 = vmul.f32 %v4019_v34, %v4019_v34  ;;  %v5637_v34 = vld [vmem:[%s5827_s29 + $0xb0] sm:$0xff]  ;;  %v5638_v50 = vld [vmem:[%s5827_s29 + $0xb8] sm:$0xff] }
 0x5c1   : > { %v3705_v47 = vadd.f32 %v5136_v60, %v6596_v23  ;;  %v5139_v55 = vadd.f32 %v5138_v10, %v5137_v51 }
 0x5c2   : > { %4928 = vst [vmem:[%s6614_s28 + $0x50] sm:$0xff] %v4877_v54   ;;  %5269 = vmatprep.subr.bf16.mxu0 %v4877_v54  ;;  %v5300_v11 = vpack.c.bf16 %v4052_v20, %v4051_v33  ;;  %v6812_v40 = vmul.f32 %v4020_v37, %v4020_v37 }
 0x5c3   : > { %5591 = vtanh.f32 %v3705_v47  ;;  %v3708_v52 = vadd.f32 %v5139_v55, %v6596_v23  ;;  %5271 = vmatpush3.bf16.xpose.msra.mxu0 %v6657_v29 }
 0x5c4   : > { %5301 = vmatprep.subr.bf16.mxu1 %v5300_v11  ;;  %v5332_v38 = vpack.c.bf16 %v6812_v40, %v6810_v12  ;;  %v6997_v12 = vlaneseq }
 0x5c5   : > { %v5588_v21 = vpop.eup %5587  ;;  %5593 = vtanh.f32 %v3708_v52  ;;  %v5140_v46 = vpop.f32.mrb[180].mxu1  ;;  %5303 = vmatpush3.bf16.xpose.msra.mxu1 %v6982_v32 }
 0x5c6   : > { %v5141_v3 = vpop.f32.mrb[181].mxu1  ;;  %v4021_v7 = vsub.f32 %v5588_v21, %v5637_v34  ;;  %v4053_v33 = vmul.f32 %v5588_v21, %v5588_v21  ;;  %v4263_v40 = vand.u32 127, %v6997_v12  ;;  %vm4294_vm6 = vcmp.lt.s32.totalorder %v6997_v12, 256 }
 0x5c7   : > { %v5590_v60 = vpop.eup %5589  ;;  %v5142_v51 = vadd.f32 %v5141_v3, %v5140_v46  ;;  %v5143_v10 = vpop.f32.mrb[182].mxu1  ;;  %v6983_v3 = vpack.c.bf16 %v6681_v1, %v6679_v0 }
 0x5c8   : > { %v5144_v29 = vpop.f32.mrb[183].mxu1  ;;  %v4882_v54 = vpack.c.bf16 %v5590_v60, %v5588_v21  ;;  %v4054_v20 = vmul.f32 %v5590_v60, %v5590_v60  ;;  %v4022_v37 = vsub.f32 %v5590_v60, %v5638_v50  ;;  %v6825_v31 = vmul.f32 %v4021_v7, %v4021_v7  ;;  %v5639_v7 = vld [vmem:[%s5827_s29 + $0xc0] sm:$0xff]  ;;  %v5640_v50 = vld [vmem:[%s5827_s29 + $0xc8] sm:$0xff] }
 0x5c9   : > { %v3713_v47 = vadd.f32 %v5142_v51, %v6596_v23  ;;  %v5145_v55 = vadd.f32 %v5144_v29, %v5143_v10 }
 0x5ca   : > { %4929 = vst [vmem:[%s6614_s28 + $0x58] sm:$0xff] %v4882_v54   ;;  %5273 = vmatprep.subr.bf16.mxu0 %v4882_v54  ;;  %v5304_v30 = vpack.c.bf16 %v4054_v20, %v4053_v33  ;;  %v6827_v11 = vmul.f32 %v4022_v37, %v4022_v37 }
 0x5cb   : > { %5595 = vtanh.f32 %v3713_v47  ;;  %v3716_v52 = vadd.f32 %v5145_v55, %v6596_v23  ;;  %5275 = vmatpush3.bf16.xpose.msra.mxu0 %v6677_v61 }
 0x5cc   : > { %5305 = vmatprep.subr.bf16.mxu1 %v5304_v30  ;;  %v5336_v21 = vpack.c.bf16 %v6827_v11, %v6825_v31  ;;  %v4264_v31 = vadd.s32 128, %v4263_v40  ;;  %v5657_v11 = vmov 1966171168  }
 0x5cd   : > { %v5592_v46 = vpop.eup %5591  ;;  %5597 = vtanh.f32 %v3716_v52  ;;  %v5146_v32 = vpop.f32.mrb[184].mxu1  ;;  %5307 = vmatpush3.bf16.xpose.msra.mxu1 %v6983_v3 }
 0x5ce   : > { %v5147_v34 = vpop.f32.mrb[185].mxu1  ;;  %v4023_v60 = vsub.f32 %v5592_v46, %v5639_v7  ;;  %v4055_v33 = vmul.f32 %v5592_v46, %v5592_v46 }
 0x5cf   : > { %v5594_v51 = vpop.eup %5593  ;;  %v5148_v10 = vadd.f32 %v5147_v34, %v5146_v32  ;;  %v5149_v29 = vpop.f32.mrb[186].mxu1  ;;  %v6984_v34 = vpack.c.bf16 %v6701_v28, %v6699_v27 }
 0x5d0   : > { %v5150_v61 = vpop.f32.mrb[187].mxu1  ;;  %v4887_v54 = vpack.c.bf16 %v5594_v51, %v5592_v46  ;;  %v4056_v20 = vmul.f32 %v5594_v51, %v5594_v51  ;;  %v4024_v37 = vsub.f32 %v5594_v51, %v5640_v50  ;;  %v6840_v1 = vmul.f32 %v4023_v60, %v4023_v60  ;;  %v5641_v60 = vld [vmem:[%s5827_s29 + $0xd0] sm:$0xff]  ;;  %v5642_v50 = vld [vmem:[%s5827_s29 + $0xd8] sm:$0xff] }
 0x5d1   : > { %v3721_v47 = vadd.f32 %v5148_v10, %v6596_v23  ;;  %v5151_v55 = vadd.f32 %v5150_v61, %v5149_v29 }
 0x5d2   : > { %4930 = vst [vmem:[%s6614_s28 + $0x60] sm:$0xff] %v4887_v54   ;;  %5277 = vmatprep.subr.bf16.mxu0 %v4887_v54  ;;  %v5308_v0 = vpack.c.bf16 %v4056_v20, %v4055_v33  ;;  %v6842_v30 = vmul.f32 %v4024_v37, %v4024_v37 }
 0x5d3   : > { %5599 = vtanh.f32 %v3721_v47  ;;  %v3724_v52 = vadd.f32 %v5151_v55, %v6596_v23  ;;  %5279 = vmatpush3.bf16.xpose.msra.mxu0 %v6697_v26 }
 0x5d4   : > { %5309 = vmatprep.subr.bf16.mxu1 %v5308_v0  ;;  %v5340_v46 = vpack.c.bf16 %v6842_v30, %v6840_v1 }
 0x5d5   : > { %v5596_v32 = vpop.eup %5595  ;;  %5601 = vtanh.f32 %v3724_v52  ;;  %v5152_v3 = vpop.f32.mrb[188].mxu1  ;;  %5311 = vmatpush3.bf16.xpose.msra.mxu1 %v6984_v34  ;;  %v6985_v34 = vpack.c.bf16 %v6721_v16, %v6719_v15 }
 0x5d6   : > { %v5153_v7 = vpop.f32.mrb[189].mxu1  ;;  %v4025_v51 = vsub.f32 %v5596_v32, %v5641_v60  ;;  %v4057_v33 = vmul.f32 %v5596_v32, %v5596_v32 }
 0x5d7   : > { %v5598_v10 = vpop.eup %5597  ;;  %v5154_v29 = vadd.f32 %v5153_v7, %v5152_v3  ;;  %v5155_v61 = vpop.f32.mrb[190].mxu1  ;;  %v5643_v7 = vld [vmem:[%s5827_s29 + $0xe0] sm:$0xff] }
 0x5d8   : > { %v5156_v26 = vpop.f32.mrb[191].mxu1  ;;  %v4892_v54 = vpack.c.bf16 %v5598_v10, %v5596_v32  ;;  %v4058_v20 = vmul.f32 %v5598_v10, %v5598_v10  ;;  %v4026_v37 = vsub.f32 %v5598_v10, %v5642_v50  ;;  %v4089_v28 = vmul.f32 %v4025_v51, %v4025_v51  ;;  %v5645_v50 = vld [vmem:[%s5827_s29 + $0xf0] sm:$0xff] }
 0x5d9   : > { %v3729_v47 = vadd.f32 %v5154_v29, %v6596_v23  ;;  %v5157_v55 = vadd.f32 %v5156_v26, %v5155_v61  ;;  %v5644_v26 = vld [vmem:[%s5827_s29 + $0xe8] sm:$0xff] }
 0x5da   : > { %4931 = vst [vmem:[%s6614_s28 + $0x68] sm:$0xff] %v4892_v54   ;;  %5281 = vmatprep.subr.bf16.mxu0 %v4892_v54  ;;  %v5312_v27 = vpack.c.bf16 %v4058_v20, %v4057_v33  ;;  %v4090_v0 = vmul.f32 %v4026_v37, %v4026_v37  ;;  %v6986_v20 = vpack.c.bf16 %v6741_v6, %v6739_v5 }
 0x5db   : > { %5603 = vtanh.f32 %v3729_v47  ;;  %v3732_v52 = vadd.f32 %v5157_v55, %v6596_v23  ;;  %5283 = vmatpush3.bf16.xpose.msra.mxu0 %v6717_v13  ;;  %v6987_v6 = vpack.c.bf16 %v6761_v14, %v6759_v19 }
 0x5dc   : > { %5313 = vmatprep.subr.bf16.mxu1 %v5312_v27  ;;  %v5344_v32 = vpack.c.bf16 %v4090_v0, %v4089_v28  ;;  %v5646_v0 = vld [vmem:[%s5827_s29 + $0xf8] sm:$0xff]  ;;  %s4268_s29 = sld [smem:[#allocation3]] }
 0x5dd   : > { %v5600_v3 = vpop.eup %5599  ;;  %5605 = vtanh.f32 %v3732_v52  ;;  %5315 = vmatpush3.bf16.xpose.msra.mxu1 %v6985_v34 }
 0x5de   : > { %v4027_v60 = vsub.f32 %v5600_v3, %v5643_v7  ;;  %v4059_v29 = vmul.f32 %v5600_v3, %v5600_v3  ;;  %v6988_v7 = vpack.c.bf16 %v6630_v39, %v6628_v59  ;;  %v6992_v59 = vpack.c.bf16 %v6691_v9, %v6689_v8 }
 0x5df   : > { %v5602_v10 = vpop.eup %5601  ;;  %v6993_v39 = vpack.c.bf16 %v6711_v49, %v6709_v48 }
 0x5e0   : > { %v4897_v51 = vpack.c.bf16 %v5602_v10, %v5600_v3  ;;  %v4060_v61 = vmul.f32 %v5602_v10, %v5602_v10  ;;  %v4028_v54 = vsub.f32 %v5602_v10, %v5644_v26  ;;  %v4091_v13 = vmul.f32 %v4027_v60, %v4027_v60 }
 0x5e1   : > { %v6989_v60 = vmov 1.0  }
 0x5e2   : > { %4932 = vst [vmem:[%s6614_s28 + $0x70] sm:$0xff] %v4897_v51   ;;  %5285 = vmatprep.subr.bf16.mxu0 %v4897_v51  ;;  %v5316_v23 = vpack.c.bf16 %v4060_v61, %v4059_v29  ;;  %v4092_v33 = vmul.f32 %v4028_v54, %v4028_v54  ;;  %v4269_v30 = vstv %s4268_s29 }
 0x5e3   : > { %5287 = vmatpush3.bf16.xpose.msra.mxu0 %v6737_v4 }
 0x5e4   : > { %5317 = vmatprep.subr.bf16.mxu1 %v5316_v23  ;;  %v5348_v15 = vpack.c.bf16 %v4092_v33, %v4091_v13 }
 0x5e5   : > { %v5604_v16 = vpop.eup %5603  ;;  %5319 = vmatpush3.bf16.xpose.msra.mxu1 %v6986_v20 }
 0x5e6   : > { %v4029_v37 = vsub.f32 %v5604_v16, %v5645_v50  ;;  %v4061_v27 = vmul.f32 %v5604_v16, %v5604_v16 }
 0x5e7   : > { %v5606_v47 = vpop.eup %5605 }
 0x5e8   : > { %v4902_v55 = vpack.c.bf16 %v5606_v47, %v5604_v16  ;;  %v4062_v28 = vmul.f32 %v5606_v47, %v5606_v47  ;;  %v4030_v52 = vsub.f32 %v5606_v47, %v5646_v0  ;;  %v4093_v34 = vmul.f32 %v4029_v37, %v4029_v37 }
 0x5ea   : > { %4933 = vst [vmem:[%s6614_s28 + $0x78] sm:$0xff] %v4902_v55   ;;  %5289 = vmatprep.subr.bf16.mxu0 %v4902_v55  ;;  %v5320_v3 = vpack.c.bf16 %v4062_v28, %v4061_v27  ;;  %v4094_v4 = vmul.f32 %v4030_v52, %v4030_v52 }
 0x5eb   : > { %5291 = vmatpush3.bf16.xpose.msra.mxu0 %v6757_v22 }
 0x5ec   : > { %5321 = vmatprep.subr.bf16.mxu1 %v5320_v3  ;;  %5325 = vmatprep.subr.bf16.mxu0 %v5324_v62  ;;  %v5352_v5 = vpack.c.bf16 %v4094_v4, %v4093_v34 }
 0x5ed   : > { %5323 = vmatpush3.bf16.xpose.msra.mxu1 %v6987_v6 }
 0x5f2   : > { %5191 = vmatmul.mubr.f32.vlgmr.msra.gmra.mrb[192].mxu0 %v6605_v45  ;;  %v6991_v45 = vpack.c.bf16 %v6671_v44, %v6669_v43 }
 0x5f3   : > { %5327 = vmatpush3.bf16.xpose.msra.mxu0 %v6988_v7  ;;  %5258 = vmatprep.mubr.f32.mxu0 %v6989_v60 }
 0x5f4   : > { %5329 = vmatprep.subr.bf16.mxu0 %v5328_v63  ;;  %5225 = vmatmul.mubr.f32.vlgmr.msra.gmra.mrb[192].mxu1 %v6989_v60 }
 0x5fb   : > { %5331 = vmatpush3.bf16.xpose.msra.mxu0 %v6990_v2 }
 0x5fc   : > { %5333 = vmatprep.subr.bf16.mxu0 %v5332_v38  ;;  %v4265_v38 = vstv %s4677_s27 }
 0x5fd   : > { %v4266_v1 = vadd.s32 %v4265_v38, %v4263_v40 }
 0x5ff   : > { %vm6920_vm4 = vcmp.lt.s32.totalorder %v4266_v1, %v4269_v30 }
 0x603   : > { %5335 = vmatpush3.bf16.xpose.msra.mxu0 %v6991_v45 }
 0x604   : > { %5337 = vmatprep.subr.bf16.mxu0 %v5336_v21  ;;  %v4278_v21 = vunpack.c.l.s4 %v5657_v11 }
 0x60b   : > { %5339 = vmatpush3.bf16.xpose.msra.mxu0 %v6992_v59 }
 0x60c   : > { %5341 = vmatprep.subr.bf16.mxu0 %v5340_v46  ;;  %v4267_v46 = vadd.s32 %v4265_v38, %v4264_v31 }
 0x60e   : > { %vm6925_vm5 = vcmp.lt.s32.totalorder %v4267_v46, %v4269_v30 }
 0x613   : > { %5343 = vmatpush3.bf16.xpose.msra.mxu0 %v6993_v39 }
 0x614   : > { %5345 = vmatprep.subr.bf16.mxu0 %v5344_v32  ;;  %v4279_v32 = vunpack.c.0.s8 %v4278_v21 }
 0x616   : > { %v4282_v13 = vsub.s32 %v4279_v32, %v5976_v35 }
 0x61b   : > { %5347 = vmatpush3.bf16.xpose.msra.mxu0 %v6994_v17 }
 0x61c   : > { %5349 = vmatprep.subr.bf16.mxu0 %v5348_v15 }
 0x623   : > { %5351 = vmatpush3.bf16.xpose.msra.mxu0 %v6995_v18 }
 0x624   : > { %5353 = vmatprep.subr.bf16.mxu0 %v5352_v5 }
 0x62b   : > { %5355 = vmatpush3.bf16.xpose.msra.mxu0 %v6996_v42 }
 0x632   : > { %5259 = vmatmul.mubr.f32.vlgmr.msra.gmra.mrb[194].mxu0 %v6989_v60 }
 0x6c5   : > { %v3994_v43 = vpop.f32.mrb[192].mxu0 }
 0x6c6   : > { %v3996_v44 = vpop.f32.mrb[193].mxu0 }
 0x6c7   : > { %v4161_v8 = vpop.f32.mrb[192].mxu1 }
 0x6c8   : > { %5607 = vrsqrt.f32 %v4161_v8  ;;  %v4163_v9 = vpop.f32.mrb[193].mxu1  ;;  %vm4240_vm0 = vcmp.eq.f32.partialorder %v4161_v8, inf  ;;  %v4243_v48 = vand.u32 2147483648, %v4161_v8  ;;  %vm4242_vm1 = vcmp.eq.f32.partialorder %v4161_v8, 0.0 }
 0x6c9   : > { %5609 = vrsqrt.f32 %v4163_v9  ;;  %vm4247_vm2 = vcmp.eq.f32.partialorder %v4163_v9, inf  ;;  %v4250_v25 = vand.u32 2147483648, %v4163_v9  ;;  %vm4249_vm3 = vcmp.eq.f32.partialorder %v4163_v9, 0.0 }
 0x6d2   : > { %v5608_v14 = vpop.eup %5607 }
 0x6d3   : > { %v5610_v49 = vpop.eup %5609  ;;  %v4239_v24 = vmul.f32 %v5608_v14, %v4161_v8 }
 0x6d4   : > { %v4246_v41 = vmul.f32 %v5610_v49, %v4163_v9 }
 0x6d5   : > { %v4241_v22 = vsel %vm4240_vm0, %v4161_v8, %v4239_v24 }
 0x6d6   : > { %v4248_v19 = vsel %vm4247_vm2, %v4163_v9, %v4246_v41  ;;  %v4244_v56 = vsel %vm4242_vm1, %v4243_v48, %v4241_v22 }
 0x6d7   : > { %v4251_v57 = vsel %vm4249_vm3, %v4250_v25, %v4248_v19  ;;  %v4253_v62 = vmul.f32 %v4252_v36, %v4244_v56 }
 0x6d8   : > { %v4254_v53 = vmul.f32 %v4252_v36, %v4251_v57 }
 0x6d9   : > { %v4255_v58 = vadd.f32 1e-05, %v4253_v62 }
 0x6da   : > { %v4256_v63 = vadd.f32 1e-05, %v4254_v53 }
 0x6db   : > { %5611 = vrcp.f32 %v4255_v58 }
 0x6dc   : > { %5613 = vrcp.f32 %v4256_v63 }
 0x6e5   : > { %v5612_v10 = vpop.eup %5611 }
 0x6e6   : > { %v5614_v29 = vpop.eup %5613  ;;  %v4258_v61 = vmul.f32 %v5612_v10, %v3994_v43 }
 0x6e7   : > { %v4260_v54 = vmul.f32 %v5614_v29, %v3996_v44 }
 0x6e8   : > { %v4272_v23 = vsel %vm6920_vm4, %v4258_v61, -3e+38 }
 0x6e9   : > { %v4273_v33 = vsel %vm6925_vm5, %v4260_v54, -3e+38 }
 0x6ea   : > { %v4276_v15 = vcombine.low %v4272_v23, %v4273_v33 }
 0x6ec   : > { %v4283_v16 = vrot.slane %v4276_v15, %v4282_v13 }
 0x6ee   : > { %v4290_v20 = vrot.slane %v4283_v16, %v4282_v13 }
 0x6f0   : > { %4296 = vst.msk [vmem:[%s637_s20] sm:$0x3] %vm4294_vm6, %v4290_v20 }
 0x705   : > { %v4232_v50 = vpop.f32.mrb[194].mxu0 }
 0x706   : > { %v4297_v37 = vsel %vm6920_vm4, %v4232_v50, 0.0  ;;  %v4234_v47 = vpop.f32.mrb[195].mxu0 }
 0x707   : > { %v4298_v35 = vsel %vm6925_vm5, %v4234_v47, 0.0 }
 0x708   : > { %v4301_v55 = vcombine.low %v4297_v37, %v4298_v35 }
 0x70a   : > { %v4308_v27 = vrot.slane %v4301_v55, %v4282_v13 }
 0x70c   : > { %v4315_v28 = vrot.slane %v4308_v27, %v4282_v13 }
 0x70e   : > { %4317 = vst.msk [vmem:[%s641_s1] sm:$0x3] %vm4294_vm6, %v4315_v28 }
 0x70f PF: > { %s32_s22 = sadd.s32 1, %s5653_s22  }
 0x710   : > { %p29_p5 = scmp.ge.s32.totalorder %s32_s22, 4  }
 0x712   :  { %31 = sbr.rel (!%p29_p5) target bundleno = 12 (0xc), region = 150 }

</bundles_post_ra>
